<compile_context>
chip_gen: v7x
topology: tpu7x:2x2x1
jax: 0.10.0
libtpu: 0.0.40
codegen_flags: <defaults>
</compile_context>

<pallas_src>
import functools

import numpy as np
import jax
import jax.numpy as jnp
from jax.experimental import pallas as pl
from jax.experimental.pallas import tpu as pltpu


# ----------------------------------------------------------------------------
# Kernel 1: fused conv stem (all 3x3 convs, BN folded, ReLU) — one batch / step
# ----------------------------------------------------------------------------
def _stem_kernel(*refs, kh_list, ho_list):
    x_ref, o_ref = refs[0], refs[-1]
    w_refs = refs[1:-1]
    h = x_ref[0]                                        # (Hp, Wp*Cin) f32
    n_layers = len(kh_list)
    for li in range(n_layers):
        w_ref = w_refs[2 * li]                          # (kh, Wp*Cin, Wo*Cout) bf16
        b_ref = w_refs[2 * li + 1]                      # (1, Wo*Cout) f32
        kh, ho = kh_list[li], ho_list[li]
        wcols = w_ref.shape[-1]
        acc = jnp.zeros((ho, wcols), jnp.float32)
        # in-kernel "im2col": kh banded matmuls, f32 accumulate on the MXU
        for dy in range(kh):
            lhs = h[dy:dy + ho, :].astype(jnp.bfloat16)
            acc = acc + jnp.dot(lhs, w_ref[dy],
                                preferred_element_type=jnp.float32)
        h = jnp.maximum(acc + b_ref[...], 0.0)          # bias + ReLU in f32
    o_ref[0] = h.astype(o_ref.dtype)


def _run_stem(x2d, stem_layers):
    # x2d: (N, Hp0, Wp0*Cin0) f32  (zero-padded NHWC, last two dims flattened)
    n = x2d.shape[0]
    last = stem_layers[-1]
    in_specs = [pl.BlockSpec((1,) + x2d.shape[1:], lambda b: (b, 0, 0))]
    args = [x2d]
    for layer in stem_layers:
        in_specs.append(pl.BlockSpec(layer["w"].shape, lambda b: (0, 0, 0)))
        in_specs.append(pl.BlockSpec(layer["b"].shape, lambda b: (0, 0)))
        args += [layer["w"], layer["b"]]
    kernel = functools.partial(
        _stem_kernel,
        kh_list=tuple(l["kh"] for l in stem_layers),
        ho_list=tuple(l["ho"] for l in stem_layers))
    return pl.pallas_call(
        kernel,
        grid=(n,),
        in_specs=in_specs,
        out_specs=pl.BlockSpec((1, last["ho"], last["wcols"]), lambda b: (b, 0, 0)),
        out_shape=jax.ShapeDtypeStruct((n, last["ho"], last["wcols"]), jnp.bfloat16),
        compiler_params=pltpu.CompilerParams(
            dimension_semantics=("parallel",),
            vmem_limit_bytes=32 * 1024 * 1024),
    )(*args)


# ----------------------------------------------------------------------------
# Kernel 2: fused post-stem network (fc chain + all heads), rows = pixels
# ----------------------------------------------------------------------------
def _head_kernel(*refs, n_relu_layers, groups, on_col, sl_col):
    x_ref, o_ref = refs[0], refs[-1]
    w_refs = refs[1:-1]
    h = x_ref[...]                                      # (Mblk, C) bf16
    # fc chain + packed head stage 1: matmul + bias + ReLU, VMEM-resident
    for li in range(n_relu_layers):
        w_ref, b_ref = w_refs[2 * li], w_refs[2 * li + 1]
        y = jnp.dot(h, w_ref[...], preferred_element_type=jnp.float32) + b_ref[...]
        h = jnp.maximum(y, 0.0).astype(jnp.bfloat16)
    # packed head stage 2: one lane-dense matmul for all five head outputs
    w2_ref, b2_ref = w_refs[-2], w_refs[-1]
    y = jnp.dot(h, w2_ref[...], preferred_element_type=jnp.float32) + b2_ref[...]

    col = jax.lax.broadcasted_iota(jnp.int32, y.shape, 1)
    out = jnp.zeros_like(y)
    # masked per-group LogSoftmax (padding lanes excluded from max/sum)
    for start, width in groups:
        mask = (col >= start) & (col < start + width)
        ym = jnp.where(mask, y, -jnp.inf)
        m = jnp.max(ym, axis=-1, keepdims=True)
        lse = jnp.log(jnp.sum(jnp.exp(ym - m), axis=-1, keepdims=True))
        out = jnp.where(mask, y - m - lse, out)
    out = jnp.where(col == on_col, jax.nn.sigmoid(y), out)   # stem_on head
    out = jnp.where(col == sl_col, y, out)                   # linear sl_size head
    o_ref[...] = out


def _run_heads(rows, prep):
    m, c = rows.shape
    mblk = 256
    if m % mblk != 0:
        mblk = m
    relu_layers = list(prep["fc"]) + [(prep["head1_w"], prep["head1_b"])]
    all_layers = relu_layers + [(prep["head2_w"], prep["head2_b"])]
    in_specs = [pl.BlockSpec((mblk, c), lambda i: (i, 0))]
    args = [rows]
    for w, b in all_layers:
        in_specs.append(pl.BlockSpec(w.shape, lambda i: (0, 0)))
        in_specs.append(pl.BlockSpec(b.shape, lambda i: (0, 0)))
        args += [w, b]
    kernel = functools.partial(
        _head_kernel,
        n_relu_layers=len(relu_layers),
        groups=prep["groups"],
        on_col=prep["cols"]["on"],
        sl_col=prep["cols"]["sl"])
    out_w = prep["out_w"]
    return pl.pallas_call(
        kernel,
        grid=(m // mblk,),
        in_specs=in_specs,
        out_specs=pl.BlockSpec((mblk, out_w), lambda i: (i, 0)),
        out_shape=jax.ShapeDtypeStruct((m, out_w), jnp.float32),
        compiler_params=pltpu.CompilerParams(
            dimension_semantics=("parallel",),
            vmem_limit_bytes=32 * 1024 * 1024),
    )(*args)


# ----------------------------------------------------------------------------
# One-time weight repacking (eager, numpy): BN folding, banded conv weights,
# packed head weights, lane layout of the fused output slab.
# ----------------------------------------------------------------------------
def compute_context(filter_width):
    c = sum(fw - 1 for fw in filter_width)
    context_left = c // 2
    context_right = c - context_left
    return context_left, context_right


def _np(a):
    return np.asarray(jax.device_get(a), np.float32)


def prepare_params(params, filter_width, input_hw, in_channels=8, bn_eps=1e-5):
    H, W = input_hw
    cl, cr = compute_context(filter_width)
    ph, pw = cl, cr                      # PyTorch padding=(padH, padW), symmetric

    # ---- conv stem: fold BN, build banded (Toeplitz-over-W) weights ----
    stem = []
    hp, wp, cin = H + 2 * ph, W + 2 * pw, in_channels
    for layer in params["cnn"]:
        w = _np(layer["w"])
        b = _np(layer["b"])
        scale = _np(layer["gamma"]) / np.sqrt(_np(layer["var"]) + bn_eps)
        w = w * scale[:, None, None, None]
        b = (b - _np(layer["mean"])) * scale + _np(layer["beta"])
        cout, cin_w, kh, kw = w.shape
        assert cin_w == cin
        ho, wo = hp - kh + 1, wp - kw + 1
        wb = np.zeros((kh, wp * cin, wo * cout), np.float32)
        for dy in range(kh):
            for dx in range(kw):
                wt = w[:, :, dy, dx].T                          # (cin, cout)
                for woi in range(wo):
                    wi = woi + dx
                    wb[dy, wi * cin:(wi + 1) * cin,
                       woi * cout:(woi + 1) * cout] = wt
        stem.append(dict(
            w=jnp.asarray(wb, jnp.bfloat16),
            b=jnp.asarray(np.tile(b, wo)[None, :], jnp.float32),
            kh=kh, ho=ho, wcols=wo * cout))
        hp, wp, cin = ho, wo, cout

    def w1x1(w):  # (Cout, Cin, 1, 1) -> (Cin, Cout)
        w = _np(w)
        return w.reshape(w.shape[0], w.shape[1]).T

    # ---- fc 1x1 conv chain ----
    fc = []
    for layer in params["fc"]:
        fc.append((jnp.asarray(w1x1(layer["w"]), jnp.bfloat16),
                   jnp.asarray(_np(layer["b"])[None, :], jnp.float32)))

    p_on = params["out_stem_on"]
    p_lx = params["out_stem_loc_x"]
    p_ly = params["out_stem_loc_y"]
    p_siz = params["hid_stem_siz"]
    p_sm = params["out_stem_sm_siz"]
    p_sl = params["out_stem_sl_siz"]

    # ---- head stage 1: four parallel (C -> hd) 1x1 convs packed laterally ----
    hd = p_on["w1"].shape[0]
    w1 = np.concatenate([w1x1(p_on["w1"]), w1x1(p_lx["w1"]),
                         w1x1(p_ly["w1"]), w1x1(p_siz["w"])], axis=1)
    b1 = np.concatenate([_np(p_on["b1"]), _np(p_lx["b1"]),
                         _np(p_ly["b1"]), _np(p_siz["b"])])[None, :]

    # ---- head stage 2: five small convs packed block-wise into one matmul ----
    wx, wy, wsm = p_lx["w2"].shape[0], p_ly["w2"].shape[0], p_sm["w"].shape[0]
    lx_col, ly_col, sm_col = 0, wx, wx + wy
    on_col = wx + wy + wsm
    sl_col = on_col + 1
    total = sl_col + 1
    out_w = max(128, -(-total // 128) * 128)        # lane-dense padded output width
    w2 = np.zeros((4 * hd, out_w), np.float32)
    b2 = np.zeros((out_w,), np.float32)
    w2[0 * hd:1 * hd, on_col] = w1x1(p_on["w2"])[:, 0]
    b2[on_col] = _np(p_on["b2"])[0]
    w2[1 * hd:2 * hd, lx_col:lx_col + wx] = w1x1(p_lx["w2"])
    b2[lx_col:lx_col + wx] = _np(p_lx["b2"])
    w2[2 * hd:3 * hd, ly_col:ly_col + wy] = w1x1(p_ly["w2"])
    b2[ly_col:ly_col + wy] = _np(p_ly["b2"])
    w2[3 * hd:4 * hd, sm_col:sm_col + wsm] = w1x1(p_sm["w"])
    b2[sm_col:sm_col + wsm] = _np(p_sm["b"])
    w2[3 * hd:4 * hd, sl_col] = w1x1(p_sl["w"])[:, 0]
    b2[sl_col] = _np(p_sl["b"])[0]

    return dict(
        pad=(ph, pw), in_channels=in_channels,
        stem=stem, ho=hp, wo=wp, c_last=cin,
        fc=fc,
        head1_w=jnp.asarray(w1, jnp.bfloat16),
        head1_b=jnp.asarray(b1, jnp.float32),
        head2_w=jnp.asarray(w2, jnp.bfloat16),
        head2_b=jnp.asarray(b2[None, :], jnp.float32),
        out_w=out_w,
        groups=((lx_col, wx), (ly_col, wy), (sm_col, wsm)),
        cols=dict(lx=lx_col, ly=ly_col, sm=sm_col, on=on_col, sl=sl_col),
        widths=dict(lx=wx, ly=wy, sm=wsm))


# ----------------------------------------------------------------------------
# Forward pass (mirrors SimpleConvNet.forward, inference mode)
# ----------------------------------------------------------------------------
def simple_conv_net_forward(prep, x):
    n, cin, h, w = x.shape
    ph, pw = prep["pad"]
    xh = jnp.transpose(x, (0, 2, 3, 1))                       # NCHW -> NHWC (once)
    xh = jnp.pad(xh, ((0, 0), (ph, ph), (pw, pw), (0, 0)))
    xh = xh.reshape(n, h + 2 * ph, (w + 2 * pw) * cin).astype(jnp.float32)

    stem_out = _run_stem(xh, prep["stem"])                    # (N, Ho, Wo*C) bf16
    ho, wo, c = prep["ho"], prep["wo"], prep["c_last"]
    rows = stem_out.reshape(n * ho * wo, c)                   # per-pixel rows

    yflat = _run_heads(rows, prep)                            # (M, out_w) f32

    def take(start, width):
        yy = yflat[:, start:start + width].reshape(n, ho, wo, width)
        return jnp.transpose(yy, (0, 3, 1, 2))                # -> NCHW

    cols, wd = prep["cols"], prep["widths"]
    return {
        "stem_on": take(cols["on"], 1),
        "stem_location_x": take(cols["lx"], wd["lx"]),
        "stem_location_y": take(cols["ly"], wd["ly"]),
        "stem_sm_size": take(cols["sm"], wd["sm"]),
        "stem_sl_size": take(cols["sl"], 1),
    }


# ----------------------------------------------------------------------------
# Parameter construction (deterministic, synthetic) — same structure as before
# ----------------------------------------------------------------------------
def init_params(key, num_filters, filter_width, hid_shared, hid_output):
    assert len(hid_output) == 1
    nf = [8] + list(num_filters)
    fw = [None] + list(filter_width)
    hs = [nf[-1]] + list(hid_shared)
    ho = hid_output[0]

    def conv_init(key, cout, cin, kh, kw):
        kw_, kb_ = jax.random.split(key)
        fan_in = cin * kh * kw
        w = jax.random.normal(kw_, (cout, cin, kh, kw), jnp.float32) / jnp.sqrt(fan_in)
        b = 0.01 * jax.random.normal(kb_, (cout,), jnp.float32)
        return w, b

    keys = iter(jax.random.split(key, 64))
    params = {"cnn": [], "fc": []}

    for i in range(1, len(nf)):
        w, b = conv_init(next(keys), nf[i], nf[i - 1], fw[i], fw[i])
        k1, k2, k3, k4 = jax.random.split(next(keys), 4)
        params["cnn"].append(dict(
            w=w, b=b,
            gamma=1.0 + 0.1 * jax.random.normal(k1, (nf[i],), jnp.float32),
            beta=0.1 * jax.random.normal(k2, (nf[i],), jnp.float32),
            mean=0.1 * jax.random.normal(k3, (nf[i],), jnp.float32),
            var=0.5 + jax.random.uniform(k4, (nf[i],), jnp.float32),
        ))

    for i in range(1, len(hs)):
        w, b = conv_init(next(keys), hs[i], hs[i - 1], 1, 1)
        params["fc"].append(dict(w=w, b=b))

    hid_fc_last = hs[-1]

    def head_pair(cout2):
        w1, b1 = conv_init(next(keys), ho, hid_fc_last, 1, 1)
        w2, b2 = conv_init(next(keys), cout2, ho, 1, 1)
        return dict(w1=w1, b1=b1, w2=w2, b2=b2)

    params["out_stem_on"] = head_pair(1)
    params["out_stem_loc_x"] = head_pair(12)
    params["out_stem_loc_y"] = head_pair(12)
    w, b = conv_init(next(keys), ho, hid_fc_last, 1, 1)
    params["hid_stem_siz"] = dict(w=w, b=b)
    w, b = conv_init(next(keys), 11, ho, 1, 1)
    params["out_stem_sm_siz"] = dict(w=w, b=b)
    w, b = conv_init(next(keys), 1, ho, 1, 1)
    params["out_stem_sl_siz"] = dict(w=w, b=b)
    return params


# ----------------------------------------------------------------------------
# Pure-JAX (XLA) reference for correctness checking
# ----------------------------------------------------------------------------
def _ref_conv(x, w, b, padding):
    y = jax.lax.conv_general_dilated(
        x, w, window_strides=(1, 1), padding=padding,
        dimension_numbers=("NCHW", "OIHW", "NCHW"))
    return y + b[None, :, None, None]


def reference_forward(params, x, filter_width):
    cl, cr = compute_context(filter_width)
    h = x
    for i, layer in enumerate(params["cnn"]):
        scale = layer["gamma"] / jnp.sqrt(layer["var"] + 1e-5)
        w = layer["w"] * scale[:, None, None, None]
        b = (layer["b"] - layer["mean"]) * scale + layer["beta"]
        pad = [(cl, cl), (cr, cr)] if i == 0 else [(0, 0), (0, 0)]
        h = jnp.maximum(_ref_conv(h, w, b, pad), 0.0)
    for layer in params["fc"]:
        h = jnp.maximum(_ref_conv(h, layer["w"], layer["b"], [(0, 0), (0, 0)]), 0.0)

    def two_stage(p):
        t = jnp.maximum(_ref_conv(h, p["w1"], p["b1"], [(0, 0), (0, 0)]), 0.0)
        return _ref_conv(t, p["w2"], p["b2"], [(0, 0), (0, 0)])

    hid = jnp.maximum(_ref_conv(h, params["hid_stem_siz"]["w"],
                                params["hid_stem_siz"]["b"], [(0, 0), (0, 0)]), 0.0)
    return {
        "stem_on": jax.nn.sigmoid(two_stage(params["out_stem_on"])),
        "stem_location_x": jax.nn.log_softmax(two_stage(params["out_stem_loc_x"]), axis=1),
        "stem_location_y": jax.nn.log_softmax(two_stage(params["out_stem_loc_y"]), axis=1),
        "stem_sm_size": jax.nn.log_softmax(
            _ref_conv(hid, params["out_stem_sm_siz"]["w"],
                      params["out_stem_sm_siz"]["b"], [(0, 0), (0, 0)]), axis=1),
        "stem_sl_size": _ref_conv(hid, params["out_stem_sl_siz"]["w"],
                                  params["out_stem_sl_siz"]["b"], [(0, 0), (0, 0)]),
    }


# TODO(synk): training-mode BatchNorm (batch statistics) and Dropout are not
# implemented; this reproduces eval/inference semantics (file is inference_*).

if __name__ == "__main__":
    num_filters = [16, 16]
    filter_width = [3, 3]
    hid_shared = [32]
    hid_output = [32]

    key = jax.random.PRNGKey(0)
    pkey, xkey = jax.random.split(key)
    params = init_params(pkey, num_filters, filter_width, hid_shared, hid_output)

    # Input: NCHW with 8 input channels (fixed by the module).
    x = jax.random.normal(xkey, (2, 8, 16, 16), jnp.float32)

    prep = prepare_params(params, filter_width, input_hw=(16, 16))
    fwd = jax.jit(functools.partial(simple_conv_net_forward, prep))
    y = fwd(x)
    jax.block_until_ready(y)

    expected_shapes = {
        "stem_on": (2, 1, 16, 16),
        "stem_location_x": (2, 12, 16, 16),
        "stem_location_y": (2, 12, 16, 16),
        "stem_sm_size": (2, 11, 16, 16),
        "stem_sl_size": (2, 1, 16, 16),
    }
    for k, shp in expected_shapes.items():
        assert y[k].shape == shp, (k, y[k].shape, shp)

    # LogSoftmax heads must exp-sum to 1 over channels (verifies padded-lane masking).
    for k in ("stem_location_x", "stem_location_y", "stem_sm_size"):
        s = jnp.sum(jnp.exp(y[k]), axis=1)
        assert float(jnp.max(jnp.abs(s - 1.0))) < 1e-3, k

    # Compare against a pure-XLA reference (bf16 MXU inputs -> loose tolerance).
    y_ref = reference_forward(params, x, filter_width)
    for k in expected_shapes:
        diff = float(jnp.max(jnp.abs(y[k] - y_ref[k])))
        assert diff < 0.35, (k, diff)

    print("KERNEL_OK")
</pallas_src>

<mosaic_0001>
module attributes {stable_mosaic.version = 11 : i64} {
  func.func @_stem_kernel(%arg0: i32, %arg1: memref<1x20x160xf32, #tpu.memory_space<vmem>>, %arg2: memref<3x160x288xbf16, #tpu.memory_space<vmem>>, %arg3: memref<1x288xf32, #tpu.memory_space<vmem>>, %arg4: memref<3x288x256xbf16, #tpu.memory_space<vmem>>, %arg5: memref<1x256xf32, #tpu.memory_space<vmem>>, %arg6: memref<1x16x256xbf16, #tpu.memory_space<vmem>>) attributes {dimension_semantics = [#tpu.dimension_semantics<parallel>], iteration_bounds = array<i64: 2>, scalar_prefetch = 0 : i64, scratch_operands = 0 : i64, tpu.core_type = #tpu.core_type<tc>, window_params = [{transform_indices = @transform_0, window_bounds = array<i64: 1, 20, 160>}, {pipeline_mode = #tpu.pipeline_mode<synchronous>, transform_indices = @transform_1, window_bounds = array<i64: 3, 160, 288>}, {pipeline_mode = #tpu.pipeline_mode<synchronous>, transform_indices = @transform_2, window_bounds = array<i64: 1, 288>}, {pipeline_mode = #tpu.pipeline_mode<synchronous>, transform_indices = @transform_3, window_bounds = array<i64: 3, 288, 256>}, {pipeline_mode = #tpu.pipeline_mode<synchronous>, transform_indices = @transform_4, window_bounds = array<i64: 1, 256>}, {transform_indices = @transform_5, window_bounds = array<i64: 1, 16, 256>}]} {
    %c0 = arith.constant 0 : index
    %c0_0 = arith.constant 0 : index
    %c0_1 = arith.constant 0 : index
    %0 = vector.load %arg1[%c0, %c0_0, %c0_1] : memref<1x20x160xf32, #tpu.memory_space<vmem>>, vector<1x20x160xf32>
    %1 = vector.shape_cast %0 : vector<1x20x160xf32> to vector<20x160xf32>
    %cst = arith.constant 0.000000e+00 : f32
    %2 = vector.broadcast %cst : f32 to vector<18x288xf32>
    %3 = vector.extract_strided_slice %1 {offsets = [0, 0], sizes = [18, 160], strides = [1, 1]} : vector<20x160xf32> to vector<18x160xf32>
    %4 = arith.truncf %3 : vector<18x160xf32> to vector<18x160xbf16>
    %c0_2 = arith.constant 0 : index
    %c0_3 = arith.constant 0 : index
    %c0_4 = arith.constant 0 : index
    %5 = vector.load %arg2[%c0_2, %c0_3, %c0_4] : memref<3x160x288xbf16, #tpu.memory_space<vmem>>, vector<1x160x288xbf16>
    %6 = vector.shape_cast %5 : vector<1x160x288xbf16> to vector<160x288xbf16>
    %cst_5 = arith.constant dense<0.000000e+00> : vector<18x288xf32>
    %7 = tpu.matmul %4, %6, %cst_5 {dimension_numbers = #tpu.dot_dimension_numbers<[1], [0], [0], [1], [0, 0, 1, 1], [], []>} : vector<18x160xbf16>, vector<160x288xbf16>, vector<18x288xf32> -> vector<18x288xf32>
    %8 = arith.addf %2, %7 : vector<18x288xf32>
    %9 = vector.extract_strided_slice %1 {offsets = [1, 0], sizes = [18, 160], strides = [1, 1]} : vector<20x160xf32> to vector<18x160xf32>
    %10 = arith.truncf %9 : vector<18x160xf32> to vector<18x160xbf16>
    %c1 = arith.constant 1 : index
    %c0_6 = arith.constant 0 : index
    %c0_7 = arith.constant 0 : index
    %11 = vector.load %arg2[%c1, %c0_6, %c0_7] : memref<3x160x288xbf16, #tpu.memory_space<vmem>>, vector<1x160x288xbf16>
    %12 = vector.shape_cast %11 : vector<1x160x288xbf16> to vector<160x288xbf16>
    %cst_8 = arith.constant dense<0.000000e+00> : vector<18x288xf32>
    %13 = tpu.matmul %10, %12, %cst_8 {dimension_numbers = #tpu.dot_dimension_numbers<[1], [0], [0], [1], [0, 0, 1, 1], [], []>} : vector<18x160xbf16>, vector<160x288xbf16>, vector<18x288xf32> -> vector<18x288xf32>
    %14 = arith.addf %8, %13 : vector<18x288xf32>
    %15 = vector.extract_strided_slice %1 {offsets = [2, 0], sizes = [18, 160], strides = [1, 1]} : vector<20x160xf32> to vector<18x160xf32>
    %16 = arith.truncf %15 : vector<18x160xf32> to vector<18x160xbf16>
    %c2 = arith.constant 2 : index
    %c0_9 = arith.constant 0 : index
    %c0_10 = arith.constant 0 : index
    %17 = vector.load %arg2[%c2, %c0_9, %c0_10] : memref<3x160x288xbf16, #tpu.memory_space<vmem>>, vector<1x160x288xbf16>
    %18 = vector.shape_cast %17 : vector<1x160x288xbf16> to vector<160x288xbf16>
    %cst_11 = arith.constant dense<0.000000e+00> : vector<18x288xf32>
    %19 = tpu.matmul %16, %18, %cst_11 {dimension_numbers = #tpu.dot_dimension_numbers<[1], [0], [0], [1], [0, 0, 1, 1], [], []>} : vector<18x160xbf16>, vector<160x288xbf16>, vector<18x288xf32> -> vector<18x288xf32>
    %20 = arith.addf %14, %19 : vector<18x288xf32>
    %c0_12 = arith.constant 0 : index
    %c0_13 = arith.constant 0 : index
    %21 = vector.load %arg3[%c0_12, %c0_13] : memref<1x288xf32, #tpu.memory_space<vmem>>, vector<1x288xf32>
    %22 = vector.broadcast %21 : vector<1x288xf32> to vector<18x288xf32>
    %23 = arith.addf %20, %22 : vector<18x288xf32>
    %cst_14 = arith.constant 0.000000e+00 : f32
    %24 = vector.broadcast %cst_14 : f32 to vector<18x288xf32>
    %25 = arith.maximumf %23, %24 : vector<18x288xf32>
    %cst_15 = arith.constant 0.000000e+00 : f32
    %26 = vector.broadcast %cst_15 : f32 to vector<16x256xf32>
    %27 = vector.extract_strided_slice %25 {offsets = [0, 0], sizes = [16, 288], strides = [1, 1]} : vector<18x288xf32> to vector<16x288xf32>
    %28 = arith.truncf %27 : vector<16x288xf32> to vector<16x288xbf16>
    %c0_16 = arith.constant 0 : index
    %c0_17 = arith.constant 0 : index
    %c0_18 = arith.constant 0 : index
    %29 = vector.load %arg4[%c0_16, %c0_17, %c0_18] : memref<3x288x256xbf16, #tpu.memory_space<vmem>>, vector<1x288x256xbf16>
    %30 = vector.shape_cast %29 : vector<1x288x256xbf16> to vector<288x256xbf16>
    %cst_19 = arith.constant dense<0.000000e+00> : vector<16x256xf32>
    %31 = tpu.matmul %28, %30, %cst_19 {dimension_numbers = #tpu.dot_dimension_numbers<[1], [0], [0], [1], [0, 0, 1, 1], [], []>} : vector<16x288xbf16>, vector<288x256xbf16>, vector<16x256xf32> -> vector<16x256xf32>
    %32 = arith.addf %26, %31 : vector<16x256xf32>
    %33 = vector.extract_strided_slice %25 {offsets = [1, 0], sizes = [16, 288], strides = [1, 1]} : vector<18x288xf32> to vector<16x288xf32>
    %34 = arith.truncf %33 : vector<16x288xf32> to vector<16x288xbf16>
    %c1_20 = arith.constant 1 : index
    %c0_21 = arith.constant 0 : index
    %c0_22 = arith.constant 0 : index
    %35 = vector.load %arg4[%c1_20, %c0_21, %c0_22] : memref<3x288x256xbf16, #tpu.memory_space<vmem>>, vector<1x288x256xbf16>
    %36 = vector.shape_cast %35 : vector<1x288x256xbf16> to vector<288x256xbf16>
    %cst_23 = arith.constant dense<0.000000e+00> : vector<16x256xf32>
    %37 = tpu.matmul %34, %36, %cst_23 {dimension_numbers = #tpu.dot_dimension_numbers<[1], [0], [0], [1], [0, 0, 1, 1], [], []>} : vector<16x288xbf16>, vector<288x256xbf16>, vector<16x256xf32> -> vector<16x256xf32>
    %38 = arith.addf %32, %37 : vector<16x256xf32>
    %39 = vector.extract_strided_slice %25 {offsets = [2, 0], sizes = [16, 288], strides = [1, 1]} : vector<18x288xf32> to vector<16x288xf32>
    %40 = arith.truncf %39 : vector<16x288xf32> to vector<16x288xbf16>
    %c2_24 = arith.constant 2 : index
    %c0_25 = arith.constant 0 : index
    %c0_26 = arith.constant 0 : index
    %41 = vector.load %arg4[%c2_24, %c0_25, %c0_26] : memref<3x288x256xbf16, #tpu.memory_space<vmem>>, vector<1x288x256xbf16>
    %42 = vector.shape_cast %41 : vector<1x288x256xbf16> to vector<288x256xbf16>
    %cst_27 = arith.constant dense<0.000000e+00> : vector<16x256xf32>
    %43 = tpu.matmul %40, %42, %cst_27 {dimension_numbers = #tpu.dot_dimension_numbers<[1], [0], [0], [1], [0, 0, 1, 1], [], []>} : vector<16x288xbf16>, vector<288x256xbf16>, vector<16x256xf32> -> vector<16x256xf32>
    %44 = arith.addf %38, %43 : vector<16x256xf32>
    %c0_28 = arith.constant 0 : index
    %c0_29 = arith.constant 0 : index
    %45 = vector.load %arg5[%c0_28, %c0_29] : memref<1x256xf32, #tpu.memory_space<vmem>>, vector<1x256xf32>
    %46 = vector.broadcast %45 : vector<1x256xf32> to vector<16x256xf32>
    %47 = arith.addf %44, %46 : vector<16x256xf32>
    %cst_30 = arith.constant 0.000000e+00 : f32
    %48 = vector.broadcast %cst_30 : f32 to vector<16x256xf32>
    %49 = arith.maximumf %47, %48 : vector<16x256xf32>
    %50 = arith.truncf %49 : vector<16x256xf32> to vector<16x256xbf16>
    %c0_31 = arith.constant 0 : index
    %c0_32 = arith.constant 0 : index
    %c0_33 = arith.constant 0 : index
    %51 = vector.load %arg6[%c0_31, %c0_32, %c0_33] : memref<1x16x256xbf16, #tpu.memory_space<vmem>>, vector<1x16x256xbf16>
    %52 = vector.shape_cast %51 : vector<1x16x256xbf16> to vector<16x256xbf16>
    %53 = vector.shape_cast %50 : vector<16x256xbf16> to vector<1x16x256xbf16>
    tpu.vector_store %arg6[%c0_31, %c0_32, %c0_33], %53 {strides = array<i32>} : memref<1x16x256xbf16, #tpu.memory_space<vmem>>, vector<1x16x256xbf16>,
    return
  }
  func.func @transform_0(%arg0: i32) -> (i32, i32, i32) {
    %c0_i32 = arith.constant 0 : i32
    %c0_i32_0 = arith.constant 0 : i32
    %c0_i32_1 = arith.constant 0 : i32
    return %arg0, %c0_i32, %c0_i32_0 : i32, i32, i32
  }
  func.func @transform_1(%arg0: i32) -> (i32, i32, i32) {
    %c0_i32 = arith.constant 0 : i32
    %c0_i32_0 = arith.constant 0 : i32
    %c0_i32_1 = arith.constant 0 : i32
    %c0_i32_2 = arith.constant 0 : i32
    return %c0_i32, %c0_i32_0, %c0_i32_1 : i32, i32, i32
  }
  func.func @transform_2(%arg0: i32) -> (i32, i32) {
    %c0_i32 = arith.constant 0 : i32
    %c0_i32_0 = arith.constant 0 : i32
    %c0_i32_1 = arith.constant 0 : i32
    return %c0_i32, %c0_i32_0 : i32, i32
  }
  func.func @transform_3(%arg0: i32) -> (i32, i32, i32) {
    %c0_i32 = arith.constant 0 : i32
    %c0_i32_0 = arith.constant 0 : i32
    %c0_i32_1 = arith.constant 0 : i32
    %c0_i32_2 = arith.constant 0 : i32
    return %c0_i32, %c0_i32_0, %c0_i32_1 : i32, i32, i32
  }
  func.func @transform_4(%arg0: i32) -> (i32, i32) {
    %c0_i32 = arith.constant 0 : i32
    %c0_i32_0 = arith.constant 0 : i32
    %c0_i32_1 = arith.constant 0 : i32
    return %c0_i32, %c0_i32_0 : i32, i32
  }
  func.func @transform_5(%arg0: i32) -> (i32, i32, i32) {
    %c0_i32 = arith.constant 0 : i32
    %c0_i32_0 = arith.constant 0 : i32
    %c0_i32_1 = arith.constant 0 : i32
    return %arg0, %c0_i32, %c0_i32_0 : i32, i32, i32
  }
}

module attributes {stable_mosaic.version = 11 : i64} {
  func.func @_head_kernel(%arg0: i32, %arg1: memref<256x16xbf16, #tpu.memory_space<vmem>>, %arg2: memref<16x32xbf16, #tpu.memory_space<vmem>>, %arg3: memref<1x32xf32, #tpu.memory_space<vmem>>, %arg4: memref<32x128xbf16, #tpu.memory_space<vmem>>, %arg5: memref<1x128xf32, #tpu.memory_space<vmem>>, %arg6: memref<128x128xbf16, #tpu.memory_space<vmem>>, %arg7: memref<1x128xf32, #tpu.memory_space<vmem>>, %arg8: memref<256x128xf32, #tpu.memory_space<vmem>>) attributes {dimension_semantics = [#tpu.dimension_semantics<parallel>], iteration_bounds = array<i64: 2>, scalar_prefetch = 0 : i64, scratch_operands = 0 : i64, tpu.core_type = #tpu.core_type<tc>, window_params = [{transform_indices = @transform_0, window_bounds = array<i64: 256, 16>}, {pipeline_mode = #tpu.pipeline_mode<synchronous>, transform_indices = @transform_1, window_bounds = array<i64: 16, 32>}, {pipeline_mode = #tpu.pipeline_mode<synchronous>, transform_indices = @transform_2, window_bounds = array<i64: 1, 32>}, {pipeline_mode = #tpu.pipeline_mode<synchronous>, transform_indices = @transform_3, window_bounds = array<i64: 32, 128>}, {pipeline_mode = #tpu.pipeline_mode<synchronous>, transform_indices = @transform_4, window_bounds = array<i64: 1, 128>}, {pipeline_mode = #tpu.pipeline_mode<synchronous>, transform_indices = @transform_5, window_bounds = array<i64: 128, 128>}, {pipeline_mode = #tpu.pipeline_mode<synchronous>, transform_indices = @transform_6, window_bounds = array<i64: 1, 128>}, {transform_indices = @transform_7, window_bounds = array<i64: 256, 128>}]} {
    %c0 = arith.constant 0 : index
    %c0_0 = arith.constant 0 : index
    %0 = vector.load %arg1[%c0, %c0_0] : memref<256x16xbf16, #tpu.memory_space<vmem>>, vector<256x16xbf16>
    %c0_1 = arith.constant 0 : index
    %c0_2 = arith.constant 0 : index
    %1 = vector.load %arg2[%c0_1, %c0_2] : memref<16x32xbf16, #tpu.memory_space<vmem>>, vector<16x32xbf16>
    %cst = arith.constant dense<0.000000e+00> : vector<256x32xf32>
    %2 = tpu.matmul %0, %1, %cst {dimension_numbers = #tpu.dot_dimension_numbers<[1], [0], [0], [1], [0, 0, 1, 1], [], []>} : vector<256x16xbf16>, vector<16x32xbf16>, vector<256x32xf32> -> vector<256x32xf32>
    %c0_3 = arith.constant 0 : index
    %c0_4 = arith.constant 0 : index
    %3 = vector.load %arg3[%c0_3, %c0_4] : memref<1x32xf32, #tpu.memory_space<vmem>>, vector<1x32xf32>
    %4 = vector.broadcast %3 : vector<1x32xf32> to vector<256x32xf32>
    %5 = arith.addf %2, %4 : vector<256x32xf32>
    %cst_5 = arith.constant 0.000000e+00 : f32
    %6 = vector.broadcast %cst_5 : f32 to vector<256x32xf32>
    %7 = arith.maximumf %5, %6 : vector<256x32xf32>
    %8 = arith.truncf %7 : vector<256x32xf32> to vector<256x32xbf16>
    %c0_6 = arith.constant 0 : index
    %c0_7 = arith.constant 0 : index
    %9 = vector.load %arg4[%c0_6, %c0_7] : memref<32x128xbf16, #tpu.memory_space<vmem>>, vector<32x128xbf16>
    %cst_8 = arith.constant dense<0.000000e+00> : vector<256x128xf32>
    %10 = tpu.matmul %8, %9, %cst_8 {dimension_numbers = #tpu.dot_dimension_numbers<[1], [0], [0], [1], [0, 0, 1, 1], [], []>} : vector<256x32xbf16>, vector<32x128xbf16>, vector<256x128xf32> -> vector<256x128xf32>
    %c0_9 = arith.constant 0 : index
    %c0_10 = arith.constant 0 : index
    %11 = vector.load %arg5[%c0_9, %c0_10] : memref<1x128xf32, #tpu.memory_space<vmem>>, vector<1x128xf32>
    %12 = vector.broadcast %11 : vector<1x128xf32> to vector<256x128xf32>
    %13 = arith.addf %10, %12 : vector<256x128xf32>
    %cst_11 = arith.constant 0.000000e+00 : f32
    %14 = vector.broadcast %cst_11 : f32 to vector<256x128xf32>
    %15 = arith.maximumf %13, %14 : vector<256x128xf32>
    %16 = arith.truncf %15 : vector<256x128xf32> to vector<256x128xbf16>
    %c0_12 = arith.constant 0 : index
    %c0_13 = arith.constant 0 : index
    %17 = vector.load %arg6[%c0_12, %c0_13] : memref<128x128xbf16, #tpu.memory_space<vmem>>, vector<128x128xbf16>
    %cst_14 = arith.constant dense<0.000000e+00> : vector<256x128xf32>
    %18 = tpu.matmul %16, %17, %cst_14 {dimension_numbers = #tpu.dot_dimension_numbers<[1], [0], [0], [1], [0, 0, 1, 1], [], []>} : vector<256x128xbf16>, vector<128x128xbf16>, vector<256x128xf32> -> vector<256x128xf32>
    %c0_15 = arith.constant 0 : index
    %c0_16 = arith.constant 0 : index
    %19 = vector.load %arg7[%c0_15, %c0_16] : memref<1x128xf32, #tpu.memory_space<vmem>>, vector<1x128xf32>
    %20 = vector.broadcast %19 : vector<1x128xf32> to vector<256x128xf32>
    %21 = arith.addf %18, %20 : vector<256x128xf32>
    %22 = tpu.iota {dimensions = array<i32: 1>} : vector<256x128xi32>
    %cst_17 = arith.constant 0.000000e+00 : f32
    %23 = vector.broadcast %cst_17 : f32 to vector<256x128xf32>
    %c0_i32 = arith.constant 0 : i32
    %24 = vector.broadcast %c0_i32 : i32 to vector<256x128xi32>
    %25 = arith.cmpi sge, %22, %24 : vector<256x128xi32>
    %c12_i32 = arith.constant 12 : i32
    %26 = vector.broadcast %c12_i32 : i32 to vector<256x128xi32>
    %27 = arith.cmpi slt, %22, %26 : vector<256x128xi32>
    %28 = arith.andi %25, %27 : vector<256x128xi1>
    %cst_18 = arith.constant 0xFF800000 : f32
    %29 = vector.broadcast %cst_18 : f32 to vector<256x128xf32>
    %30 = arith.select %28, %21, %29 : vector<256x128xi1>, vector<256x128xf32>
    %cst_19 = arith.constant dense<0xFF800000> : vector<256xf32>
    %31 = vector.multi_reduction <maximumf>, %30, %cst_19 [1] : vector<256x128xf32> to vector<256xf32>
    %32 = vector.shape_cast %31 : vector<256xf32> to vector<256x1xf32>
    %33 = vector.broadcast %32 : vector<256x1xf32> to vector<256x128xf32>
    %34 = arith.subf %30, %33 : vector<256x128xf32>
    %35 = math.exp %34 : vector<256x128xf32>
    %cst_20 = arith.constant dense<0.000000e+00> : vector<256xf32>
    %36 = vector.multi_reduction <add>, %35, %cst_20 [1] : vector<256x128xf32> to vector<256xf32>
    %37 = vector.shape_cast %36 : vector<256xf32> to vector<256x1xf32>
    %38 = math.log %37 : vector<256x1xf32>
    %39 = vector.broadcast %32 : vector<256x1xf32> to vector<256x128xf32>
    %40 = arith.subf %21, %39 : vector<256x128xf32>
    %41 = vector.broadcast %38 : vector<256x1xf32> to vector<256x128xf32>
    %42 = arith.subf %40, %41 : vector<256x128xf32>
    %43 = arith.select %28, %42, %23 : vector<256x128xi1>, vector<256x128xf32>
    %c12_i32_21 = arith.constant 12 : i32
    %44 = vector.broadcast %c12_i32_21 : i32 to vector<256x128xi32>
    %45 = arith.cmpi sge, %22, %44 : vector<256x128xi32>
    %c24_i32 = arith.constant 24 : i32
    %46 = vector.broadcast %c24_i32 : i32 to vector<256x128xi32>
    %47 = arith.cmpi slt, %22, %46 : vector<256x128xi32>
    %48 = arith.andi %45, %47 : vector<256x128xi1>
    %cst_22 = arith.constant 0xFF800000 : f32
    %49 = vector.broadcast %cst_22 : f32 to vector<256x128xf32>
    %50 = arith.select %48, %21, %49 : vector<256x128xi1>, vector<256x128xf32>
    %cst_23 = arith.constant dense<0xFF800000> : vector<256xf32>
    %51 = vector.multi_reduction <maximumf>, %50, %cst_23 [1] : vector<256x128xf32> to vector<256xf32>
    %52 = vector.shape_cast %51 : vector<256xf32> to vector<256x1xf32>
    %53 = vector.broadcast %52 : vector<256x1xf32> to vector<256x128xf32>
    %54 = arith.subf %50, %53 : vector<256x128xf32>
    %55 = math.exp %54 : vector<256x128xf32>
    %cst_24 = arith.constant dense<0.000000e+00> : vector<256xf32>
    %56 = vector.multi_reduction <add>, %55, %cst_24 [1] : vector<256x128xf32> to vector<256xf32>
    %57 = vector.shape_cast %56 : vector<256xf32> to vector<256x1xf32>
    %58 = math.log %57 : vector<256x1xf32>
    %59 = vector.broadcast %52 : vector<256x1xf32> to vector<256x128xf32>
    %60 = arith.subf %21, %59 : vector<256x128xf32>
    %61 = vector.broadcast %58 : vector<256x1xf32> to vector<256x128xf32>
    %62 = arith.subf %60, %61 : vector<256x128xf32>
    %63 = arith.select %48, %62, %43 : vector<256x128xi1>, vector<256x128xf32>
    %c24_i32_25 = arith.constant 24 : i32
    %64 = vector.broadcast %c24_i32_25 : i32 to vector<256x128xi32>
    %65 = arith.cmpi sge, %22, %64 : vector<256x128xi32>
    %c35_i32 = arith.constant 35 : i32
    %66 = vector.broadcast %c35_i32 : i32 to vector<256x128xi32>
    %67 = arith.cmpi slt, %22, %66 : vector<256x128xi32>
    %68 = arith.andi %65, %67 : vector<256x128xi1>
    %cst_26 = arith.constant 0xFF800000 : f32
    %69 = vector.broadcast %cst_26 : f32 to vector<256x128xf32>
    %70 = arith.select %68, %21, %69 : vector<256x128xi1>, vector<256x128xf32>
    %cst_27 = arith.constant dense<0xFF800000> : vector<256xf32>
    %71 = vector.multi_reduction <maximumf>, %70, %cst_27 [1] : vector<256x128xf32> to vector<256xf32>
    %72 = vector.shape_cast %71 : vector<256xf32> to vector<256x1xf32>
    %73 = vector.broadcast %72 : vector<256x1xf32> to vector<256x128xf32>
    %74 = arith.subf %70, %73 : vector<256x128xf32>
    %75 = math.exp %74 : vector<256x128xf32>
    %cst_28 = arith.constant dense<0.000000e+00> : vector<256xf32>
    %76 = vector.multi_reduction <add>, %75, %cst_28 [1] : vector<256x128xf32> to vector<256xf32>
    %77 = vector.shape_cast %76 : vector<256xf32> to vector<256x1xf32>
    %78 = math.log %77 : vector<256x1xf32>
    %79 = vector.broadcast %72 : vector<256x1xf32> to vector<256x128xf32>
    %80 = arith.subf %21, %79 : vector<256x128xf32>
    %81 = vector.broadcast %78 : vector<256x1xf32> to vector<256x128xf32>
    %82 = arith.subf %80, %81 : vector<256x128xf32>
    %83 = arith.select %68, %82, %63 : vector<256x128xi1>, vector<256x128xf32>
    %c35_i32_29 = arith.constant 35 : i32
    %84 = vector.broadcast %c35_i32_29 : i32 to vector<256x128xi32>
    %85 = arith.cmpi eq, %22, %84 : vector<256x128xi32>
    %86 = arith.negf %21 : vector<256x128xf32>
    %87 = math.exp %86 : vector<256x128xf32>
    %cst_30 = arith.constant 1.000000e+00 : f32
    %88 = vector.broadcast %cst_30 : f32 to vector<256x128xf32>
    %89 = arith.addf %88, %87 : vector<256x128xf32>
    %90 = arith.divf %88, %89 : vector<256x128xf32>
    %91 = arith.select %85, %90, %83 : vector<256x128xi1>, vector<256x128xf32>
    %c36_i32 = arith.constant 36 : i32
    %92 = vector.broadcast %c36_i32 : i32 to vector<256x128xi32>
    %93 = arith.cmpi eq, %22, %92 : vector<256x128xi32>
    %94 = arith.select %93, %21, %91 : vector<256x128xi1>, vector<256x128xf32>
    %c0_31 = arith.constant 0 : index
    %c0_32 = arith.constant 0 : index
    %95 = vector.load %arg8[%c0_31, %c0_32] : memref<256x128xf32, #tpu.memory_space<vmem>>, vector<256x128xf32>
    tpu.vector_store %arg8[%c0_31, %c0_32], %94 {strides = array<i32>} : memref<256x128xf32, #tpu.memory_space<vmem>>, vector<256x128xf32>,
    return
  }
  func.func @transform_0(%arg0: i32) -> (i32, i32) {
    %c0_i32 = arith.constant 0 : i32
    %c0_i32_0 = arith.constant 0 : i32
    return %arg0, %c0_i32 : i32, i32
  }
  func.func @transform_1(%arg0: i32) -> (i32, i32) {
    %c0_i32 = arith.constant 0 : i32
    %c0_i32_0 = arith.constant 0 : i32
    %c0_i32_1 = arith.constant 0 : i32
    return %c0_i32, %c0_i32_0 : i32, i32
  }
  func.func @transform_2(%arg0: i32) -> (i32, i32) {
    %c0_i32 = arith.constant 0 : i32
    %c0_i32_0 = arith.constant 0 : i32
    %c0_i32_1 = arith.constant 0 : i32
    return %c0_i32, %c0_i32_0 : i32, i32
  }
  func.func @transform_3(%arg0: i32) -> (i32, i32) {
    %c0_i32 = arith.constant 0 : i32
    %c0_i32_0 = arith.constant 0 : i32
    %c0_i32_1 = arith.constant 0 : i32
    return %c0_i32, %c0_i32_0 : i32, i32
  }
  func.func @transform_4(%arg0: i32) -> (i32, i32) {
    %c0_i32 = arith.constant 0 : i32
    %c0_i32_0 = arith.constant 0 : i32
    %c0_i32_1 = arith.constant 0 : i32
    return %c0_i32, %c0_i32_0 : i32, i32
  }
  func.func @transform_5(%arg0: i32) -> (i32, i32) {
    %c0_i32 = arith.constant 0 : i32
    %c0_i32_0 = arith.constant 0 : i32
    %c0_i32_1 = arith.constant 0 : i32
    return %c0_i32, %c0_i32_0 : i32, i32
  }
  func.func @transform_6(%arg0: i32) -> (i32, i32) {
    %c0_i32 = arith.constant 0 : i32
    %c0_i32_0 = arith.constant 0 : i32
    %c0_i32_1 = arith.constant 0 : i32
    return %c0_i32, %c0_i32_0 : i32, i32
  }
  func.func @transform_7(%arg0: i32) -> (i32, i32) {
    %c0_i32 = arith.constant 0 : i32
    %c0_i32_0 = arith.constant 0 : i32
    return %arg0, %c0_i32 : i32, i32
  }
}

</mosaic_0001>

<bundles_post_ra>
// kernel: simple_conv_net_forward.3
= control target key start
LH: loop header
LB: loop body
LE: loop exit
PB: predicated region body
PF: predicated region fallthrough
CT: control target
= control target key end

     0   :  { %s3665_s24 = smov 0   ;;  %s5585_s0 = inlined_call_operand.vmem [shape: bf16[512,16], index: 0, kind: input, shape index: {}]   ;;  %s5586_s1 = inlined_call_operand.vmem [shape: bf16[16,32], index: 1, kind: input, shape index: {}]   ;;  %s5587_s2 = inlined_call_operand.vmem [shape: f32[1,32], index: 2, kind: input, shape index: {}]   ;;  %s5588_s3 = inlined_call_operand.vmem [shape: bf16[32,128], index: 3, kind: input, shape index: {}]   ;;  %s5589_s4 = inlined_call_operand.vmem [shape: f32[1,128], index: 4, kind: input, shape index: {}]   ;;  %s5590_s5 = inlined_call_operand.vmem [shape: bf16[128,128], index: 5, kind: input, shape index: {}]   ;;  %s5591_s6 = inlined_call_operand.vmem [shape: f32[1,128], index: 6, kind: input, shape index: {}]   ;;  %s5592_s7 = inlined_call_operand.vmem [shape: f32[512,128], index: 7, kind: output, shape index: {}]  }
   0x1 LB: > { %s2786_s25 = sadd.s32 4294967295, %s3623_s24   ;;  %p2790_p0 = scmp.ge.s32.totalorder %s3623_s24, 1  ;;  %s3623_s24 = sphi %s3665_s24, %s17_s24  }
   0x2   : > { %p238_p1 = scmp.lt.s32.totalorder %s3623_s24, 3 }
   0x4   : > { %p239_p2 = pnand %p2790_p0, %p238_p1 }
   0x6   : > { %242 = sbr.rel (%p239_p2) target bundleno = 1222 (0x4c6), region = 48 }
   0xd   : > { %v3078_v0 = vld [vmem:[%s5586_s1] sm:$0xff]   ;;  %s2791_s28 = sshll.u32 %s2786_s25, 5  ;;  %vm410_vm0 = vcmask 130048   ;;  %v3096_v8 = vld [vmem:[%s5588_s3 + $0x8] sm:$0xff]   ;;  %v3099_v21 = vld [vmem:[%s5590_s5 + $0x10] sm:$0xff]   ;;  %vm691_vm1 = vcmask 261120  }
   0xe   : > { %p271_p3 = scmp.lt.s32.totalorder %s2791_s28, 63  ;;  %2950 = vmatprep.subr.bf16.mxu0 %v3078_v0  ;;  %3068 = vmatprep.subr.bf16.mxu1 %v3078_v0  ;;  %v3095_v1 = vld [vmem:[%s5588_s3] sm:$0xff]   ;;  %v3098_v20 = vld [vmem:[%s5590_s5 + $0x8] sm:$0xff]   ;;  %v3100_v22 = vld [vmem:[%s5590_s5 + $0x18] sm:$0xff]  }
   0xf   : > { %2951 = vmatpush3.bf16.msra.mxu0 %v3078_v0  ;;  %3069 = vmatpush3.bf16.msra.mxu1 %v3078_v0  ;;  %v3097_v19 = vld [vmem:[%s5590_s5] sm:$0xff]   ;;  %v3102_v24 = vld [vmem:[%s5590_s5 + $0x28] sm:$0xff]  }
  0x10   : > { %s6142_s28 = smov (!%p271_p3, %s2791_s28), 63  ;;  %2984 = vmatprep.subr.bf16.mxu1 %v3095_v1  ;;  %3020 = vmatprep.subr.bf16.mxu0 %v3097_v19  ;;  %v3101_v23 = vld [vmem:[%s5590_s5 + $0x20] sm:$0xff]  }
  0x11   : > { %s2792_s8 = sshll.u32 %s6142_s28, 2  ;;  %v3743_v25 = vld [vmem:[%s5587_s2] ss:$0 sm:$0xff]  ;;  %s2794_s15 = sshll.u32 %s6142_s28, 3 }
  0x12   : > { %s3685_s11 = scalar_lea.vmem %s5585_s0, %s2792_s8  ;;  %s4976_s17 = scalar_lea.vmem %s5592_s7, %s2794_s15 }
  0x13   : > { %v3079_v2 = vld [vmem:[%s3685_s11] sm:$0xff]   ;;  %v3080_v3 = vld [vmem:[%s3685_s11 + $0x8] sm:$0xff]   ;;  %v3081_v4 = vld [vmem:[%s3685_s11 + $0x10] sm:$0xff]  }
  0x14   : > { %2952 = vmatprep.mubr.msk.bf16.mxu0 %vm410_vm0, %v3079_v2  ;;  %v3082_v5 = vld [vmem:[%s3685_s11 + $0x18] sm:$0xff]   ;;  %v3083_v6 = vld [vmem:[%s3685_s11 + $0x20] sm:$0xff]   ;;  %v3088_v9 = vld [vmem:[%s3685_s11 + $0x48] sm:$0xff]  }
  0x15   : > { %2953 = vmatmul.mubr.msk.bf16.vlgmr.msra.gmra.mrb[0].mxu0 %vm410_vm0, %v3080_v3  ;;  %v3087_v7 = vld [vmem:[%s3685_s11 + $0x40] sm:$0xff]   ;;  %v3089_v10 = vld [vmem:[%s3685_s11 + $0x50] sm:$0xff]   ;;  %v3084_v11 = vld [vmem:[%s3685_s11 + $0x28] sm:$0xff]  }
  0x16   : > { %2956 = vmatprep.mubr.msk.bf16.mxu0 %vm410_vm0, %v3081_v4  ;;  %2968 = vmatprep.mubr.msk.bf16.mxu1 %vm410_vm0, %v3087_v7  ;;  %v3085_v12 = vld [vmem:[%s3685_s11 + $0x30] sm:$0xff]   ;;  %v3090_v13 = vld [vmem:[%s3685_s11 + $0x58] sm:$0xff]   ;;  %v3091_v14 = vld [vmem:[%s3685_s11 + $0x60] sm:$0xff]  }
  0x17   : > { %2969 = vmatmul.mubr.msk.bf16.vlgmr.msra.gmra.mrb[0].mxu1 %vm410_vm0, %v3088_v9  ;;  %v3086_v15 = vld [vmem:[%s3685_s11 + $0x38] sm:$0xff]   ;;  %v3092_v16 = vld [vmem:[%s3685_s11 + $0x68] sm:$0xff]   ;;  %v3093_v17 = vld [vmem:[%s3685_s11 + $0x70] sm:$0xff]   ;;  %3021 = vmatpush3.bf16.msra.mxu0 %v3097_v19 }
  0x18   : > { %2972 = vmatprep.mubr.msk.bf16.mxu1 %vm410_vm0, %v3089_v10  ;;  %2985 = vmatpush3.bf16.msra.mxu1 %v3095_v1  ;;  %v3094_v18 = vld [vmem:[%s3685_s11 + $0x78] sm:$0xff]  }
  0x19   : > { %2986 = vmatprep.subr.bf16.mxu1 %v3096_v8  ;;  %3022 = vmatprep.subr.bf16.mxu0 %v3098_v20 }
  0x1b   : > { %3023 = vmatpush3.bf16.msra.mxu0 %v3098_v20 }
  0x1c   : > { %2987 = vmatpush3.bf16.msra.mxu1 %v3096_v8  ;;  %3024 = vmatprep.subr.bf16.mxu0 %v3099_v21 }
  0x1d   : > { %2957 = vmatmul.mubr.msk.bf16.gmra.mrb[4].mxu0 %vm410_vm0, %v3082_v5 }
  0x1e   : > { %2960 = vmatprep.mubr.msk.bf16.mxu0 %vm410_vm0, %v3083_v6 }
  0x1f   : > { %2973 = vmatmul.mubr.msk.bf16.gmra.mrb[4].mxu1 %vm410_vm0, %v3090_v13  ;;  %3025 = vmatpush3.bf16.msra.mxu0 %v3099_v21 }
  0x20   : > { %2976 = vmatprep.mubr.msk.bf16.mxu1 %vm410_vm0, %v3091_v14  ;;  %3026 = vmatprep.subr.bf16.mxu0 %v3100_v22 }
  0x23   : > { %3027 = vmatpush3.bf16.msra.mxu0 %v3100_v22 }
  0x24   : > { %3028 = vmatprep.subr.bf16.mxu0 %v3101_v23 }
  0x25   : > { %2961 = vmatmul.mubr.msk.bf16.gmra.mrb[8].mxu0 %vm410_vm0, %v3084_v11 }
  0x26   : > { %2964 = vmatprep.mubr.msk.bf16.mxu0 %vm410_vm0, %v3085_v12 }
  0x27   : > { %2977 = vmatmul.mubr.msk.bf16.gmra.mrb[8].mxu1 %vm410_vm0, %v3092_v16  ;;  %3029 = vmatpush3.bf16.msra.mxu0 %v3101_v23 }
  0x28   : > { %2980 = vmatprep.mubr.msk.bf16.mxu1 %vm410_vm0, %v3093_v17  ;;  %3030 = vmatprep.subr.bf16.mxu0 %v3102_v24 }
  0x2b   : > { %3031 = vmatpush3.bf16.msra.mxu0 %v3102_v24 }
  0x2d   : > { %2965 = vmatmul.mubr.msk.bf16.gmra.mrb[12].mxu0 %vm410_vm0, %v3086_v15 }
  0x2f   : > { %2981 = vmatmul.mubr.msk.bf16.gmra.mrb[12].mxu1 %vm410_vm0, %v3094_v18 }
  0xe8   : > { %v2954_v26 = vpop.f32.mrb[0].mxu0 }
  0xe9   : > { %v502_v27 = vadd.f32 %v2954_v26, %v3743_v25  ;;  %v493_v28 = vpop.f32.mrb[1].mxu0 }
  0xea   : > { %v494_v29 = vadd.f32 %v3743_v25, %v493_v28  ;;  %v2955_v30 = vpop.f32.mrb[2].mxu0  ;;  %v2970_v41 = vpop.f32.mrb[0].mxu1 }
  0xeb   : > { %v505_v31 = vadd.f32 %v2955_v30, %v3743_v25  ;;  %v496_v32 = vpop.f32.mrb[3].mxu0  ;;  %v622_v34 = vmax.f32 %v502_v27, 0.0  ;;  %v566_v44 = vadd.f32 %v2970_v41, %v3743_v25  ;;  %v557_v45 = vpop.f32.mrb[1].mxu1 }
  0xec   : > { %v497_v33 = vadd.f32 %v3743_v25, %v496_v32  ;;  %v620_v36 = vmax.f32 %v494_v29, 0.0  ;;  %v558_v48 = vadd.f32 %v3743_v25, %v557_v45  ;;  %v2971_v49 = vpop.f32.mrb[2].mxu1 }
  0xed   : > { %v623_v35 = vmax.f32 %v505_v31, 0.0  ;;  %v638_v53 = vmax.f32 %v566_v44, 0.0  ;;  %v569_v54 = vadd.f32 %v2971_v49, %v3743_v25  ;;  %v560_v55 = vpop.f32.mrb[3].mxu1 }
  0xee   : > { %v621_v37 = vmax.f32 %v497_v33, 0.0  ;;  %v636_v58 = vmax.f32 %v558_v48, 0.0  ;;  %v561_v59 = vadd.f32 %v3743_v25, %v560_v55 }
  0xef   : > { %v653_v38 = vpack.c.bf16 %v623_v35, %v622_v34  ;;  %v639_v61 = vmax.f32 %v569_v54, 0.0 }
  0xf0   : > { %v652_v39 = vpack.c.bf16 %v621_v37, %v620_v36  ;;  %v2958_v40 = vpop.f32.mrb[4].mxu0  ;;  %v637_v63 = vmax.f32 %v561_v59, 0.0 }
  0xf1   : > { %v518_v42 = vadd.f32 %v2958_v40, %v3743_v25  ;;  %v509_v43 = vpop.f32.mrb[5].mxu0  ;;  %v3759_v1 = vpack.c.bf16 %v639_v61, %v638_v53 }
  0xf2   : > { %2988 = vmatprep.mubr.msk.bf16.mxu1 %vm691_vm1, %v652_v39  ;;  %v510_v46 = vadd.f32 %v3743_v25, %v509_v43  ;;  %v2959_v47 = vpop.f32.mrb[6].mxu0  ;;  %v3761_v4 = vpack.c.bf16 %v637_v63, %v636_v58  ;;  %v2974_v5 = vpop.f32.mrb[4].mxu1 }
  0xf3   : > { %v626_v50 = vmax.f32 %v518_v42, 0.0  ;;  %2989 = vmatmul.mubr.msk.bf16.vlgmr.msra.gmra.mrb[16].mxu1 %vm691_vm1, %v653_v38  ;;  %v521_v51 = vadd.f32 %v2959_v47, %v3743_v25  ;;  %v512_v52 = vpop.f32.mrb[7].mxu0  ;;  %v582_v8 = vadd.f32 %v2974_v5, %v3743_v25  ;;  %v573_v9 = vpop.f32.mrb[5].mxu1 }
  0xf4   : > { %v624_v56 = vmax.f32 %v510_v46, 0.0  ;;  %v513_v57 = vadd.f32 %v3743_v25, %v512_v52  ;;  %v574_v12 = vadd.f32 %v3743_v25, %v573_v9  ;;  %v2975_v13 = vpop.f32.mrb[6].mxu1 }
  0xf5   : > { %v627_v60 = vmax.f32 %v521_v51, 0.0  ;;  %v642_v17 = vmax.f32 %v582_v8, 0.0  ;;  %v585_v18 = vadd.f32 %v2975_v13, %v3743_v25  ;;  %v576_v19 = vpop.f32.mrb[7].mxu1 }
  0xf6   : > { %v625_v62 = vmax.f32 %v513_v57, 0.0  ;;  %v640_v22 = vmax.f32 %v574_v12, 0.0  ;;  %v577_v23 = vadd.f32 %v3743_v25, %v576_v19 }
  0xf7   : > { %v655_v0 = vpack.c.bf16 %v627_v60, %v626_v50  ;;  %v643_v26 = vmax.f32 %v585_v18, 0.0 }
  0xf8   : > { %v654_v2 = vpack.c.bf16 %v625_v62, %v624_v56  ;;  %v2962_v3 = vpop.f32.mrb[8].mxu0  ;;  %v641_v28 = vmax.f32 %v577_v23, 0.0 }
  0xf9   : > { %v534_v6 = vadd.f32 %v2962_v3, %v3743_v25  ;;  %v525_v7 = vpop.f32.mrb[9].mxu0  ;;  %v663_v30 = vpack.c.bf16 %v643_v26, %v642_v17 }
  0xfa   : > { %2992 = vmatprep.mubr.msk.bf16.mxu1 %vm691_vm1, %v654_v2  ;;  %v526_v10 = vadd.f32 %v3743_v25, %v525_v7  ;;  %v2963_v11 = vpop.f32.mrb[10].mxu0  ;;  %v662_v33 = vpack.c.bf16 %v641_v28, %v640_v22  ;;  %v2978_v34 = vpop.f32.mrb[8].mxu1 }
  0xfb   : > { %2993 = vmatmul.mubr.msk.bf16.gmra.mrb[20].mxu1 %vm691_vm1, %v655_v0  ;;  %v630_v14 = vmax.f32 %v534_v6, 0.0  ;;  %v537_v15 = vadd.f32 %v2963_v11, %v3743_v25  ;;  %v528_v16 = vpop.f32.mrb[11].mxu0  ;;  %v598_v37 = vadd.f32 %v2978_v34, %v3743_v25  ;;  %v589_v38 = vpop.f32.mrb[9].mxu1 }
  0xfc   : > { %v628_v20 = vmax.f32 %v526_v10, 0.0  ;;  %v529_v21 = vadd.f32 %v3743_v25, %v528_v16  ;;  %v590_v41 = vadd.f32 %v3743_v25, %v589_v38  ;;  %v2979_v42 = vpop.f32.mrb[10].mxu1 }
  0xfd   : > { %v631_v24 = vmax.f32 %v537_v15, 0.0  ;;  %v646_v46 = vmax.f32 %v598_v37, 0.0  ;;  %v601_v47 = vadd.f32 %v2979_v42, %v3743_v25  ;;  %v592_v48 = vpop.f32.mrb[11].mxu1 }
  0xfe   : > { %v629_v27 = vmax.f32 %v529_v21, 0.0  ;;  %v644_v51 = vmax.f32 %v590_v41, 0.0  ;;  %v593_v52 = vadd.f32 %v3743_v25, %v592_v48 }
  0xff   : > { %v657_v29 = vpack.c.bf16 %v631_v24, %v630_v14  ;;  %v647_v54 = vmax.f32 %v601_v47, 0.0 }
 0x100   : > { %v656_v31 = vpack.c.bf16 %v629_v27, %v628_v20  ;;  %v2966_v32 = vpop.f32.mrb[12].mxu0  ;;  %v645_v56 = vmax.f32 %v593_v52, 0.0 }
 0x101   : > { %v550_v35 = vadd.f32 %v2966_v32, %v3743_v25  ;;  %v541_v36 = vpop.f32.mrb[13].mxu0  ;;  %v665_v58 = vpack.c.bf16 %v647_v54, %v646_v46 }
 0x102   : > { %2996 = vmatprep.mubr.msk.bf16.mxu1 %vm691_vm1, %v656_v31  ;;  %v542_v39 = vadd.f32 %v3743_v25, %v541_v36  ;;  %v2967_v40 = vpop.f32.mrb[14].mxu0  ;;  %v664_v60 = vpack.c.bf16 %v645_v56, %v644_v51  ;;  %v2982_v61 = vpop.f32.mrb[12].mxu1 }
 0x103   : > { %2997 = vmatmul.mubr.msk.bf16.gmra.mrb[24].mxu1 %vm691_vm1, %v657_v29  ;;  %v634_v43 = vmax.f32 %v550_v35, 0.0  ;;  %v553_v44 = vadd.f32 %v2967_v40, %v3743_v25  ;;  %v544_v45 = vpop.f32.mrb[15].mxu0  ;;  %v614_v62 = vadd.f32 %v2982_v61, %v3743_v25  ;;  %v605_v63 = vpop.f32.mrb[13].mxu1 }
 0x104   : > { %v632_v49 = vmax.f32 %v542_v39, 0.0  ;;  %v545_v50 = vadd.f32 %v3743_v25, %v544_v45  ;;  %v606_v0 = vadd.f32 %v3743_v25, %v605_v63  ;;  %v2983_v2 = vpop.f32.mrb[14].mxu1 }
 0x105   : > { %v635_v53 = vmax.f32 %v553_v44, 0.0  ;;  %v650_v3 = vmax.f32 %v614_v62, 0.0  ;;  %v617_v5 = vadd.f32 %v2983_v2, %v3743_v25  ;;  %v608_v6 = vpop.f32.mrb[15].mxu1 }
 0x106   : > { %v633_v55 = vmax.f32 %v545_v50, 0.0  ;;  %v648_v7 = vmax.f32 %v606_v0, 0.0  ;;  %v609_v8 = vadd.f32 %v3743_v25, %v608_v6  ;;  %v3103_v25 = vld [vmem:[%s5590_s5 + $0x30] sm:$0xff]  }
 0x107   : > { %v659_v57 = vpack.c.bf16 %v635_v53, %v634_v43  ;;  %v651_v9 = vmax.f32 %v617_v5, 0.0  ;;  %3032 = vmatprep.subr.bf16.mxu0 %v3103_v25 }
 0x108   : > { %v658_v59 = vpack.c.bf16 %v633_v55, %v632_v49  ;;  %v649_v10 = vmax.f32 %v609_v8, 0.0  ;;  %3033 = vmatpush3.bf16.msra.mxu0 %v3103_v25 }
 0x109   : > { %v667_v11 = vpack.c.bf16 %v651_v9, %v650_v3 }
 0x10a   : > { %3000 = vmatprep.mubr.msk.bf16.mxu1 %vm691_vm1, %v658_v59  ;;  %v666_v12 = vpack.c.bf16 %v649_v10, %v648_v7 }
 0x10b   : > { %3001 = vmatmul.mubr.msk.bf16.gmra.mrb[28].mxu1 %vm691_vm1, %v659_v57 }
 0x10c   : > { %3004 = vmatprep.mubr.msk.bf16.mxu1 %vm691_vm1, %v3761_v4  ;;  %v3808_v4 = vld [vmem:[%s5589_s4] ss:$0 sm:$0xff] }
 0x113   : > { %3005 = vmatmul.mubr.msk.bf16.gmra.mrb[32].mxu1 %vm691_vm1, %v3759_v1  ;;  %v3104_v1 = vld [vmem:[%s5590_s5 + $0x38] sm:$0xff]  }
 0x114   : > { %3008 = vmatprep.mubr.msk.bf16.mxu1 %vm691_vm1, %v662_v33  ;;  %3034 = vmatprep.subr.bf16.mxu0 %v3104_v1 }
 0x115   : > { %3035 = vmatpush3.bf16.msra.mxu0 %v3104_v1 }
 0x11b   : > { %3009 = vmatmul.mubr.msk.bf16.gmra.mrb[36].mxu1 %vm691_vm1, %v663_v30 }
 0x11c   : > { %3012 = vmatprep.mubr.msk.bf16.mxu1 %vm691_vm1, %v664_v60 }
 0x123   : > { %3013 = vmatmul.mubr.msk.bf16.gmra.mrb[40].mxu1 %vm691_vm1, %v665_v58 }
 0x124   : > { %3016 = vmatprep.mubr.msk.bf16.mxu1 %vm691_vm1, %v666_v12 }
 0x12b   : > { %3017 = vmatmul.mubr.msk.bf16.gmra.mrb[44].mxu1 %vm691_vm1, %v667_v11 }
 0x1c6   : > { %v2990_v13 = vpop.f32.mrb[16].mxu1 }
 0x1c7   : > { %v783_v14 = vadd.f32 %v2990_v13, %v3808_v4  ;;  %v774_v15 = vpop.f32.mrb[17].mxu1 }
 0x1c8   : > { %v775_v16 = vadd.f32 %v3808_v4, %v774_v15  ;;  %v2991_v17 = vpop.f32.mrb[18].mxu1 }
 0x1c9   : > { %v786_v18 = vadd.f32 %v2991_v17, %v3808_v4  ;;  %v777_v19 = vpop.f32.mrb[19].mxu1  ;;  %v903_v21 = vmax.f32 %v783_v14, 0.0 }
 0x1ca   : > { %v778_v20 = vadd.f32 %v3808_v4, %v777_v19  ;;  %v901_v23 = vmax.f32 %v775_v16, 0.0 }
 0x1cb   : > { %v904_v22 = vmax.f32 %v786_v18, 0.0 }
 0x1cc   : > { %v902_v24 = vmax.f32 %v778_v20, 0.0 }
 0x1cd   : > { %v934_v26 = vpack.c.bf16 %v904_v22, %v903_v21 }
 0x1ce   : > { %v933_v27 = vpack.c.bf16 %v902_v24, %v901_v23  ;;  %v2994_v28 = vpop.f32.mrb[20].mxu1 }
 0x1cf   : > { %v799_v29 = vadd.f32 %v2994_v28, %v3808_v4  ;;  %v790_v30 = vpop.f32.mrb[21].mxu1 }
 0x1d0   : > { %3036 = vmatprep.mubr.bf16.mxu0 %v933_v27  ;;  %v791_v31 = vadd.f32 %v3808_v4, %v790_v30  ;;  %v2995_v32 = vpop.f32.mrb[22].mxu1 }
 0x1d1   : > { %v907_v33 = vmax.f32 %v799_v29, 0.0  ;;  %3037 = vmatmul.mubr.bf16.vlgmr.msra.gmra.mrb[16].mxu0 %v934_v26  ;;  %v802_v34 = vadd.f32 %v2995_v32, %v3808_v4  ;;  %v793_v35 = vpop.f32.mrb[23].mxu1 }
 0x1d2   : > { %v905_v36 = vmax.f32 %v791_v31, 0.0  ;;  %v794_v37 = vadd.f32 %v3808_v4, %v793_v35 }
 0x1d3   : > { %v908_v38 = vmax.f32 %v802_v34, 0.0 }
 0x1d4   : > { %v906_v39 = vmax.f32 %v794_v37, 0.0 }
 0x1d5   : > { %v936_v40 = vpack.c.bf16 %v908_v38, %v907_v33 }
 0x1d6   : > { %v935_v41 = vpack.c.bf16 %v906_v39, %v905_v36  ;;  %v2998_v42 = vpop.f32.mrb[24].mxu1 }
 0x1d7   : > { %v815_v43 = vadd.f32 %v2998_v42, %v3808_v4  ;;  %v806_v44 = vpop.f32.mrb[25].mxu1 }
 0x1d8   : > { %3040 = vmatprep.mubr.bf16.mxu0 %v935_v41  ;;  %v807_v45 = vadd.f32 %v3808_v4, %v806_v44  ;;  %v2999_v46 = vpop.f32.mrb[26].mxu1 }
 0x1d9   : > { %3041 = vmatmul.mubr.bf16.gmra.mrb[20].mxu0 %v936_v40  ;;  %v911_v47 = vmax.f32 %v815_v43, 0.0  ;;  %v818_v48 = vadd.f32 %v2999_v46, %v3808_v4  ;;  %v809_v49 = vpop.f32.mrb[27].mxu1 }
 0x1da   : > { %v909_v50 = vmax.f32 %v807_v45, 0.0  ;;  %v810_v51 = vadd.f32 %v3808_v4, %v809_v49 }
 0x1db   : > { %v912_v52 = vmax.f32 %v818_v48, 0.0 }
 0x1dc   : > { %v910_v53 = vmax.f32 %v810_v51, 0.0 }
 0x1dd   : > { %v938_v54 = vpack.c.bf16 %v912_v52, %v911_v47 }
 0x1de   : > { %v937_v55 = vpack.c.bf16 %v910_v53, %v909_v50  ;;  %v3002_v56 = vpop.f32.mrb[28].mxu1 }
 0x1df   : > { %v831_v57 = vadd.f32 %v3002_v56, %v3808_v4  ;;  %v822_v58 = vpop.f32.mrb[29].mxu1 }
 0x1e0   : > { %3044 = vmatprep.mubr.bf16.mxu0 %v937_v55  ;;  %v823_v59 = vadd.f32 %v3808_v4, %v822_v58  ;;  %v3003_v60 = vpop.f32.mrb[30].mxu1 }
 0x1e1   : > { %3045 = vmatmul.mubr.bf16.gmra.mrb[24].mxu0 %v938_v54  ;;  %v915_v61 = vmax.f32 %v831_v57, 0.0  ;;  %v834_v62 = vadd.f32 %v3003_v60, %v3808_v4  ;;  %v825_v63 = vpop.f32.mrb[31].mxu1 }
 0x1e2   : > { %v913_v0 = vmax.f32 %v823_v59, 0.0  ;;  %v826_v2 = vadd.f32 %v3808_v4, %v825_v63  ;;  %v1181_v63 = vlaneseq }
 0x1e3   : > { %v916_v3 = vmax.f32 %v834_v62, 0.0 }
 0x1e4   : > { %v914_v5 = vmax.f32 %v826_v2, 0.0  ;;  %v3849_v2 = vld [vmem:[%s5591_s6] ss:$0 sm:$0xff] }
 0x1e5   : > { %v940_v6 = vpack.c.bf16 %v916_v3, %v915_v61 }
 0x1e6   : > { %v939_v7 = vpack.c.bf16 %v914_v5, %v913_v0  ;;  %v3006_v8 = vpop.f32.mrb[32].mxu1  ;;  %v3842_v0 = vand.u32 127, %v1181_v63 }
 0x1e7   : > { %v847_v9 = vadd.f32 %v3006_v8, %v3808_v4  ;;  %v838_v10 = vpop.f32.mrb[33].mxu1 }
 0x1e8   : > { %3048 = vmatprep.mubr.bf16.mxu0 %v939_v7  ;;  %v839_v11 = vadd.f32 %v3808_v4, %v838_v10  ;;  %v3007_v12 = vpop.f32.mrb[34].mxu1  ;;  %5797 = vst [vmem:[#allocation2_spill] sm:$0xff] %v3842_v0  ;;  %vm1602_vm2 = vcmp.ge.s32.totalorder %v3842_v0, 12  ;;  %vm1603_vm3 = vcmp.lt.s32.totalorder %v3842_v0, 24  ;;  %vm1184_vm5 = vcmp.lt.s32.totalorder %v3842_v0, 12 }
 0x1e9   : > { %3049 = vmatmul.mubr.bf16.gmra.mrb[28].mxu0 %v940_v6  ;;  %v919_v25 = vmax.f32 %v847_v9, 0.0  ;;  %v850_v1 = vadd.f32 %v3007_v12, %v3808_v4  ;;  %v841_v13 = vpop.f32.mrb[35].mxu1  ;;  %vm3851_vm4 = vmand %vm1602_vm2, %vm1603_vm3  ;;  %vm2021_vm6 = vcmp.ge.s32.totalorder %v3842_v0, 24  ;;  %vm2022_vm7 = vcmp.lt.s32.totalorder %v3842_v0, 35 }
 0x1ea   : > { %v917_v14 = vmax.f32 %v839_v11, 0.0  ;;  %v842_v15 = vadd.f32 %v3808_v4, %v841_v13  ;;  %vm3876_vm8 = vmand %vm2021_vm6, %vm2022_vm7  ;;  %v5803_v12 = vmov 0 }
 0x1eb   : > { %v920_v16 = vmax.f32 %v850_v1, 0.0  ;;  %v5804_v12 = vsel %vm3876_vm8, 4294967295, %v5803_v12 }
 0x1ec   : > { %v918_v17 = vmax.f32 %v842_v15, 0.0  ;;  %5805 = vst [vmem:[#allocation6_spill] sm:$0xff] %v5804_v12 }
 0x1ed   : > { %v942_v18 = vpack.c.bf16 %v920_v16, %v919_v25 }
 0x1ee   : > { %v941_v19 = vpack.c.bf16 %v918_v17, %v917_v14  ;;  %v3010_v20 = vpop.f32.mrb[36].mxu1 }
 0x1ef   : > { %v863_v21 = vadd.f32 %v3010_v20, %v3808_v4  ;;  %v854_v22 = vpop.f32.mrb[37].mxu1 }
 0x1f0   : > { %3052 = vmatprep.mubr.bf16.mxu0 %v941_v19  ;;  %v855_v23 = vadd.f32 %v3808_v4, %v854_v22  ;;  %v3011_v24 = vpop.f32.mrb[38].mxu1 }
 0x1f1   : > { %3053 = vmatmul.mubr.bf16.gmra.mrb[32].mxu0 %v942_v18  ;;  %v923_v26 = vmax.f32 %v863_v21, 0.0  ;;  %v866_v27 = vadd.f32 %v3011_v24, %v3808_v4  ;;  %v857_v28 = vpop.f32.mrb[39].mxu1 }
 0x1f2   : > { %v921_v29 = vmax.f32 %v855_v23, 0.0  ;;  %v858_v30 = vadd.f32 %v3808_v4, %v857_v28 }
 0x1f3   : > { %v924_v31 = vmax.f32 %v866_v27, 0.0 }
 0x1f4   : > { %v922_v32 = vmax.f32 %v858_v30, 0.0 }
 0x1f5   : > { %v944_v33 = vpack.c.bf16 %v924_v31, %v923_v26 }
 0x1f6   : > { %v943_v34 = vpack.c.bf16 %v922_v32, %v921_v29  ;;  %v3014_v35 = vpop.f32.mrb[40].mxu1 }
 0x1f7   : > { %v879_v36 = vadd.f32 %v3014_v35, %v3808_v4  ;;  %v870_v37 = vpop.f32.mrb[41].mxu1 }
 0x1f8   : > { %3056 = vmatprep.mubr.bf16.mxu0 %v943_v34  ;;  %v871_v38 = vadd.f32 %v3808_v4, %v870_v37  ;;  %v3015_v39 = vpop.f32.mrb[42].mxu1 }
 0x1f9   : > { %3057 = vmatmul.mubr.bf16.gmra.mrb[36].mxu0 %v944_v33  ;;  %v927_v40 = vmax.f32 %v879_v36, 0.0  ;;  %v882_v41 = vadd.f32 %v3015_v39, %v3808_v4  ;;  %v873_v42 = vpop.f32.mrb[43].mxu1 }
 0x1fa   : > { %v925_v43 = vmax.f32 %v871_v38, 0.0  ;;  %v874_v44 = vadd.f32 %v3808_v4, %v873_v42 }
 0x1fb   : > { %v928_v45 = vmax.f32 %v882_v41, 0.0 }
 0x1fc   : > { %v926_v46 = vmax.f32 %v874_v44, 0.0 }
 0x1fd   : > { %v946_v47 = vpack.c.bf16 %v928_v45, %v927_v40 }
 0x1fe   : > { %v945_v48 = vpack.c.bf16 %v926_v46, %v925_v43  ;;  %v3018_v49 = vpop.f32.mrb[44].mxu1 }
 0x1ff   : > { %v895_v50 = vadd.f32 %v3018_v49, %v3808_v4  ;;  %v886_v51 = vpop.f32.mrb[45].mxu1 }
 0x200   : > { %3060 = vmatprep.mubr.bf16.mxu0 %v945_v48  ;;  %v887_v52 = vadd.f32 %v3808_v4, %v886_v51  ;;  %v3019_v53 = vpop.f32.mrb[46].mxu1 }
 0x201   : > { %3061 = vmatmul.mubr.bf16.gmra.mrb[40].mxu0 %v946_v47  ;;  %v931_v54 = vmax.f32 %v895_v50, 0.0  ;;  %v898_v55 = vadd.f32 %v3019_v53, %v3808_v4  ;;  %v889_v56 = vpop.f32.mrb[47].mxu1 }
 0x202   : > { %v929_v57 = vmax.f32 %v887_v52, 0.0  ;;  %v890_v58 = vadd.f32 %v3808_v4, %v889_v56  ;;  %v5798_v4 = vmov 0 }
 0x203   : > { %v932_v59 = vmax.f32 %v898_v55, 0.0  ;;  %v5799_v4 = vsel %vm3851_vm4, 4294967295, %v5798_v4 }
 0x204   : > { %v930_v60 = vmax.f32 %v890_v58, 0.0  ;;  %5800 = vst [vmem:[#allocation3_spill] sm:$0xff] %v5799_v4 }
 0x205   : > { %v948_v61 = vpack.c.bf16 %v932_v59, %v931_v54 }
 0x206   : > { %v947_v62 = vpack.c.bf16 %v930_v60, %v929_v57 }
 0x208   : > { %3064 = vmatprep.mubr.bf16.mxu0 %v947_v62 }
 0x209   : > { %3065 = vmatmul.mubr.bf16.gmra.mrb[44].mxu0 %v948_v61 }
 0x2a4   : > { %v3038_v3 = vpop.f32.mrb[16].mxu0 }
 0x2a5   : > { %v3857_v5 = vadd.f32 %v3038_v3, %v3849_v2  ;;  %v1054_v6 = vpop.f32.mrb[17].mxu0 }
 0x2a6   : > { %v3039_v7 = vpop.f32.mrb[18].mxu0  ;;  %v3881_v25 = vadd.f32 %v3849_v2, %v1054_v6 }
 0x2a7   : > { %5801 = vst [vmem:[#allocation4_spill] sm:$0xff] %v3857_v5  ;;  %v3862_v8 = vadd.f32 %v3039_v7, %v3849_v2  ;;  %v1057_v9 = vpop.f32.mrb[19].mxu0  ;;  %v3867_v10 = vsel %vm3851_vm4, %v3857_v5, -inf  ;;  %v3872_v11 = vsel %vm1184_vm5, %v3857_v5, -inf  ;;  %v3886_v1 = vsel %vm3876_vm8, %v3857_v5, -inf }
 0x2a8   : > { %1641 = vmax.xlane.f32.xlu0 %v3867_v10  ;;  %1222 = vmax.xlane.f32.xlu1 %v3872_v11  ;;  %5806 = vst [vmem:[#allocation7_spill] sm:$0xff] %v3881_v25  ;;  %v3903_v18 = vsel %vm1184_vm5, %v3881_v25, -inf  ;;  %v3908_v20 = vadd.f32 %v3849_v2, %v1057_v9  ;;  %v3918_v22 = vsel %vm3851_vm4, %v3881_v25, -inf  ;;  %v3932_v28 = vsel %vm3876_vm8, %v3881_v25, -inf }
 0x2a9   : > { %5802 = vst [vmem:[#allocation5_spill] sm:$0xff] %v3862_v8  ;;  %v3891_v13 = vsel %vm1184_vm5, %v3862_v8, -inf  ;;  %v3898_v17 = vsel %vm3851_vm4, %v3862_v8, -inf  ;;  %v3913_v21 = vsel %vm3876_vm8, %v3862_v8, -inf }
 0x2aa   : > { %5807 = vst [vmem:[#allocation8_spill] sm:$0xff] %v3908_v20  ;;  %v3927_v27 = vsel %vm3851_vm4, %v3908_v20, -inf  ;;  %v3947_v32 = vsel %vm3876_vm8, %v3908_v20, -inf  ;;  %v3952_v33 = vsel %vm1184_vm5, %v3908_v20, -inf }
 0x2ac   : > { %2060 = vmax.xlane.f32.xlu0 %v3886_v1  ;;  %1224 = vmax.xlane.f32.xlu1 %v3891_v13  ;;  %v3042_v14 = vpop.f32.mrb[20].mxu0 }
 0x2ad   : > { %v1070_v15 = vpop.f32.mrb[21].mxu0  ;;  %v3939_v30 = vadd.f32 %v3042_v14, %v3849_v2 }
 0x2ae   : > { %v3043_v16 = vpop.f32.mrb[22].mxu0  ;;  %v3996_v49 = vadd.f32 %v3849_v2, %v1070_v15 }
 0x2af   : > { %v1073_v19 = vpop.f32.mrb[23].mxu0  ;;  %5808 = vst [vmem:[#allocation9_spill] sm:$0xff] %v3939_v30  ;;  %v3942_v31 = vadd.f32 %v3043_v16, %v3849_v2  ;;  %v3970_v40 = vsel %vm1184_vm5, %v3939_v30, -inf  ;;  %v3988_v45 = vsel %vm3851_vm4, %v3939_v30, -inf  ;;  %v4012_v54 = vsel %vm3876_vm8, %v3939_v30, -inf }
 0x2b0   : > { %1643 = vmax.xlane.f32.xlu1 %v3898_v17  ;;  %1218 = vmax.xlane.f32.xlu0 %v3903_v18  ;;  %5815 = vst [vmem:[#allocation16_spill] sm:$0xff] %v3996_v49  ;;  %v4002_v52 = vadd.f32 %v3849_v2, %v1073_v19  ;;  %v4030_v59 = vsel %vm1184_vm5, %v3996_v49, -inf  ;;  %v4048_v7 = vsel %vm3851_vm4, %v3996_v49, -inf }
 0x2b1   : > { %5809 = vst [vmem:[#allocation10_spill] sm:$0xff] %v3942_v31  ;;  %v3965_v39 = vsel %vm1184_vm5, %v3942_v31, -inf  ;;  %v3983_v44 = vsel %vm3851_vm4, %v3942_v31, -inf  ;;  %v4007_v53 = vsel %vm3876_vm8, %v3942_v31, -inf }
 0x2b2   : > { %5817 = vst [vmem:[#allocation18_spill] sm:$0xff] %v4002_v52  ;;  %v4025_v58 = vsel %vm1184_vm5, %v4002_v52, -inf  ;;  %v4043_v6 = vsel %vm3851_vm4, %v4002_v52, -inf }
 0x2b4   : > { %2062 = vmax.xlane.f32.xlu1 %v3913_v21  ;;  %1637 = vmax.xlane.f32.xlu0 %v3918_v22  ;;  %v3046_v23 = vpop.f32.mrb[24].mxu0 }
 0x2b5   : > { %v3922_v24 = vpop.f32.mrb[25].mxu0  ;;  %v4059_v16 = vadd.f32 %v3046_v23, %v3849_v2 }
 0x2b6   : > { %v3047_v26 = vpop.f32.mrb[26].mxu0 }
 0x2b7   : > { %v3934_v29 = vpop.f32.mrb[27].mxu0  ;;  %5824 = vst [vmem:[#allocation25_spill] sm:$0xff] %v4059_v16  ;;  %v4062_v19 = vadd.f32 %v3047_v26, %v3849_v2 }
 0x2b8   : > { %1639 = vmax.xlane.f32.xlu1 %v3927_v27  ;;  %2056 = vmax.xlane.f32.xlu0 %v3932_v28  ;;  %v4124_v30 = vadd.f32 %v3849_v2, %v3934_v29 }
 0x2b9   : > { %5825 = vst [vmem:[#allocation26_spill] sm:$0xff] %v4062_v19  ;;  %v4129_v31 = vsel %vm3876_vm8, %v4062_v19, -inf }
 0x2ba   : > { %5833 = vst [vmem:[#allocation34_spill] sm:$0xff] %v4124_v30 }
 0x2bc   : > { %2058 = vmax.xlane.f32.xlu1 %v3947_v32  ;;  %1220 = vmax.xlane.f32.xlu0 %v3952_v33  ;;  %v3050_v34 = vpop.f32.mrb[28].mxu0 }
 0x2bd   : > { %v3957_v35 = vadd.f32 %v3050_v34, %v3849_v2  ;;  %v1102_v36 = vpop.f32.mrb[29].mxu0  ;;  %v4067_v34 = vsel %vm3876_vm8, %v4002_v52, -inf }
 0x2be   : > { %v3960_v37 = vadd.f32 %v3849_v2, %v1102_v36  ;;  %v3051_v38 = vpop.f32.mrb[30].mxu0  ;;  %v4072_v36 = vsel %vm3876_vm8, %v3996_v49, -inf }
 0x2bf   : > { %5810 = vst [vmem:[#allocation11_spill] sm:$0xff] %v3957_v35  ;;  %v3973_v41 = vadd.f32 %v3051_v38, %v3849_v2  ;;  %v1105_v42 = vpop.f32.mrb[31].mxu0  ;;  %v4188_v25 = vsel %vm1184_vm5, %v3957_v35, -inf }
 0x2c0   : > { %5811 = vst [vmem:[#allocation12_spill] sm:$0xff] %v3960_v37  ;;  %1232 = vmax.xlane.f32.xlu1 %v3965_v39  ;;  %1230 = vmax.xlane.f32.xlu0 %v3970_v40  ;;  %v3978_v43 = vadd.f32 %v3849_v2, %v1105_v42  ;;  %5839 = vst [vmem:[#allocation40_spill] sm:$0xff] %v4188_v25 }
 0x2c1   : > { %5812 = vst [vmem:[#allocation13_spill] sm:$0xff] %v3973_v41  ;;  %v4183_v8 = vsel %vm1184_vm5, %v3973_v41, -inf  ;;  %v4207_v5 = vsel %vm3876_vm8, %v3973_v41, -inf }
 0x2c2   : > { %5813 = vst [vmem:[#allocation14_spill] sm:$0xff] %v3978_v43  ;;  %5838 = vst [vmem:[#allocation39_spill] sm:$0xff] %v4183_v8 }
 0x2c3   : > { %5842 = vst [vmem:[#allocation43_spill] sm:$0xff] %v4207_v5 }
 0x2c4   : > { %1651 = vmax.xlane.f32.xlu1 %v3983_v44  ;;  %1649 = vmax.xlane.f32.xlu0 %v3988_v45  ;;  %v3054_v46 = vpop.f32.mrb[32].mxu0 }
 0x2c5   : > { %v3993_v47 = vadd.f32 %v3054_v46, %v3849_v2  ;;  %v1118_v48 = vpop.f32.mrb[33].mxu0 }
 0x2c6   : > { %v3999_v50 = vadd.f32 %v3849_v2, %v1118_v48  ;;  %v3055_v51 = vpop.f32.mrb[34].mxu0  ;;  %v4085_v48 = vsel %vm1184_vm5, %v4062_v19, -inf }
 0x2c7   : > { %5814 = vst [vmem:[#allocation15_spill] sm:$0xff] %v3993_v47  ;;  %v4015_v55 = vadd.f32 %v3055_v51, %v3849_v2  ;;  %v1121_v56 = vpop.f32.mrb[35].mxu0  ;;  %v4090_v51 = vsel %vm1184_vm5, %v4059_v16, -inf }
 0x2c8   : > { %5816 = vst [vmem:[#allocation17_spill] sm:$0xff] %v3999_v50  ;;  %2070 = vmax.xlane.f32.xlu1 %v4007_v53  ;;  %2068 = vmax.xlane.f32.xlu0 %v4012_v54  ;;  %v4020_v57 = vadd.f32 %v3849_v2, %v1121_v56 }
 0x2c9   : > { %5818 = vst [vmem:[#allocation19_spill] sm:$0xff] %v4015_v55 }
 0x2ca   : > { %5819 = vst [vmem:[#allocation20_spill] sm:$0xff] %v4020_v57 }
 0x2cc   : > { %1228 = vmax.xlane.f32.xlu1 %v4025_v58  ;;  %1226 = vmax.xlane.f32.xlu0 %v4030_v59  ;;  %v3058_v60 = vpop.f32.mrb[36].mxu0 }
 0x2cd   : > { %v4035_v61 = vadd.f32 %v3058_v60, %v3849_v2  ;;  %v1134_v62 = vpop.f32.mrb[37].mxu0 }
 0x2ce   : > { %v4038_v63 = vadd.f32 %v3849_v2, %v1134_v62  ;;  %v3059_v3 = vpop.f32.mrb[38].mxu0 }
 0x2cf   : > { %5820 = vst [vmem:[#allocation21_spill] sm:$0xff] %v4035_v61  ;;  %v4051_v9 = vadd.f32 %v3059_v3, %v3849_v2  ;;  %v1137_v14 = vpop.f32.mrb[39].mxu0  ;;  %v4103_v3 = vsel %vm3851_vm4, %v4062_v19, -inf  ;;  %v4147_v19 = vsel %vm1184_vm5, %v4124_v30, -inf }
 0x2d0   : > { %5821 = vst [vmem:[#allocation22_spill] sm:$0xff] %v4038_v63  ;;  %1647 = vmax.xlane.f32.xlu1 %v4043_v6  ;;  %1645 = vmax.xlane.f32.xlu0 %v4048_v7  ;;  %v4056_v15 = vadd.f32 %v3849_v2, %v1137_v14  ;;  %v4108_v14 = vsel %vm3851_vm4, %v4059_v16, -inf }
 0x2d1   : > { %5822 = vst [vmem:[#allocation23_spill] sm:$0xff] %v4051_v9 }
 0x2d2   : > { %5823 = vst [vmem:[#allocation24_spill] sm:$0xff] %v4056_v15 }
 0x2d4   : > { %2066 = vmax.xlane.f32.xlu1 %v4067_v34  ;;  %2064 = vmax.xlane.f32.xlu0 %v4072_v36  ;;  %v3062_v38 = vpop.f32.mrb[40].mxu0 }
 0x2d5   : > { %v4077_v23 = vadd.f32 %v3062_v38, %v3849_v2  ;;  %v1150_v26 = vpop.f32.mrb[41].mxu0 }
 0x2d6   : > { %v4080_v42 = vadd.f32 %v3849_v2, %v1150_v26  ;;  %v3063_v46 = vpop.f32.mrb[42].mxu0 }
 0x2d7   : > { %5826 = vst [vmem:[#allocation27_spill] sm:$0xff] %v4077_v23  ;;  %v4093_v56 = vadd.f32 %v3063_v46, %v3849_v2  ;;  %v1153_v60 = vpop.f32.mrb[43].mxu0 }
 0x2d8   : > { %5827 = vst [vmem:[#allocation28_spill] sm:$0xff] %v4080_v42  ;;  %1240 = vmax.xlane.f32.xlu1 %v4085_v48  ;;  %1238 = vmax.xlane.f32.xlu0 %v4090_v51  ;;  %v4098_v62 = vadd.f32 %v3849_v2, %v1153_v60  ;;  %v4117_v60 = vadd.f32 %v3849_v2, %v3922_v24 }
 0x2d9   : > { %5828 = vst [vmem:[#allocation29_spill] sm:$0xff] %v4093_v56 }
 0x2da   : > { %5829 = vst [vmem:[#allocation30_spill] sm:$0xff] %v4098_v62  ;;  %5831 = vst [vmem:[#allocation32_spill] sm:$0xff] %v4117_v60  ;;  %v4176_v20 = vsel %vm3876_vm8, %v4117_v60, -inf }
 0x2db   : > { %5837 = vst [vmem:[#allocation38_spill] sm:$0xff] %v4176_v20 }
 0x2dc   : > { %1659 = vmax.xlane.f32.xlu1 %v4103_v3  ;;  %1657 = vmax.xlane.f32.xlu0 %v4108_v14  ;;  %v3066_v38 = vpop.f32.mrb[44].mxu0 }
 0x2dd   : > { %v4113_v26 = vadd.f32 %v3066_v38, %v3849_v2  ;;  %v1166_v46 = vpop.f32.mrb[45].mxu0  ;;  %v4134_v38 = vsel %vm3876_vm8, %v4059_v16, -inf  ;;  %v4152_v16 = vsel %vm1184_vm5, %v4117_v60, -inf }
 0x2de   : > { %v4120_v52 = vadd.f32 %v3849_v2, %v1166_v46  ;;  %v3067_v49 = vpop.f32.mrb[46].mxu0 }
 0x2df   : > { %5830 = vst [vmem:[#allocation31_spill] sm:$0xff] %v4113_v26  ;;  %v4137_v24 = vadd.f32 %v3067_v49, %v3849_v2  ;;  %v1169_v46 = vpop.f32.mrb[47].mxu0  ;;  %v4159_v49 = vsel %vm3851_vm4, %v4124_v30, -inf }
 0x2e0   : > { %5832 = vst [vmem:[#allocation33_spill] sm:$0xff] %v4120_v52  ;;  %2078 = vmax.xlane.f32.xlu1 %v4129_v31  ;;  %2076 = vmax.xlane.f32.xlu0 %v4134_v38  ;;  %v4142_v29 = vadd.f32 %v3849_v2, %v1169_v46  ;;  %v4164_v2 = vsel %vm3851_vm4, %v4117_v60, -inf  ;;  %v4171_v46 = vsel %vm3876_vm8, %v4124_v30, -inf  ;;  %v4195_v60 = vsel %vm3851_vm4, %v3973_v41, -inf }
 0x2e1   : > { %5834 = vst [vmem:[#allocation35_spill] sm:$0xff] %v4137_v24  ;;  %5836 = vst [vmem:[#allocation37_spill] sm:$0xff] %v4171_v46  ;;  %v4200_v30 = vsel %vm3851_vm4, %v3957_v35, -inf  ;;  %v4236_v41 = vsel %vm3851_vm4, %v3960_v37, -inf }
 0x2e2   : > { %5835 = vst [vmem:[#allocation36_spill] sm:$0xff] %v4142_v29  ;;  %5840 = vst [vmem:[#allocation41_spill] sm:$0xff] %v4195_v60 }
 0x2e3   : > { %5841 = vst [vmem:[#allocation42_spill] sm:$0xff] %v4200_v30  ;;  %5847 = vst [vmem:[#allocation48_spill] sm:$0xff] %v4236_v41 }
 0x2e4   : > { %1236 = vmax.xlane.f32.xlu1 %v4147_v19  ;;  %1234 = vmax.xlane.f32.xlu0 %v4152_v16 }
 0x2e8   : > { %1655 = vmax.xlane.f32.xlu1 %v4159_v49  ;;  %1653 = vmax.xlane.f32.xlu0 %v4164_v2 }
 0x2ec   : > { %2074 = vmax.xlane.f32.xlu1 %v4171_v46  ;;  %2072 = vmax.xlane.f32.xlu0 %v4176_v20  ;;  %v4535_v46 = vsel %vm3876_vm8, %v4137_v24, -inf }
 0x2ed   : > { %5895 = vst [vmem:[#allocation96_spill] sm:$0xff] %v4535_v46 }
 0x2f0   : > { %1248 = vmax.xlane.f32.xlu1 %v4183_v8  ;;  %1246 = vmax.xlane.f32.xlu0 %v4188_v25  ;;  %v4212_v25 = vsel %vm3876_vm8, %v3957_v35, -inf  ;;  %v4231_v35 = vsel %vm3851_vm4, %v3978_v43, -inf }
 0x2f1   : > { %5843 = vst [vmem:[#allocation44_spill] sm:$0xff] %v4212_v25  ;;  %5846 = vst [vmem:[#allocation47_spill] sm:$0xff] %v4231_v35 }
 0x2f4   : > { %1667 = vmax.xlane.f32.xlu1 %v4195_v60  ;;  %1665 = vmax.xlane.f32.xlu0 %v4200_v30  ;;  %v4219_v60 = vsel %vm1184_vm5, %v3978_v43, -inf  ;;  %v4224_v30 = vsel %vm1184_vm5, %v3960_v37, -inf }
 0x2f5   : > { %5844 = vst [vmem:[#allocation45_spill] sm:$0xff] %v4219_v60  ;;  %5845 = vst [vmem:[#allocation46_spill] sm:$0xff] %v4224_v30 }
 0x2f8   : > { %2086 = vmax.xlane.f32.xlu1 %v4207_v5  ;;  %2084 = vmax.xlane.f32.xlu0 %v4212_v25  ;;  %v4499_v25 = vsel %vm1184_vm5, %v4137_v24, -inf  ;;  %v4520_v5 = vsel %vm3851_vm4, %v4113_v26, -inf }
 0x2f9   : > { %5891 = vst [vmem:[#allocation92_spill] sm:$0xff] %v4499_v25  ;;  %5894 = vst [vmem:[#allocation95_spill] sm:$0xff] %v4520_v5 }
 0x2fc   : > { %1244 = vmax.xlane.f32.xlu1 %v4219_v60  ;;  %1242 = vmax.xlane.f32.xlu0 %v4224_v30  ;;  %v4243_v60 = vsel %vm3876_vm8, %v3978_v43, -inf  ;;  %v4248_v30 = vsel %vm3876_vm8, %v3960_v37, -inf  ;;  %v4267_v37 = vsel %vm3851_vm4, %v4015_v55, -inf  ;;  %v4272_v43 = vsel %vm3851_vm4, %v3993_v47, -inf }
 0x2fd   : > { %5848 = vst [vmem:[#allocation49_spill] sm:$0xff] %v4243_v60  ;;  %5849 = vst [vmem:[#allocation50_spill] sm:$0xff] %v4248_v30 }
 0x2fe   : > { %5852 = vst [vmem:[#allocation53_spill] sm:$0xff] %v4267_v37  ;;  %5853 = vst [vmem:[#allocation54_spill] sm:$0xff] %v4272_v43 }
 0x300   : > { %1663 = vmax.xlane.f32.xlu1 %v4231_v35  ;;  %1661 = vmax.xlane.f32.xlu0 %v4236_v41  ;;  %v4255_v35 = vsel %vm1184_vm5, %v4015_v55, -inf  ;;  %v4260_v41 = vsel %vm1184_vm5, %v3993_v47, -inf }
 0x301   : > { %5850 = vst [vmem:[#allocation51_spill] sm:$0xff] %v4255_v35  ;;  %5851 = vst [vmem:[#allocation52_spill] sm:$0xff] %v4260_v41 }
 0x304   : > { %2082 = vmax.xlane.f32.xlu1 %v4243_v60  ;;  %2080 = vmax.xlane.f32.xlu0 %v4248_v30  ;;  %v4483_v30 = vsel %vm3876_vm8, %v4098_v62, -inf  ;;  %v4488_v60 = vsel %vm3876_vm8, %v4080_v42, -inf }
 0x305   : > { %5889 = vst [vmem:[#allocation90_spill] sm:$0xff] %v4483_v30  ;;  %5890 = vst [vmem:[#allocation91_spill] sm:$0xff] %v4488_v60 }
 0x308   : > { %1256 = vmax.xlane.f32.xlu1 %v4255_v35  ;;  %1254 = vmax.xlane.f32.xlu0 %v4260_v41  ;;  %v4279_v35 = vsel %vm3876_vm8, %v4015_v55, -inf  ;;  %v4284_v41 = vsel %vm3876_vm8, %v3993_v47, -inf  ;;  %v4303_v47 = vsel %vm3851_vm4, %v4020_v57, -inf  ;;  %v4308_v55 = vsel %vm3851_vm4, %v3999_v50, -inf }
 0x309   : > { %5854 = vst [vmem:[#allocation55_spill] sm:$0xff] %v4279_v35  ;;  %5855 = vst [vmem:[#allocation56_spill] sm:$0xff] %v4284_v41 }
 0x30a   : > { %5858 = vst [vmem:[#allocation59_spill] sm:$0xff] %v4303_v47  ;;  %5859 = vst [vmem:[#allocation60_spill] sm:$0xff] %v4308_v55 }
 0x30c   : > { %1675 = vmax.xlane.f32.xlu1 %v4267_v37  ;;  %1673 = vmax.xlane.f32.xlu0 %v4272_v43  ;;  %v4291_v37 = vsel %vm1184_vm5, %v4020_v57, -inf  ;;  %v4296_v43 = vsel %vm1184_vm5, %v3999_v50, -inf }
 0x30d   : > { %5856 = vst [vmem:[#allocation57_spill] sm:$0xff] %v4291_v37  ;;  %5857 = vst [vmem:[#allocation58_spill] sm:$0xff] %v4296_v43 }
 0x310   : > { %2094 = vmax.xlane.f32.xlu1 %v4279_v35  ;;  %2092 = vmax.xlane.f32.xlu0 %v4284_v41  ;;  %v4451_v41 = vsel %vm1184_vm5, %v4098_v62, -inf  ;;  %v4472_v35 = vsel %vm3851_vm4, %v4080_v42, -inf }
 0x311   : > { %5885 = vst [vmem:[#allocation86_spill] sm:$0xff] %v4451_v41  ;;  %5888 = vst [vmem:[#allocation89_spill] sm:$0xff] %v4472_v35 }
 0x314   : > { %1252 = vmax.xlane.f32.xlu1 %v4291_v37  ;;  %1250 = vmax.xlane.f32.xlu0 %v4296_v43  ;;  %v4315_v37 = vsel %vm3876_vm8, %v4020_v57, -inf  ;;  %v4320_v43 = vsel %vm3876_vm8, %v3999_v50, -inf  ;;  %v4339_v50 = vsel %vm3851_vm4, %v4051_v9, -inf  ;;  %v4344_v57 = vsel %vm3851_vm4, %v4035_v61, -inf }
 0x315   : > { %5860 = vst [vmem:[#allocation61_spill] sm:$0xff] %v4315_v37  ;;  %5861 = vst [vmem:[#allocation62_spill] sm:$0xff] %v4320_v43 }
 0x316   : > { %5864 = vst [vmem:[#allocation65_spill] sm:$0xff] %v4339_v50  ;;  %5865 = vst [vmem:[#allocation66_spill] sm:$0xff] %v4344_v57 }
 0x318   : > { %1671 = vmax.xlane.f32.xlu1 %v4303_v47  ;;  %1669 = vmax.xlane.f32.xlu0 %v4308_v55  ;;  %v4327_v47 = vsel %vm1184_vm5, %v4051_v9, -inf  ;;  %v4332_v55 = vsel %vm1184_vm5, %v4035_v61, -inf }
 0x319   : > { %5862 = vst [vmem:[#allocation63_spill] sm:$0xff] %v4327_v47  ;;  %5863 = vst [vmem:[#allocation64_spill] sm:$0xff] %v4332_v55 }
 0x31c   : > { %2090 = vmax.xlane.f32.xlu1 %v4315_v37  ;;  %2088 = vmax.xlane.f32.xlu0 %v4320_v43  ;;  %v4435_v43 = vsel %vm3876_vm8, %v4093_v56, -inf  ;;  %v4440_v37 = vsel %vm3876_vm8, %v4077_v23, -inf }
 0x31d   : > { %5881 = vst [vmem:[#allocation82_spill] sm:$0xff] %v4435_v43  ;;  %5882 = vst [vmem:[#allocation83_spill] sm:$0xff] %v4440_v37 }
 0x320   : > { %1264 = vmax.xlane.f32.xlu1 %v4327_v47  ;;  %1262 = vmax.xlane.f32.xlu0 %v4332_v55  ;;  %v4351_v47 = vsel %vm3876_vm8, %v4051_v9, -inf  ;;  %v4356_v55 = vsel %vm3876_vm8, %v4035_v61, -inf  ;;  %v4375_v61 = vsel %vm3851_vm4, %v4056_v15, -inf  ;;  %v4380_v9 = vsel %vm3851_vm4, %v4038_v63, -inf }
 0x321   : > { %5866 = vst [vmem:[#allocation67_spill] sm:$0xff] %v4351_v47  ;;  %5867 = vst [vmem:[#allocation68_spill] sm:$0xff] %v4356_v55 }
 0x322   : > { %5870 = vst [vmem:[#allocation71_spill] sm:$0xff] %v4375_v61  ;;  %5871 = vst [vmem:[#allocation72_spill] sm:$0xff] %v4380_v9 }
 0x324   : > { %1683 = vmax.xlane.f32.xlu1 %v4339_v50  ;;  %1681 = vmax.xlane.f32.xlu0 %v4344_v57  ;;  %v4363_v50 = vsel %vm1184_vm5, %v4056_v15, -inf  ;;  %v4368_v57 = vsel %vm1184_vm5, %v4038_v63, -inf }
 0x325   : > { %5868 = vst [vmem:[#allocation69_spill] sm:$0xff] %v4363_v50  ;;  %5869 = vst [vmem:[#allocation70_spill] sm:$0xff] %v4368_v57 }
 0x328   : > { %2102 = vmax.xlane.f32.xlu1 %v4351_v47  ;;  %2100 = vmax.xlane.f32.xlu0 %v4356_v55 }
 0x32c   : > { %1260 = vmax.xlane.f32.xlu1 %v4363_v50  ;;  %1258 = vmax.xlane.f32.xlu0 %v4368_v57  ;;  %v4387_v50 = vsel %vm3876_vm8, %v4056_v15, -inf  ;;  %v4392_v57 = vsel %vm3876_vm8, %v4038_v63, -inf  ;;  %v4408_v15 = vsel %vm1184_vm5, %v4077_v23, -inf }
 0x32d   : > { %5872 = vst [vmem:[#allocation73_spill] sm:$0xff] %v4387_v50  ;;  %5873 = vst [vmem:[#allocation74_spill] sm:$0xff] %v4392_v57 }
 0x32e   : > { %5876 = vst [vmem:[#allocation77_spill] sm:$0xff] %v4408_v15 }
 0x330   : > { %1679 = vmax.xlane.f32.xlu1 %v4375_v61  ;;  %1677 = vmax.xlane.f32.xlu0 %v4380_v9  ;;  %v4403_v9 = vsel %vm1184_vm5, %v4093_v56, -inf  ;;  %v4424_v61 = vsel %vm3851_vm4, %v4077_v23, -inf }
 0x331   : > { %5875 = vst [vmem:[#allocation76_spill] sm:$0xff] %v4403_v9  ;;  %5879 = vst [vmem:[#allocation80_spill] sm:$0xff] %v4424_v61 }
 0x334   : > { %2098 = vmax.xlane.f32.xlu1 %v4387_v50  ;;  %2096 = vmax.xlane.f32.xlu0 %v4392_v57  ;;  %v4419_v50 = vsel %vm3851_vm4, %v4093_v56, -inf  ;;  %v4456_v56 = vsel %vm1184_vm5, %v4080_v42, -inf }
 0x335   : > { %v4396_v55 = vpop.xlane.xlu0 %1641  ;;  %v4398_v47 = vpop.xlane.xlu1 %1222  ;;  %5878 = vst [vmem:[#allocation79_spill] sm:$0xff] %v4419_v50  ;;  %5886 = vst [vmem:[#allocation87_spill] sm:$0xff] %v4456_v56 }
 0x336   : > { %5874 = vst [vmem:[#allocation75_spill] sm:$0xff] %v4398_v47  ;;  %v1284_v8 = vsub.f32 %v3872_v11, %v4398_v47  ;;  %v4540_v11 = vsel %vm3876_vm8, %v4113_v26, -inf  ;;  %v1703_v47 = vsub.f32 %v3867_v10, %v4396_v55 }
 0x337   : > { %5896 = vst [vmem:[#allocation97_spill] sm:$0xff] %v4540_v11 }
 0x338   : > { %1272 = vmax.xlane.f32.xlu1 %v4403_v9  ;;  %1270 = vmax.xlane.f32.xlu0 %v4408_v15  ;;  %v1737_v10 = vmul.f32 1.442695, %v1703_v47 }
 0x339   : > { %v4412_v63 = vpop.xlane.xlu0 %2060  ;;  %v4414_v57 = vpop.xlane.xlu1 %1224 }
 0x33a   : > { %5877 = vst [vmem:[#allocation78_spill] sm:$0xff] %v4414_v57 }
 0x33c   : > { %1691 = vmax.xlane.f32.xlu1 %v4419_v50  ;;  %1689 = vmax.xlane.f32.xlu0 %v4424_v61 }
 0x33d   : > { %v4428_v9 = vpop.xlane.xlu1 %1643  ;;  %v4430_v15 = vpop.xlane.xlu0 %1218 }
 0x33e   : > { %5880 = vst [vmem:[#allocation81_spill] sm:$0xff] %v4428_v9 }
 0x340   : > { %2110 = vmax.xlane.f32.xlu1 %v4435_v43  ;;  %2108 = vmax.xlane.f32.xlu0 %v4440_v37  ;;  %v4467_v43 = vsel %vm3851_vm4, %v4098_v62, -inf  ;;  %v4504_v62 = vsel %vm1184_vm5, %v4113_v26, -inf  ;;  %v4555_v26 = vsel %vm1184_vm5, %v4142_v29, -inf }
 0x341   : > { %v4444_v50 = vpop.xlane.xlu1 %2062  ;;  %v4446_v61 = vpop.xlane.xlu0 %1637  ;;  %5887 = vst [vmem:[#allocation88_spill] sm:$0xff] %v4467_v43  ;;  %5892 = vst [vmem:[#allocation93_spill] sm:$0xff] %v4504_v62 }
 0x342   : > { %5883 = vst [vmem:[#allocation84_spill] sm:$0xff] %v4444_v50  ;;  %5884 = vst [vmem:[#allocation85_spill] sm:$0xff] %v4446_v61 }
 0x344   : > { %1268 = vmax.xlane.f32.xlu1 %v4451_v41  ;;  %1266 = vmax.xlane.f32.xlu0 %v4456_v56 }
 0x345   : > { %v4460_v23 = vpop.xlane.xlu1 %1639  ;;  %v4462_v37 = vpop.xlane.xlu0 %2056 }
 0x348   : > { %1687 = vmax.xlane.f32.xlu1 %v4467_v43  ;;  %1685 = vmax.xlane.f32.xlu0 %v4472_v35 }
 0x349   : > { %v4476_v41 = vpop.xlane.xlu1 %2058  ;;  %v4478_v56 = vpop.xlane.xlu0 %1220 }
 0x34c   : > { %2106 = vmax.xlane.f32.xlu1 %v4483_v30  ;;  %2104 = vmax.xlane.f32.xlu0 %v4488_v60  ;;  %v4515_v30 = vsel %vm3851_vm4, %v4137_v24, -inf }
 0x34d   : > { %v4492_v43 = vpop.xlane.xlu1 %1232  ;;  %v4494_v35 = vpop.xlane.xlu0 %1230  ;;  %5893 = vst [vmem:[#allocation94_spill] sm:$0xff] %v4515_v30 }
 0x350   : > { %1280 = vmax.xlane.f32.xlu1 %v4499_v25  ;;  %1278 = vmax.xlane.f32.xlu0 %v4504_v62  ;;  %v1285_v62 = vsub.f32 %v3891_v13, %v4414_v57  ;;  %v1704_v57 = vsub.f32 %v3898_v17, %v4428_v9 }
 0x351   : > { %v4508_v42 = vpop.xlane.xlu1 %1651  ;;  %v4510_v60 = vpop.xlane.xlu0 %1649 }
 0x352   : > { %v1320_v13 = vmul.f32 1.442695, %v1285_v62  ;;  %v2122_v62 = vsub.f32 %v3886_v1, %v4412_v63  ;;  %v1739_v17 = vmul.f32 1.442695, %v1704_v57  ;;  %v4580_v1 = vsel %vm3851_vm4, %v4120_v52, -inf }
 0x353   : > { %v1282_v57 = vsub.f32 %v3903_v18, %v4430_v15  ;;  %v4600_v18 = vsel %vm3876_vm8, %v4120_v52, -inf }
 0x354   : > { %1699 = vmax.xlane.f32.xlu1 %v4515_v30  ;;  %1697 = vmax.xlane.f32.xlu0 %v4520_v5  ;;  %v1318_v5 = vmul.f32 1.442695, %v1284_v8  ;;  %v4560_v8 = vsel %vm1184_vm5, %v4120_v52, -inf  ;;  %v2156_v47 = vmul.f32 1.442695, %v2122_v62  ;;  %5903 = vst [vmem:[#allocation104_spill] sm:$0xff] %v4600_v18 }
 0x355   : > { %v4528_v25 = vpop.xlane.xlu1 %2070  ;;  %v4530_v20 = vpop.xlane.xlu0 %2068  ;;  %v1314_v62 = vmul.f32 1.442695, %v1282_v57 }
 0x356   : > { %3105 = vpow2.f32 %v1318_v5  ;;  %v4575_v5 = vsel %vm3851_vm4, %v4142_v29, -inf }
 0x357   : > { %3107 = vpow2.f32 %v1320_v13  ;;  %v1283_v13 = vsub.f32 %v3952_v33, %v4478_v56  ;;  %v1702_v33 = vsub.f32 %v3927_v27, %v4460_v23 }
 0x358   : > { %2118 = vmax.xlane.f32.xlu1 %v4535_v46  ;;  %2116 = vmax.xlane.f32.xlu0 %v4540_v11  ;;  %v2123_v11 = vsub.f32 %v3913_v21, %v4444_v50  ;;  %3109 = vpow2.f32 %v1737_v10  ;;  %v4595_v10 = vsel %vm3876_vm8, %v4142_v29, -inf }
 0x359   : > { %v4548_v30 = vpop.xlane.xlu1 %1228  ;;  %v4550_v24 = vpop.xlane.xlu0 %1226  ;;  %3111 = vpow2.f32 %v1739_v17  ;;  %5902 = vst [vmem:[#allocation103_spill] sm:$0xff] %v4595_v10  ;;  %v1316_v17 = vmul.f32 1.442695, %v1283_v13  ;;  %v1735_v57 = vmul.f32 1.442695, %v1702_v33 }
 0x35a   : > { %5897 = vst [vmem:[#allocation98_spill] sm:$0xff] %v4550_v24  ;;  %v2158_v21 = vmul.f32 1.442695, %v2123_v11  ;;  %3113 = vpow2.f32 %v2156_v47  ;;  %v1701_v11 = vsub.f32 %v3918_v22, %v4446_v61  ;;  %v2120_v22 = vsub.f32 %v3932_v28, %v4462_v37 }
 0x35b   : > { %v1288_v28 = vsub.f32 %v3970_v40, %v4494_v35 }
 0x35c   : > { %1276 = vmax.xlane.f32.xlu1 %v4555_v26  ;;  %1274 = vmax.xlane.f32.xlu0 %v4560_v8  ;;  %3115 = vpow2.f32 %v2158_v21  ;;  %v1733_v47 = vmul.f32 1.442695, %v1701_v11  ;;  %v2121_v21 = vsub.f32 %v3947_v32, %v4476_v41 }
 0x35d   : > { %v4568_v46 = vpop.xlane.xlu1 %1647  ;;  %v4570_v9 = vpop.xlane.xlu0 %1645  ;;  %3117 = vpow2.f32 %v1314_v62  ;;  %v1289_v62 = vsub.f32 %v3965_v39, %v4492_v43  ;;  %v1326_v39 = vmul.f32 1.442695, %v1288_v28 }
 0x35e   : > { %5898 = vst [vmem:[#allocation99_spill] sm:$0xff] %v4568_v46  ;;  %5899 = vst [vmem:[#allocation100_spill] sm:$0xff] %v4570_v9  ;;  %3119 = vpow2.f32 %v1316_v17 }
 0x35f   : > { %3121 = vpow2.f32 %v1733_v47  ;;  %v1328_v17 = vmul.f32 1.442695, %v1289_v62  ;;  %v1708_v47 = vsub.f32 %v3983_v44, %v4508_v42  ;;  %v2126_v62 = vsub.f32 %v4012_v54, %v4530_v20 }
 0x360   : > { %1695 = vmax.xlane.f32.xlu1 %v4575_v5  ;;  %1693 = vmax.xlane.f32.xlu0 %v4580_v1  ;;  %v3106_v52 = vpop.eup %3105  ;;  %3123 = vpow2.f32 %v1735_v57 }
 0x361   : > { %v4588_v0 = vpop.xlane.xlu1 %2066  ;;  %v4590_v50 = vpop.xlane.xlu0 %2064 }
 0x362   : > { %5900 = vst [vmem:[#allocation101_spill] sm:$0xff] %v4588_v0  ;;  %5901 = vst [vmem:[#allocation102_spill] sm:$0xff] %v4590_v50  ;;  %v3108_v12 = vpop.eup %3107 }
 0x363   : > { %v3110_v61 = vpop.eup %3109 }
 0x364   : > { %2114 = vmax.xlane.f32.xlu1 %v4595_v10  ;;  %2112 = vmax.xlane.f32.xlu0 %v4600_v18  ;;  %v3112_v18 = vpop.eup %3111  ;;  %v2152_v10 = vmul.f32 1.442695, %v2120_v22 }
 0x365   : > { %v4608_v29 = vpop.xlane.xlu1 %1240  ;;  %v4610_v4 = vpop.xlane.xlu0 %1238 }
 0x366   : > { %5904 = vst [vmem:[#allocation105_spill] sm:$0xff] %v4608_v29  ;;  %5905 = vst [vmem:[#allocation106_spill] sm:$0xff] %v4610_v4  ;;  %v3114_v11 = vpop.eup %3113  ;;  %3125 = vpow2.f32 %v2152_v10  ;;  %v2127_v10 = vsub.f32 %v4007_v53, %v4528_v25  ;;  %v2164_v53 = vmul.f32 1.442695, %v2126_v62 }
 0x367   : > { %v3116_v33 = vpop.eup %3115 }
 0x368   : > { %1384 = vadd.xlane.f32.xlu1 %v3108_v12  ;;  %1382 = vadd.xlane.f32.xlu0 %v3106_v52  ;;  %v2154_v12 = vmul.f32 1.442695, %v2121_v21  ;;  %v3118_v22 = vpop.eup %3117  ;;  %v1747_v21 = vmul.f32 1.442695, %v1708_v47  ;;  %v1286_v47 = vsub.f32 %v4030_v59, %v4550_v24 }
 0x369   : > { %v4616_v27 = vpop.xlane.xlu1 %1659  ;;  %v4618_v13 = vpop.xlane.xlu0 %1657 }
 0x36a   : > { %5906 = vst [vmem:[#allocation107_spill] sm:$0xff] %v4616_v27  ;;  %5907 = vst [vmem:[#allocation108_spill] sm:$0xff] %v4618_v13  ;;  %3127 = vpow2.f32 %v2154_v12  ;;  %v3120_v57 = vpop.eup %3119 }
 0x36b   : > { %3129 = vpow2.f32 %v1328_v17  ;;  %v3122_v28 = vpop.eup %3121  ;;  %v1287_v17 = vsub.f32 %v4025_v58, %v4548_v30  ;;  %v1322_v58 = vmul.f32 1.442695, %v1286_v47 }
 0x36c   : > { %1803 = vadd.xlane.f32.xlu1 %v3112_v18  ;;  %1801 = vadd.xlane.f32.xlu0 %v3110_v61  ;;  %v1707_v61 = vsub.f32 %v3988_v45, %v4510_v60  ;;  %3131 = vpow2.f32 %v1326_v39 }
 0x36d   : > { %v4624_v32 = vpop.xlane.xlu1 %2078  ;;  %v4626_v52 = vpop.xlane.xlu0 %2076  ;;  %3133 = vpow2.f32 %v1747_v21  ;;  %v1706_v21 = vsub.f32 %v4043_v6, %v4568_v46 }
 0x36e   : > { %5908 = vst [vmem:[#allocation109_spill] sm:$0xff] %v4624_v32  ;;  %5909 = vst [vmem:[#allocation110_spill] sm:$0xff] %v4626_v52  ;;  %v1745_v44 = vmul.f32 1.442695, %v1707_v61 }
 0x370   : > { %2222 = vadd.xlane.f32.xlu1 %v3116_v33  ;;  %2220 = vadd.xlane.f32.xlu0 %v3114_v11  ;;  %v3124_v11 = vpop.eup %3123  ;;  %v2166_v33 = vmul.f32 1.442695, %v2127_v10  ;;  %3135 = vpow2.f32 %v1745_v44  ;;  %v1705_v10 = vsub.f32 %v4048_v7, %v4570_v9 }
 0x371   : > { %v4632_v18 = vpop.xlane.xlu1 %1236  ;;  %v4634_v40 = vpop.xlane.xlu0 %1234 }
 0x372   : > { %5910 = vst [vmem:[#allocation111_spill] sm:$0xff] %v4632_v18  ;;  %5911 = vst [vmem:[#allocation112_spill] sm:$0xff] %v4634_v40  ;;  %v3126_v61 = vpop.eup %3125  ;;  %3137 = vpow2.f32 %v2166_v33  ;;  %v2125_v33 = vsub.f32 %v4067_v34, %v4588_v0  ;;  %v1741_v6 = vmul.f32 1.442695, %v1705_v10  ;;  %v6013_v0 = vld [vmem:[#allocation18_spill] sm:$0xff] }
 0x373   : > { %3139 = vpow2.f32 %v2164_v53 }
 0x374   : > { %1378 = vadd.xlane.f32.xlu0 %v3118_v22  ;;  %1380 = vadd.xlane.f32.xlu1 %v3120_v57  ;;  %v3128_v22 = vpop.eup %3127  ;;  %v1324_v57 = vmul.f32 1.442695, %v1287_v17  ;;  %v2124_v17 = vsub.f32 %v4072_v36, %v4590_v50 }
 0x375   : > { %v4640_v12 = vpop.xlane.xlu1 %1655  ;;  %v4642_v45 = vpop.xlane.xlu0 %1653 }
 0x376   : > { %5912 = vst [vmem:[#allocation113_spill] sm:$0xff] %v4640_v12  ;;  %5913 = vst [vmem:[#allocation114_spill] sm:$0xff] %v4642_v45  ;;  %v3130_v62 = vpop.eup %3129  ;;  %3141 = vpow2.f32 %v1324_v57  ;;  %v1293_v57 = vsub.f32 %v4085_v48, %v4608_v29  ;;  %v2160_v34 = vmul.f32 1.442695, %v2124_v17 }
 0x377   : > { %3143 = vpow2.f32 %v1322_v58 }
 0x378   : > { %1797 = vadd.xlane.f32.xlu0 %v3122_v28  ;;  %1799 = vadd.xlane.f32.xlu1 %v3124_v11  ;;  %v3132_v28 = vpop.eup %3131  ;;  %v1743_v11 = vmul.f32 1.442695, %v1706_v21  ;;  %v1292_v21 = vsub.f32 %v4090_v51, %v4610_v4 }
 0x379   : > { %v4648_v39 = vpop.xlane.xlu1 %2074  ;;  %v4650_v54 = vpop.xlane.xlu0 %2072 }
 0x37a   : > { %5914 = vst [vmem:[#allocation115_spill] sm:$0xff] %v4648_v39  ;;  %5915 = vst [vmem:[#allocation116_spill] sm:$0xff] %v4650_v54  ;;  %v3134_v47 = vpop.eup %3133  ;;  %3145 = vpow2.f32 %v1743_v11  ;;  %v1712_v11 = vsub.f32 %v4103_v3, %v4616_v27  ;;  %v1334_v48 = vmul.f32 1.442695, %v1292_v21 }
 0x37b   : > { %3147 = vpow2.f32 %v1741_v6 }
 0x37c   : > { %2216 = vadd.xlane.f32.xlu0 %v3126_v61  ;;  %2218 = vadd.xlane.f32.xlu1 %v3128_v22  ;;  %v3136_v61 = vpop.eup %3135  ;;  %v2162_v22 = vmul.f32 1.442695, %v2125_v33  ;;  %v1711_v33 = vsub.f32 %v4108_v14, %v4618_v13 }
 0x37d   : > { %v4656_v44 = vpop.xlane.xlu1 %1248  ;;  %v4658_v59 = vpop.xlane.xlu0 %1246 }
 0x37e   : > { %5916 = vst [vmem:[#allocation117_spill] sm:$0xff] %v4656_v44  ;;  %5917 = vst [vmem:[#allocation118_spill] sm:$0xff] %v4658_v59  ;;  %v3138_v10 = vpop.eup %3137  ;;  %3149 = vpow2.f32 %v2162_v22  ;;  %v2131_v22 = vsub.f32 %v4129_v31, %v4624_v32  ;;  %v1753_v3 = vmul.f32 1.442695, %v1711_v33 }
 0x37f   : > { %3151 = vpow2.f32 %v2160_v34 }
 0x380   : > { %1392 = vadd.xlane.f32.xlu1 %v3130_v62  ;;  %1390 = vadd.xlane.f32.xlu0 %v3132_v28  ;;  %v3140_v62 = vpop.eup %3139  ;;  %v1336_v28 = vmul.f32 1.442695, %v1293_v57  ;;  %v2130_v57 = vsub.f32 %v4134_v38, %v4626_v52  ;;  %v5996_v52 = vld [vmem:[#allocation5_spill] sm:$0xff] }
 0x381   : > { %v4664_v53 = vpop.xlane.xlu1 %1667  ;;  %v4666_v7 = vpop.xlane.xlu0 %1665  ;;  %v2860_v32 = vmul.f32 -1.442695, %v5996_v52 }
 0x382   : > { %5918 = vst [vmem:[#allocation119_spill] sm:$0xff] %v4664_v53  ;;  %5919 = vst [vmem:[#allocation120_spill] sm:$0xff] %v4666_v7  ;;  %v3142_v17 = vpop.eup %3141  ;;  %3153 = vpow2.f32 %v1336_v28  ;;  %v1291_v28 = vsub.f32 %v4147_v19, %v4632_v18  ;;  %v2172_v31 = vmul.f32 1.442695, %v2130_v57 }
 0x383   : > { %3155 = vpow2.f32 %v1334_v48 }
 0x384   : > { %1811 = vadd.xlane.f32.xlu1 %v3134_v47  ;;  %1809 = vadd.xlane.f32.xlu0 %v3136_v61  ;;  %v3144_v47 = vpop.eup %3143  ;;  %v1755_v61 = vmul.f32 1.442695, %v1712_v11  ;;  %v1290_v11 = vsub.f32 %v4152_v16, %v4634_v40 }
 0x385   : > { %v4672_v58 = vpop.xlane.xlu1 %2086  ;;  %v4674_v36 = vpop.xlane.xlu0 %2084 }
 0x386   : > { %5920 = vst [vmem:[#allocation121_spill] sm:$0xff] %v4672_v58  ;;  %5921 = vst [vmem:[#allocation122_spill] sm:$0xff] %v4674_v36  ;;  %v3146_v21 = vpop.eup %3145  ;;  %3157 = vpow2.f32 %v1755_v61  ;;  %v1710_v61 = vsub.f32 %v4159_v49, %v4640_v12  ;;  %v1330_v19 = vmul.f32 1.442695, %v1290_v11 }
 0x387   : > { %3159 = vpow2.f32 %v1753_v3 }
 0x388   : > { %2230 = vadd.xlane.f32.xlu1 %v3138_v10  ;;  %2228 = vadd.xlane.f32.xlu0 %v3140_v62  ;;  %v3148_v10 = vpop.eup %3147  ;;  %v2174_v62 = vmul.f32 1.442695, %v2131_v22  ;;  %v1709_v22 = vsub.f32 %v4164_v2, %v4642_v45 }
 0x389   : > { %v4680_v6 = vpop.xlane.xlu1 %1244  ;;  %v4682_v51 = vpop.xlane.xlu0 %1242 }
 0x38a   : > { %5922 = vst [vmem:[#allocation123_spill] sm:$0xff] %v4680_v6  ;;  %5923 = vst [vmem:[#allocation124_spill] sm:$0xff] %v4682_v51  ;;  %v3150_v33 = vpop.eup %3149  ;;  %3161 = vpow2.f32 %v2174_v62  ;;  %v5930_v62 = vld [vmem:[#allocation37_spill] sm:$0xff]  ;;  %v1749_v49 = vmul.f32 1.442695, %v1709_v22 }
 0x38b   : > { %3163 = vpow2.f32 %v2172_v31  ;;  %v5931_v31 = vld [vmem:[#allocation38_spill] sm:$0xff] }
 0x38c   : > { %1388 = vadd.xlane.f32.xlu1 %v3142_v17  ;;  %1386 = vadd.xlane.f32.xlu0 %v3144_v47  ;;  %v3152_v17 = vpop.eup %3151  ;;  %v1332_v47 = vmul.f32 1.442695, %v1291_v28  ;;  %v2129_v28 = vsub.f32 %v5930_v62, %v4648_v39  ;;  %v2128_v11 = vsub.f32 %v5931_v31, %v4650_v54 }
 0x38d   : > { %v4688_v34 = vpop.xlane.xlu1 %1663  ;;  %v4690_v14 = vpop.xlane.xlu0 %1661 }
 0x38e   : > { %5924 = vst [vmem:[#allocation125_spill] sm:$0xff] %v4688_v34  ;;  %5925 = vst [vmem:[#allocation126_spill] sm:$0xff] %v4690_v14  ;;  %v3154_v57 = vpop.eup %3153  ;;  %3165 = vpow2.f32 %v1332_v47  ;;  %v2170_v12 = vmul.f32 1.442695, %v2129_v28  ;;  %v5934_v47 = vld [vmem:[#allocation39_spill] sm:$0xff] }
 0x38f   : > { %3167 = vpow2.f32 %v1330_v19  ;;  %v5935_v19 = vld [vmem:[#allocation40_spill] sm:$0xff] }
 0x390   : > { %1807 = vadd.xlane.f32.xlu1 %v3146_v21  ;;  %1805 = vadd.xlane.f32.xlu0 %v3148_v10  ;;  %v3156_v21 = vpop.eup %3155  ;;  %v1751_v10 = vmul.f32 1.442695, %v1710_v61  ;;  %v1297_v61 = vsub.f32 %v5934_v47, %v4656_v44  ;;  %v1296_v22 = vsub.f32 %v5935_v19, %v4658_v59 }
 0x391   : > { %v4696_v48 = vpop.xlane.xlu1 %2082  ;;  %v4698_v38 = vpop.xlane.xlu0 %2080 }
 0x392   : > { %5926 = vst [vmem:[#allocation127_spill] sm:$0xff] %v4696_v48  ;;  %5927 = vst [vmem:[#allocation128_spill] sm:$0xff] %v4698_v38  ;;  %3169 = vpow2.f32 %v1751_v10  ;;  %v1344_v39 = vmul.f32 1.442695, %v1297_v61  ;;  %v5938_v10 = vld [vmem:[#allocation41_spill] sm:$0xff] }
 0x393   : > { %3171 = vpow2.f32 %v1749_v49  ;;  %v1716_v28 = vsub.f32 %v5938_v10, %v4664_v53  ;;  %v5939_v49 = vld [vmem:[#allocation42_spill] sm:$0xff] }
 0x394   : > { %2226 = vadd.xlane.f32.xlu1 %v3150_v33  ;;  %2224 = vadd.xlane.f32.xlu0 %v3152_v17  ;;  %v3158_v17 = vpop.eup %3157  ;;  %3173 = vpow2.f32 %v2170_v12  ;;  %v5942_v12 = vld [vmem:[#allocation43_spill] sm:$0xff] }
 0x395   : > { %v4704_v3 = vpop.xlane.xlu1 %1256  ;;  %v4706_v16 = vpop.xlane.xlu0 %1254  ;;  %v1763_v44 = vmul.f32 1.442695, %v1716_v28  ;;  %v2135_v61 = vsub.f32 %v5942_v12, %v4672_v58 }
 0x396   : > { %5928 = vst [vmem:[#allocation129_spill] sm:$0xff] %v4704_v3  ;;  %5929 = vst [vmem:[#allocation130_spill] sm:$0xff] %v4706_v16  ;;  %v3160_v45 = vpop.eup %3159 }
 0x397   : > { %v3162_v31 = vpop.eup %3161  ;;  %v2182_v53 = vmul.f32 1.442695, %v2135_v61 }
 0x398   : > { %1400 = vadd.xlane.f32.xlu1 %v3154_v57  ;;  %1398 = vadd.xlane.f32.xlu0 %v3156_v21  ;;  %v2168_v57 = vmul.f32 1.442695, %v2128_v11  ;;  %v3164_v54 = vpop.eup %3163  ;;  %v1715_v11 = vsub.f32 %v5939_v49, %v4666_v7 }
 0x399   : > { %v4712_v33 = vpop.xlane.xlu1 %1675  ;;  %v4714_v2 = vpop.xlane.xlu0 %1673 }
 0x39a   : > { %5932 = vst [vmem:[#allocation37_spill] sm:$0xff] %v4712_v33  ;;  %5933 = vst [vmem:[#allocation38_spill] sm:$0xff] %v4714_v2  ;;  %3175 = vpow2.f32 %v2168_v57  ;;  %v3166_v19 = vpop.eup %3165  ;;  %v5943_v57 = vld [vmem:[#allocation44_spill] sm:$0xff] }
 0x39b   : > { %v3168_v59 = vpop.eup %3167  ;;  %3177 = vpow2.f32 %v1344_v39  ;;  %v5946_v39 = vld [vmem:[#allocation45_spill] sm:$0xff] }
 0x39c   : > { %1819 = vadd.xlane.f32.xlu1 %v3158_v17  ;;  %1817 = vadd.xlane.f32.xlu0 %v3160_v45  ;;  %v1342_v45 = vmul.f32 1.442695, %v1296_v22  ;;  %v2134_v22 = vsub.f32 %v5943_v57, %v4674_v36  ;;  %v3170_v49 = vpop.eup %3169  ;;  %v1295_v28 = vsub.f32 %v5946_v39, %v4680_v6 }
 0x39d   : > { %v4720_v21 = vpop.xlane.xlu1 %2094  ;;  %v4722_v62 = vpop.xlane.xlu0 %2092 }
 0x39e   : > { %5936 = vst [vmem:[#allocation39_spill] sm:$0xff] %v4720_v21  ;;  %5937 = vst [vmem:[#allocation40_spill] sm:$0xff] %v4722_v62  ;;  %3179 = vpow2.f32 %v1342_v45  ;;  %v3172_v7 = vpop.eup %3171  ;;  %v5947_v45 = vld [vmem:[#allocation46_spill] sm:$0xff]  ;;  %v1340_v58 = vmul.f32 1.442695, %v1295_v28 }
 0x39f   : > { %3181 = vpow2.f32 %v1763_v44  ;;  %v3174_v57 = vpop.eup %3173  ;;  %v5950_v44 = vld [vmem:[#allocation47_spill] sm:$0xff] }
 0x3a0   : > { %2238 = vadd.xlane.f32.xlu1 %v3162_v31  ;;  %2236 = vadd.xlane.f32.xlu0 %v3164_v54  ;;  %v1761_v54 = vmul.f32 1.442695, %v1715_v11  ;;  %v1294_v11 = vsub.f32 %v5947_v45, %v4682_v51  ;;  %v1714_v61 = vsub.f32 %v5950_v44, %v4688_v34 }
 0x3a1   : > { %v4728_v17 = vpop.xlane.xlu1 %1252  ;;  %v4730_v47 = vpop.xlane.xlu0 %1250 }
 0x3a2   : > { %5940 = vst [vmem:[#allocation41_spill] sm:$0xff] %v4728_v17  ;;  %5941 = vst [vmem:[#allocation42_spill] sm:$0xff] %v4730_v47  ;;  %3183 = vpow2.f32 %v1761_v54  ;;  %v5951_v54 = vld [vmem:[#allocation48_spill] sm:$0xff]  ;;  %v1759_v6 = vmul.f32 1.442695, %v1714_v61 }
 0x3a3   : > { %3185 = vpow2.f32 %v2182_v53  ;;  %v5954_v53 = vld [vmem:[#allocation49_spill] sm:$0xff] }
 0x3a4   : > { %1396 = vadd.xlane.f32.xlu1 %v3166_v19  ;;  %1394 = vadd.xlane.f32.xlu0 %v3168_v59  ;;  %v2180_v59 = vmul.f32 1.442695, %v2134_v22  ;;  %v3176_v36 = vpop.eup %3175  ;;  %v1713_v22 = vsub.f32 %v5951_v54, %v4690_v14  ;;  %v2133_v28 = vsub.f32 %v5954_v53, %v4696_v48 }
 0x3a5   : > { %v4736_v31 = vpop.xlane.xlu1 %1671  ;;  %v4738_v10 = vpop.xlane.xlu0 %1669 }
 0x3a6   : > { %5944 = vst [vmem:[#allocation43_spill] sm:$0xff] %v4736_v31  ;;  %5945 = vst [vmem:[#allocation44_spill] sm:$0xff] %v4738_v10  ;;  %3187 = vpow2.f32 %v2180_v59  ;;  %v3178_v45 = vpop.eup %3177  ;;  %v5955_v59 = vld [vmem:[#allocation50_spill] sm:$0xff]  ;;  %v2178_v34 = vmul.f32 1.442695, %v2133_v28 }
 0x3a7   : > { %3189 = vpow2.f32 %v1340_v58  ;;  %v5958_v58 = vld [vmem:[#allocation51_spill] sm:$0xff] }
 0x3a8   : > { %1815 = vadd.xlane.f32.xlu1 %v3170_v49  ;;  %1813 = vadd.xlane.f32.xlu0 %v3172_v7  ;;  %v1338_v7 = vmul.f32 1.442695, %v1294_v11  ;;  %v3180_v51 = vpop.eup %3179  ;;  %v2132_v11 = vsub.f32 %v5955_v59, %v4698_v38  ;;  %v1301_v61 = vsub.f32 %v5958_v58, %v4704_v3 }
 0x3a9   : > { %v4744_v19 = vpop.xlane.xlu1 %2090  ;;  %v4746_v12 = vpop.xlane.xlu0 %2088 }
 0x3aa   : > { %5948 = vst [vmem:[#allocation45_spill] sm:$0xff] %v4744_v19  ;;  %5949 = vst [vmem:[#allocation46_spill] sm:$0xff] %v4746_v12  ;;  %3191 = vpow2.f32 %v1338_v7  ;;  %v3182_v54 = vpop.eup %3181  ;;  %v5959_v7 = vld [vmem:[#allocation52_spill] sm:$0xff]  ;;  %v1352_v48 = vmul.f32 1.442695, %v1301_v61 }
 0x3ab   : > { %3193 = vpow2.f32 %v1759_v6  ;;  %v5962_v6 = vld [vmem:[#allocation53_spill] sm:$0xff] }
 0x3ac   : > { %2234 = vadd.xlane.f32.xlu1 %v3174_v57  ;;  %2232 = vadd.xlane.f32.xlu0 %v3176_v36  ;;  %v1757_v36 = vmul.f32 1.442695, %v1713_v22  ;;  %v3184_v14 = vpop.eup %3183  ;;  %v1300_v22 = vsub.f32 %v5959_v7, %v4706_v16  ;;  %v1720_v28 = vsub.f32 %v5962_v6, %v4712_v33 }
 0x3ad   : > { %v4752_v49 = vpop.xlane.xlu1 %1264  ;;  %v4754_v39 = vpop.xlane.xlu0 %1262 }
 0x3ae   : > { %5952 = vst [vmem:[#allocation47_spill] sm:$0xff] %v4752_v49  ;;  %5953 = vst [vmem:[#allocation48_spill] sm:$0xff] %v4754_v39  ;;  %3195 = vpow2.f32 %v1757_v36  ;;  %v3186_v59 = vpop.eup %3185  ;;  %v5963_v36 = vld [vmem:[#allocation54_spill] sm:$0xff]  ;;  %v1771_v3 = vmul.f32 1.442695, %v1720_v28 }
 0x3af   : > { %3197 = vpow2.f32 %v2178_v34  ;;  %v5966_v34 = vld [vmem:[#allocation55_spill] sm:$0xff] }
 0x3b0   : > { %1408 = vadd.xlane.f32.xlu1 %v3178_v45  ;;  %1406 = vadd.xlane.f32.xlu0 %v3180_v51  ;;  %v2176_v51 = vmul.f32 1.442695, %v2132_v11  ;;  %v3188_v38 = vpop.eup %3187  ;;  %v1719_v11 = vsub.f32 %v5963_v36, %v4714_v2  ;;  %v2139_v61 = vsub.f32 %v5966_v34, %v4720_v21 }
 0x3b1   : > { %v4760_v57 = vpop.xlane.xlu1 %1683  ;;  %v4762_v44 = vpop.xlane.xlu0 %1681 }
 0x3b2   : > { %5956 = vst [vmem:[#allocation49_spill] sm:$0xff] %v4760_v57  ;;  %5957 = vst [vmem:[#allocation50_spill] sm:$0xff] %v4762_v44  ;;  %3199 = vpow2.f32 %v2176_v51  ;;  %v3190_v7 = vpop.eup %3189  ;;  %v5967_v51 = vld [vmem:[#allocation56_spill] sm:$0xff]  ;;  %v2190_v33 = vmul.f32 1.442695, %v2139_v61 }
 0x3b3   : > { %3201 = vpow2.f32 %v1352_v48  ;;  %v5970_v48 = vld [vmem:[#allocation57_spill] sm:$0xff] }
 0x3b4   : > { %1827 = vadd.xlane.f32.xlu1 %v3182_v54  ;;  %1825 = vadd.xlane.f32.xlu0 %v3184_v14  ;;  %v1350_v14 = vmul.f32 1.442695, %v1300_v22  ;;  %v3192_v16 = vpop.eup %3191  ;;  %v2138_v22 = vsub.f32 %v5967_v51, %v4722_v62  ;;  %v1299_v28 = vsub.f32 %v5970_v48, %v4728_v17 }
 0x3b5   : > { %v4768_v45 = vpop.xlane.xlu1 %2102  ;;  %v4770_v53 = vpop.xlane.xlu0 %2100 }
 0x3b6   : > { %5960 = vst [vmem:[#allocation51_spill] sm:$0xff] %v4768_v45  ;;  %5961 = vst [vmem:[#allocation52_spill] sm:$0xff] %v4770_v53  ;;  %3203 = vpow2.f32 %v1350_v14  ;;  %v3194_v36 = vpop.eup %3193  ;;  %v5971_v14 = vld [vmem:[#allocation58_spill] sm:$0xff]  ;;  %v1348_v21 = vmul.f32 1.442695, %v1299_v28 }
 0x3b7   : > { %3205 = vpow2.f32 %v1771_v3  ;;  %v5974_v3 = vld [vmem:[#allocation59_spill] sm:$0xff] }
 0x3b8   : > { %2246 = vadd.xlane.f32.xlu1 %v3186_v59  ;;  %2244 = vadd.xlane.f32.xlu0 %v3188_v38  ;;  %v1769_v38 = vmul.f32 1.442695, %v1719_v11  ;;  %v3196_v2 = vpop.eup %3195  ;;  %v1298_v11 = vsub.f32 %v5971_v14, %v4730_v47  ;;  %v1718_v61 = vsub.f32 %v5974_v3, %v4736_v31 }
 0x3b9   : > { %v4776_v54 = vpop.xlane.xlu1 %1260  ;;  %v4778_v58 = vpop.xlane.xlu0 %1258 }
 0x3ba   : > { %5964 = vst [vmem:[#allocation53_spill] sm:$0xff] %v4776_v54  ;;  %5965 = vst [vmem:[#allocation54_spill] sm:$0xff] %v4778_v58  ;;  %3207 = vpow2.f32 %v1769_v38  ;;  %v3198_v51 = vpop.eup %3197  ;;  %v5975_v38 = vld [vmem:[#allocation60_spill] sm:$0xff]  ;;  %v1767_v17 = vmul.f32 1.442695, %v1718_v61 }
 0x3bb   : > { %3209 = vpow2.f32 %v2190_v33  ;;  %v5978_v33 = vld [vmem:[#allocation61_spill] sm:$0xff] }
 0x3bc   : > { %1404 = vadd.xlane.f32.xlu1 %v3190_v7  ;;  %1402 = vadd.xlane.f32.xlu0 %v3192_v16  ;;  %v2188_v16 = vmul.f32 1.442695, %v2138_v22  ;;  %v3200_v62 = vpop.eup %3199  ;;  %v1717_v22 = vsub.f32 %v5975_v38, %v4738_v10  ;;  %v2137_v28 = vsub.f32 %v5978_v33, %v4744_v19 }
 0x3bd   : > { %v4784_v59 = vpop.xlane.xlu1 %1679  ;;  %v4786_v6 = vpop.xlane.xlu0 %1677 }
 0x3be   : > { %5968 = vst [vmem:[#allocation55_spill] sm:$0xff] %v4784_v59  ;;  %5969 = vst [vmem:[#allocation56_spill] sm:$0xff] %v4786_v6  ;;  %3211 = vpow2.f32 %v2188_v16  ;;  %v3202_v14 = vpop.eup %3201  ;;  %v5979_v16 = vld [vmem:[#allocation62_spill] sm:$0xff]  ;;  %v2186_v31 = vmul.f32 1.442695, %v2137_v28 }
 0x3bf   : > { %3213 = vpow2.f32 %v1348_v21  ;;  %v5982_v21 = vld [vmem:[#allocation63_spill] sm:$0xff] }
 0x3c0   : > { %1823 = vadd.xlane.f32.xlu1 %v3194_v36  ;;  %1821 = vadd.xlane.f32.xlu0 %v3196_v2  ;;  %v1346_v2 = vmul.f32 1.442695, %v1298_v11  ;;  %v3204_v47 = vpop.eup %3203  ;;  %v2136_v11 = vsub.f32 %v5979_v16, %v4746_v12  ;;  %v1305_v61 = vsub.f32 %v5982_v21, %v4752_v49 }
 0x3c1   : > { %v4792_v7 = vpop.xlane.xlu1 %2098  ;;  %v4794_v34 = vpop.xlane.xlu0 %2096 }
 0x3c2   : > { %5972 = vst [vmem:[#allocation57_spill] sm:$0xff] %v4792_v7  ;;  %5973 = vst [vmem:[#allocation58_spill] sm:$0xff] %v4794_v34  ;;  %3215 = vpow2.f32 %v1346_v2  ;;  %v3206_v38 = vpop.eup %3205  ;;  %v5983_v2 = vld [vmem:[#allocation64_spill] sm:$0xff]  ;;  %v1360_v19 = vmul.f32 1.442695, %v1305_v61 }
 0x3c3   : > { %3217 = vpow2.f32 %v1767_v17  ;;  %v5986_v17 = vld [vmem:[#allocation65_spill] sm:$0xff] }
 0x3c4   : > { %2242 = vadd.xlane.f32.xlu1 %v3198_v51  ;;  %2240 = vadd.xlane.f32.xlu0 %v3200_v62  ;;  %v1765_v62 = vmul.f32 1.442695, %v1717_v22  ;;  %v3208_v10 = vpop.eup %3207  ;;  %v1304_v22 = vsub.f32 %v5983_v2, %v4754_v39  ;;  %v1724_v28 = vsub.f32 %v5986_v17, %v4760_v57  ;;  %v5990_v39 = vld [vmem:[#allocation4_spill] sm:$0xff] }
 0x3c5   : > { %v4800_v36 = vpop.xlane.xlu1 %1272  ;;  %v4802_v48 = vpop.xlane.xlu0 %1270  ;;  %v2859_v49 = vmul.f32 -1.442695, %v5990_v39 }
 0x3c6   : > { %5976 = vst [vmem:[#allocation59_spill] sm:$0xff] %v4800_v36  ;;  %5977 = vst [vmem:[#allocation60_spill] sm:$0xff] %v4802_v48  ;;  %3219 = vpow2.f32 %v1765_v62  ;;  %v3210_v16 = vpop.eup %3209  ;;  %v5987_v62 = vld [vmem:[#allocation66_spill] sm:$0xff]  ;;  %v1779_v18 = vmul.f32 1.442695, %v1724_v28  ;;  %v5997_v28 = vld [vmem:[#allocation8_spill] sm:$0xff] }
 0x3c7   : > { %3221 = vpow2.f32 %v2186_v31  ;;  %v5991_v31 = vld [vmem:[#allocation7_spill] sm:$0xff]  ;;  %v2858_v13 = vmul.f32 -1.442695, %v5997_v28 }
 0x3c8   : > { %1416 = vadd.xlane.f32.xlu1 %v3202_v14  ;;  %1414 = vadd.xlane.f32.xlu0 %v3204_v47  ;;  %v2184_v47 = vmul.f32 1.442695, %v2136_v11  ;;  %v3212_v12 = vpop.eup %3211  ;;  %v1723_v11 = vsub.f32 %v5987_v62, %v4762_v44  ;;  %v2857_v61 = vmul.f32 -1.442695, %v5991_v31 }
 0x3c9   : > { %v4808_v51 = vpop.xlane.xlu1 %1691  ;;  %v4810_v3 = vpop.xlane.xlu0 %1689 }
 0x3ca   : > { %5980 = vst [vmem:[#allocation61_spill] sm:$0xff] %v4808_v51  ;;  %5981 = vst [vmem:[#allocation62_spill] sm:$0xff] %v4810_v3  ;;  %3223 = vpow2.f32 %v2184_v47  ;;  %v3214_v2 = vpop.eup %3213  ;;  %v1777_v47 = vmul.f32 1.442695, %v1723_v11 }
 0x3cb   : > { %3225 = vpow2.f32 %v1360_v19 }
 0x3cc   : > { %1835 = vadd.xlane.f32.xlu1 %v3206_v38  ;;  %1833 = vadd.xlane.f32.xlu0 %v3208_v10  ;;  %v1358_v10 = vmul.f32 1.442695, %v1304_v22  ;;  %v3216_v40 = vpop.eup %3215  ;;  %v5993_v22 = vld [vmem:[#allocation68_spill] sm:$0xff] }
 0x3cd   : > { %v4816_v14 = vpop.xlane.xlu1 %2110  ;;  %v4818_v33 = vpop.xlane.xlu0 %2108  ;;  %v2142_v17 = vsub.f32 %v5993_v22, %v4770_v53 }
 0x3ce   : > { %5984 = vst [vmem:[#allocation63_spill] sm:$0xff] %v4816_v14  ;;  %5985 = vst [vmem:[#allocation64_spill] sm:$0xff] %v4818_v33  ;;  %3227 = vpow2.f32 %v1358_v10  ;;  %v3218_v57 = vpop.eup %3217 }
 0x3cf   : > { %3229 = vpow2.f32 %v2859_v49  ;;  %v2196_v11 = vmul.f32 1.442695, %v2142_v17  ;;  %v6004_v17 = vld [vmem:[#allocation72_spill] sm:$0xff] }
 0x3d0   : > { %2254 = vadd.xlane.f32.xlu1 %v3210_v16  ;;  %2252 = vadd.xlane.f32.xlu0 %v3212_v12  ;;  %v5992_v16 = vld [vmem:[#allocation67_spill] sm:$0xff]  ;;  %v3220_v19 = vpop.eup %3219  ;;  %3231 = vpow2.f32 %v2857_v61  ;;  %v6002_v61 = vld [vmem:[#allocation10_spill] sm:$0xff] }
 0x3d1   : > { %v4824_v38 = vpop.xlane.xlu1 %1268  ;;  %v4826_v21 = vpop.xlane.xlu0 %1266  ;;  %v2143_v12 = vsub.f32 %v5992_v16, %v4768_v45  ;;  %3233 = vpow2.f32 %v1779_v18  ;;  %v5999_v16 = vld [vmem:[#allocation70_spill] sm:$0xff]  ;;  %v2864_v27 = vmul.f32 -1.442695, %v6002_v61 }
 0x3d2   : > { %5988 = vst [vmem:[#allocation65_spill] sm:$0xff] %v4824_v38  ;;  %5989 = vst [vmem:[#allocation66_spill] sm:$0xff] %v4826_v21  ;;  %3235 = vpow2.f32 %v1777_v47  ;;  %v1302_v22 = vsub.f32 %v5999_v16, %v4778_v58  ;;  %v3222_v45 = vpop.eup %3221 }
 0x3d3   : > { %3237 = vpow2.f32 %v2860_v32 }
 0x3d4   : > { %1412 = vadd.xlane.f32.xlu1 %v3214_v2  ;;  %1410 = vadd.xlane.f32.xlu0 %v3216_v40  ;;  %v2198_v2 = vmul.f32 1.442695, %v2143_v12  ;;  %v5998_v40 = vld [vmem:[#allocation69_spill] sm:$0xff]  ;;  %v3224_v18 = vpop.eup %3223  ;;  %3239 = vpow2.f32 %v2858_v13  ;;  %v1354_v47 = vmul.f32 1.442695, %v1302_v22 }
 0x3d5   : > { %v4834_v62 = vpop.xlane.xlu1 %1687  ;;  %v4836_v44 = vpop.xlane.xlu0 %1685  ;;  %v1303_v10 = vsub.f32 %v5998_v40, %v4776_v54  ;;  %v1721_v40 = vsub.f32 %v6004_v17, %v4786_v6  ;;  %v6007_v54 = vld [vmem:[#allocation9_spill] sm:$0xff]  ;;  %v6010_v17 = vld [vmem:[#allocation74_spill] sm:$0xff] }
 0x3d6   : > { %5994 = vst [vmem:[#allocation4_spill] sm:$0xff] %v4834_v62  ;;  %5995 = vst [vmem:[#allocation7_spill] sm:$0xff] %v4836_v44  ;;  %3241 = vpow2.f32 %v2198_v2  ;;  %v3226_v32 = vpop.eup %3225  ;;  %v2863_v4 = vmul.f32 -1.442695, %v6007_v54  ;;  %v6008_v2 = vld [vmem:[#allocation16_spill] sm:$0xff]  ;;  %v2140_v6 = vsub.f32 %v6010_v17, %v4794_v34  ;;  %v6015_v34 = vld [vmem:[#allocation77_spill] sm:$0xff] }
 0x3d7   : > { %v1356_v12 = vmul.f32 1.442695, %v1303_v10  ;;  %3243 = vpow2.f32 %v2196_v11  ;;  %v2861_v10 = vmul.f32 -1.442695, %v6008_v2  ;;  %v6009_v11 = vld [vmem:[#allocation73_spill] sm:$0xff] }
 0x3d8   : > { %1831 = vadd.xlane.f32.xlu1 %v3218_v57  ;;  %1829 = vadd.xlane.f32.xlu0 %v3220_v19  ;;  %v6003_v57 = vld [vmem:[#allocation71_spill] sm:$0xff]  ;;  %3245 = vpow2.f32 %v2864_v27  ;;  %v3228_v13 = vpop.eup %3227  ;;  %v2141_v22 = vsub.f32 %v6009_v11, %v4792_v7  ;;  %v2192_v17 = vmul.f32 1.442695, %v2140_v6  ;;  %v1308_v7 = vsub.f32 %v6015_v34, %v4802_v48  ;;  %v6017_v34 = vld [vmem:[#allocation80_spill] sm:$0xff] }
 0x3d9   : > { %v4844_v53 = vpop.xlane.xlu1 %2106  ;;  %v4846_v49 = vpop.xlane.xlu0 %2104  ;;  %v1722_v19 = vsub.f32 %v6003_v57, %v4784_v59  ;;  %3247 = vpow2.f32 %v1356_v12  ;;  %v1773_v57 = vmul.f32 1.442695, %v1721_v40  ;;  %v2862_v12 = vmul.f32 -1.442695, %v6013_v0 }
 0x3da   : > { %6000 = vst [vmem:[#allocation67_spill] sm:$0xff] %v4844_v53  ;;  %6001 = vst [vmem:[#allocation68_spill] sm:$0xff] %v4846_v49  ;;  %v3230_v29 = vpop.eup %3229  ;;  %3249 = vpow2.f32 %v1354_v47  ;;  %v6014_v47 = vld [vmem:[#allocation76_spill] sm:$0xff]  ;;  %v1366_v6 = vmul.f32 1.442695, %v1308_v7 }
 0x3db   : > { %3251 = vpow2.f32 %v2863_v4  ;;  %v2539_v9 = vadd.f32 1.0, %v3230_v29  ;;  %v1309_v40 = vsub.f32 %v6014_v47, %v4800_v36  ;;  %v1727_v47 = vsub.f32 %v6017_v34, %v4810_v3  ;;  %v6022_v34 = vld [vmem:[#allocation86_spill] sm:$0xff] }
 0x3dc   : > { %2250 = vadd.xlane.f32.xlu1 %v3222_v45  ;;  %2248 = vadd.xlane.f32.xlu0 %v3224_v18  ;;  %v1775_v45 = vmul.f32 1.442695, %v1722_v19  ;;  %v3232_v18 = vpop.eup %3231  ;;  %3253 = vpow2.f32 %v2861_v10  ;;  %v1307_v3 = vsub.f32 %v6022_v34, %v4824_v38 }
 0x3dd   : > { %v4853_v16 = vpop.xlane.xlu1 %1280  ;;  %v4855_v58 = vpop.xlane.xlu0 %1278  ;;  %v2537_v10 = vadd.f32 1.0, %v3232_v18 }
 0x3de   : > { %6005 = vst [vmem:[#allocation5_spill] sm:$0xff] %v4853_v16  ;;  %6006 = vst [vmem:[#allocation8_spill] sm:$0xff] %v4855_v58  ;;  %v3234_v50 = vpop.eup %3233  ;;  %3255 = vpow2.f32 %v1775_v45 }
 0x3df   : > { %v3236_v19 = vpop.eup %3235  ;;  %3257 = vpow2.f32 %v1773_v57 }
 0x3e0   : > { %1424 = vadd.xlane.f32.xlu1 %v3226_v32  ;;  %1422 = vadd.xlane.f32.xlu0 %v3228_v13  ;;  %v3238_v11 = vpop.eup %3237  ;;  %v2194_v32 = vmul.f32 1.442695, %v2141_v22  ;;  %3259 = vpow2.f32 %v2862_v12 }
 0x3e1   : > { %v4863_v59 = vpop.xlane.xlu1 %1699  ;;  %v4865_v27 = vpop.xlane.xlu0 %1697  ;;  %3261 = vrcp.f32 %v2539_v9  ;;  %v2540_v22 = vadd.f32 1.0, %v3238_v11  ;;  %v6020_v11 = vld [vmem:[#allocation82_spill] sm:$0xff] }
 0x3e2   : > { %6011 = vst [vmem:[#allocation69_spill] sm:$0xff] %v4863_v59  ;;  %6012 = vst [vmem:[#allocation70_spill] sm:$0xff] %v4865_v27  ;;  %v3240_v13 = vpop.eup %3239  ;;  %3263 = vpow2.f32 %v2194_v32  ;;  %v2147_v32 = vsub.f32 %v6020_v11, %v4816_v14  ;;  %v6023_v11 = vld [vmem:[#allocation87_spill] sm:$0xff] }
 0x3e3   : > { %v3242_v29 = vpop.eup %3241  ;;  %3265 = vpow2.f32 %v2192_v17  ;;  %v2538_v9 = vadd.f32 1.0, %v3240_v13  ;;  %v1785_v13 = vmul.f32 1.442695, %v1727_v47 }
 0x3e4   : > { %1843 = vadd.xlane.f32.xlu1 %v3234_v50  ;;  %1841 = vadd.xlane.f32.xlu0 %v3236_v19  ;;  %v3244_v45 = vpop.eup %3243  ;;  %v1368_v50 = vmul.f32 1.442695, %v1309_v40  ;;  %v6016_v19 = vld [vmem:[#allocation79_spill] sm:$0xff]  ;;  %3267 = vrcp.f32 %v2537_v10 }
 0x3e5   : > { %v4872_v4 = vpop.xlane.xlu1 %2118  ;;  %v4874_v46 = vpop.xlane.xlu0 %2116  ;;  %v1728_v57 = vsub.f32 %v6016_v19, %v4808_v51  ;;  %3269 = vrcp.f32 %v2540_v22  ;;  %v1306_v22 = vsub.f32 %v6023_v11, %v4826_v21  ;;  %v1364_v11 = vmul.f32 1.442695, %v1307_v3  ;;  %v6026_v3 = vld [vmem:[#allocation90_spill] sm:$0xff] }
 0x3e6   : > { %v3246_v2 = vpop.eup %3245  ;;  %3271 = vpow2.f32 %v1368_v50  ;;  %v2206_v50 = vmul.f32 1.442695, %v2147_v32 }
 0x3e7   : > { %v3248_v12 = vpop.eup %3247  ;;  %v2544_v19 = vadd.f32 1.0, %v3246_v2  ;;  %3273 = vpow2.f32 %v1366_v6 }
 0x3e8   : > { %2262 = vadd.xlane.f32.xlu1 %v3242_v29  ;;  %2260 = vadd.xlane.f32.xlu0 %v3244_v45  ;;  %v3250_v40 = vpop.eup %3249  ;;  %v6021_v29 = vld [vmem:[#allocation83_spill] sm:$0xff]  ;;  %v1787_v45 = vmul.f32 1.442695, %v1728_v57  ;;  %3275 = vrcp.f32 %v2538_v9  ;;  %v6024_v57 = vld [vmem:[#allocation88_spill] sm:$0xff]  ;;  %v1362_v9 = vmul.f32 1.442695, %v1306_v22 }
 0x3e9   : > { %v4880_v48 = vpop.xlane.xlu1 %1276  ;;  %v4882_v18 = vpop.xlane.xlu0 %1274  ;;  %v2146_v17 = vsub.f32 %v6021_v29, %v4818_v33  ;;  %v1726_v33 = vsub.f32 %v6024_v57, %v4834_v62  ;;  %3277 = vrcp.f32 %v2544_v19  ;;  %v6027_v22 = vld [vmem:[#allocation91_spill] sm:$0xff]  ;;  %v6028_v62 = vld [vmem:[#allocation92_spill] sm:$0xff] }
 0x3ea   : > { %6018 = vst [vmem:[#allocation10_spill] sm:$0xff] %v4880_v48  ;;  %6019 = vst [vmem:[#allocation71_spill] sm:$0xff] %v4882_v18  ;;  %v4888_v7 = vpop.eup %3251  ;;  %3279 = vpow2.f32 %v1787_v45  ;;  %v2145_v45 = vsub.f32 %v6026_v3, %v4844_v53  ;;  %v1313_v3 = vsub.f32 %v6028_v62, %v4853_v16  ;;  %v6030_v62 = vld [vmem:[#allocation94_spill] sm:$0xff] }
 0x3eb   : > { %v4892_v10 = vpop.eup %3253  ;;  %3281 = vpow2.f32 %v1785_v13  ;;  %v1783_v19 = vmul.f32 1.442695, %v1726_v33 }
 0x3ec   : > { %1420 = vadd.xlane.f32.xlu1 %v3248_v12  ;;  %1418 = vadd.xlane.f32.xlu0 %v3250_v40  ;;  %v3256_v29 = vpop.eup %3255  ;;  %v2204_v12 = vmul.f32 1.442695, %v2146_v17  ;;  %v6025_v40 = vld [vmem:[#allocation89_spill] sm:$0xff]  ;;  %3283 = vpow2.f32 %v2206_v50  ;;  %v1376_v51 = vmul.f32 1.442695, %v1313_v3  ;;  %v1311_v3 = vsub.f32 %v4555_v26, %v4880_v48 }
 0x3ed   : > { %v4896_v2 = vpop.xlane.xlu1 %1695  ;;  %v4898_v14 = vpop.xlane.xlu0 %1693  ;;  %v1725_v6 = vsub.f32 %v6025_v40, %v4836_v44 }
 0x3ee   : > { %v3258_v34 = vpop.eup %3257  ;;  %3285 = vpow2.f32 %v2204_v12 }
 0x3ef   : > { %v4904_v47 = vpop.eup %3259  ;;  %v1781_v40 = vmul.f32 1.442695, %v1725_v6  ;;  %3287 = vpow2.f32 %v1364_v11  ;;  %v2202_v11 = vmul.f32 1.442695, %v2145_v45 }
 0x3f0   : > { %1839 = vadd.xlane.f32.xlu1 %v3256_v29  ;;  %1837 = vadd.xlane.f32.xlu0 %v3258_v34  ;;  %v4906_v21 = vpop.eup %3261  ;;  %3289 = vpow2.f32 %v1362_v9  ;;  %v2144_v29 = vsub.f32 %v6027_v22, %v4846_v49 }
 0x3f1   : > { %v4908_v32 = vpop.xlane.xlu1 %2114  ;;  %v4910_v38 = vpop.xlane.xlu0 %2112  ;;  %3291 = vpow2.f32 %v1783_v19 }
 0x3f2   : > { %v3264_v57 = vpop.eup %3263  ;;  %3293 = vpow2.f32 %v1781_v40  ;;  %v2200_v9 = vmul.f32 1.442695, %v2144_v29 }
 0x3f3   : > { %v3266_v17 = vpop.eup %3265 }
 0x3f4   : > { %v4912_v44 = vpop.eup %3267  ;;  %2258 = vadd.xlane.f32.xlu1 %v3264_v57  ;;  %2256 = vadd.xlane.f32.xlu0 %v3266_v17  ;;  %v6029_v17 = vld [vmem:[#allocation93_spill] sm:$0xff] }
 0x3f5   : > { %v4916_v13 = vpop.eup %3269  ;;  %v1385_v34 = vpop.xlane.xlu1 %1384  ;;  %v1312_v22 = vsub.f32 %v6029_v17, %v4855_v58 }
 0x3f6   : > { %v1383_v50 = vpop.xlane.xlu0 %1382  ;;  %v3272_v33 = vpop.eup %3271  ;;  %3295 = vlog2.f32 %v1385_v34  ;;  %v1732_v34 = vsub.f32 %v6030_v62, %v4863_v59 }
 0x3f7   : > { %v3274_v12 = vpop.eup %3273  ;;  %3297 = vlog2.f32 %v1383_v50  ;;  %v1374_v29 = vmul.f32 1.442695, %v1312_v22 }
 0x3f8   : > { %v4920_v6 = vpop.eup %3275  ;;  %1432 = vadd.xlane.f32.xlu1 %v3272_v33  ;;  %1430 = vadd.xlane.f32.xlu0 %v3274_v12  ;;  %v6031_v12 = vld [vmem:[#allocation95_spill] sm:$0xff] }
 0x3f9   : > { %v4924_v57 = vpop.eup %3277  ;;  %v1804_v49 = vpop.xlane.xlu1 %1803  ;;  %v1731_v50 = vsub.f32 %v6031_v12, %v4865_v27  ;;  %v1372_v27 = vmul.f32 1.442695, %v1311_v3 }
 0x3fa   : > { %v1802_v19 = vpop.xlane.xlu0 %1801  ;;  %v3280_v53 = vpop.eup %3279  ;;  %3299 = vlog2.f32 %v1804_v49 }
 0x3fb   : > { %v3282_v40 = vpop.eup %3281  ;;  %3301 = vlog2.f32 %v1802_v19  ;;  %v1793_v22 = vmul.f32 1.442695, %v1731_v50 }
 0x3fc   : > { %v3284_v45 = vpop.eup %3283  ;;  %3303 = vpow2.f32 %v2202_v11  ;;  %1851 = vadd.xlane.f32.xlu1 %v3280_v53  ;;  %1849 = vadd.xlane.f32.xlu0 %v3282_v40  ;;  %v1795_v11 = vmul.f32 1.442695, %v1732_v34  ;;  %v6033_v34 = vld [vmem:[#allocation78_spill] sm:$0xff] }
 0x3fd   : > { %v3286_v33 = vpop.eup %3285  ;;  %3305 = vpow2.f32 %v2200_v9  ;;  %v2223_v17 = vpop.xlane.xlu1 %2222  ;;  %v1927_v9 = vsub.f32 %v5990_v39, %v4396_v55  ;;  %v1509_v26 = vsub.f32 %v5996_v52, %v6033_v34  ;;  %v1310_v55 = vsub.f32 %v4560_v8, %v4882_v18 }
 0x3fe   : > { %v2221_v58 = vpop.xlane.xlu0 %2220  ;;  %v3288_v16 = vpop.eup %3287  ;;  %3307 = vlog2.f32 %v2223_v17  ;;  %v6032_v17 = vld [vmem:[#allocation75_spill] sm:$0xff] }
 0x3ff   : > { %v3290_v49 = vpop.eup %3289  ;;  %3309 = vlog2.f32 %v2221_v58  ;;  %v1508_v58 = vsub.f32 %v5990_v39, %v6032_v17 }
 0x400   : > { %v3292_v19 = vpop.eup %3291  ;;  %3311 = vpow2.f32 %v1376_v51  ;;  %2270 = vadd.xlane.f32.xlu1 %v3284_v45  ;;  %2268 = vadd.xlane.f32.xlu0 %v3286_v33  ;;  %v2346_v51 = vsub.f32 %v5990_v39, %v4412_v63  ;;  %v6034_v33 = vld [vmem:[#allocation81_spill] sm:$0xff] }
 0x401   : > { %v3294_v53 = vpop.eup %3293  ;;  %3313 = vpow2.f32 %v1374_v29  ;;  %v1381_v40 = vpop.xlane.xlu1 %1380  ;;  %v1928_v48 = vsub.f32 %v5996_v52, %v6034_v33 }
 0x402   : > { %v1379_v62 = vpop.xlane.xlu0 %1378  ;;  %v3296_v12 = vpop.eup %3295  ;;  %3315 = vlog2.f32 %v1381_v40  ;;  %v6035_v40 = vld [vmem:[#allocation84_spill] sm:$0xff] }
 0x403   : > { %v3298_v45 = vpop.eup %3297  ;;  %v1449_v29 = vmul.f32 0.6931472, %v3296_v12  ;;  %3317 = vlog2.f32 %v1379_v62  ;;  %v2347_v59 = vsub.f32 %v5996_v52, %v6035_v40  ;;  %v1926_v62 = vsub.f32 %v5997_v28, %v4460_v23 }
 0x404   : > { %v3300_v50 = vpop.eup %3299  ;;  %3319 = vpow2.f32 %v1795_v11  ;;  %v1447_v63 = vmul.f32 0.6931472, %v3298_v45  ;;  %1428 = vadd.xlane.f32.xlu1 %v3288_v16  ;;  %1426 = vadd.xlane.f32.xlu0 %v3290_v49  ;;  %v1507_v16 = vsub.f32 %v5997_v28, %v4478_v56  ;;  %v1370_v49 = vmul.f32 1.442695, %v1310_v55  ;;  %v6036_v45 = vld [vmem:[#allocation2_spill] sm:$0xff] }
 0x405   : > { %v3302_v34 = vpop.eup %3301  ;;  %3321 = vpow2.f32 %v1793_v22  ;;  %v1541_v33 = vsub.f32 %v1509_v26, %v1449_v29  ;;  %v1868_v36 = vmul.f32 0.6931472, %v3300_v50  ;;  %v1800_v24 = vpop.xlane.xlu1 %1799  ;;  %v1730_v26 = vsub.f32 %v4575_v5, %v4896_v2 }
 0x406   : > { %v1798_v8 = vpop.xlane.xlu0 %1797  ;;  %v3304_v12 = vpop.eup %3303  ;;  %v1540_v18 = vsub.f32 %v1508_v58, %v1447_v63  ;;  %v1866_v17 = vmul.f32 0.6931472, %v3302_v34  ;;  %3323 = vlog2.f32 %v1800_v24  ;;  %v1729_v58 = vsub.f32 %v4580_v1, %v4898_v14  ;;  %v6038_v1 = vld [vmem:[#allocation96_spill] sm:$0xff] }
 0x407   : > { %v3306_v11 = vpop.eup %3305  ;;  %v1960_v3 = vsub.f32 %v1928_v48, %v1868_v36  ;;  %3325 = vlog2.f32 %v1798_v8  ;;  %v1573_v29 = vsel %vm1184_vm5, %v1541_v33, 0.0  ;;  %vm2440_vm9 = vcmp.eq.s32.totalorder %v6036_v45, 35  ;;  %v6039_v33 = vld [vmem:[#allocation103_spill] sm:$0xff] }
 0x408   : > { %v3308_v22 = vpop.eup %3307  ;;  %3327 = vpow2.f32 %v1372_v27  ;;  %v1959_v50 = vsub.f32 %v1927_v9, %v1866_v17  ;;  %1847 = vadd.xlane.f32.xlu1 %v3292_v19  ;;  %1845 = vadd.xlane.f32.xlu0 %v3294_v53  ;;  %v1572_v56 = vsel %vm1184_vm5, %v1540_v18, 0.0  ;;  %v2151_v17 = vsub.f32 %v6038_v1, %v4872_v4 }
 0x409   : > { %v3310_v24 = vpop.eup %3309  ;;  %v1992_v48 = vsel %vm3851_vm4, %v1960_v3, %v1573_v29  ;;  %v2287_v27 = vmul.f32 0.6931472, %v3308_v22  ;;  %v2219_v55 = vpop.xlane.xlu1 %2218  ;;  %vm2665_vm10 = vcmp.eq.s32.totalorder %v6036_v45, 36  ;;  %v1791_v40 = vmul.f32 1.442695, %v1730_v26 }
 0x40a   : > { %v2217_v63 = vpop.xlane.xlu0 %2216  ;;  %v3312_v5 = vpop.eup %3311  ;;  %v1991_v9 = vsel %vm3851_vm4, %v1959_v50, %v1572_v56  ;;  %v2285_v19 = vmul.f32 0.6931472, %v3310_v24  ;;  %3329 = vlog2.f32 %v2219_v55  ;;  %v2149_v8 = vsub.f32 %v6039_v33, %v4908_v32  ;;  %v6040_v50 = vld [vmem:[#allocation104_spill] sm:$0xff] }
 0x40b   : > { %v3314_v53 = vpop.eup %3313  ;;  %v2379_v18 = vsub.f32 %v2347_v59, %v2287_v27  ;;  %3331 = vlog2.f32 %v2217_v63  ;;  %v1789_v29 = vmul.f32 1.442695, %v1729_v58  ;;  %v2148_v59 = vsub.f32 %v6040_v50, %v4910_v38  ;;  %v6042_v63 = vld [vmem:[#allocation97_spill] sm:$0xff] }
 0x40c   : > { %v3316_v34 = vpop.eup %3315  ;;  %3333 = vpow2.f32 %v1370_v49  ;;  %v2378_v3 = vsub.f32 %v2346_v51, %v2285_v19  ;;  %2266 = vadd.xlane.f32.xlu1 %v3304_v12  ;;  %2264 = vadd.xlane.f32.xlu0 %v3306_v11  ;;  %v2150_v19 = vsub.f32 %v6042_v63, %v4874_v46 }
 0x40d   : > { %v3318_v22 = vpop.eup %3317  ;;  %v2411_v49 = vsel %vm3876_vm8, %v2379_v18, %v1992_v48  ;;  %v1445_v26 = vmul.f32 0.6931472, %v3316_v34  ;;  %v1393_v56 = vpop.xlane.xlu1 %1392  ;;  %v2210_v18 = vmul.f32 1.442695, %v2149_v8 }
 0x40e   : > { %v1391_v27 = vpop.xlane.xlu0 %1390  ;;  %v3320_v51 = vpop.eup %3319  ;;  %v2636_v12 = vsel %vm2440_vm9, %v4916_v13, %v2411_v49  ;;  %v2410_v11 = vsel %vm3876_vm8, %v2378_v3, %v1991_v9  ;;  %v1443_v55 = vmul.f32 0.6931472, %v3318_v22  ;;  %3335 = vlog2.f32 %v1393_v56  ;;  %v6044_v49 = vld [vmem:[#allocation85_spill] sm:$0xff] }
 0x40f   : > { %v3322_v58 = vpop.eup %3321  ;;  %v2669_v48 = vsel %vm2665_vm10, %v5996_v52, %v2636_v12  ;;  %v2635_v1 = vsel %vm2440_vm9, %v4906_v21, %v2410_v11  ;;  %3337 = vlog2.f32 %v1391_v27  ;;  %v1539_v34 = vsub.f32 %v1507_v16, %v1445_v26 }
 0x410   : > { %v3324_v13 = vpop.eup %3323  ;;  %3339 = vpow2.f32 %v1791_v40  ;;  %2701 = vst [vmem:[%s4976_s17 + $0x18] sm:$0xff] %v2669_v48  ;;  %v2668_v9 = vsel %vm2665_vm10, %v5990_v39, %v2635_v1  ;;  %1440 = vadd.xlane.f32.xlu1 %v3312_v5  ;;  %1438 = vadd.xlane.f32.xlu0 %v3314_v53  ;;  %v2208_v3 = vmul.f32 1.442695, %v2148_v59  ;;  %v6043_v52 = vsub.f32 %v5991_v31, %v4430_v15  ;;  %v6045_v1 = vld [vmem:[#allocation26_spill] sm:$0xff] }
 0x411   : > { %v3326_v33 = vpop.eup %3325  ;;  %3341 = vpow2.f32 %v1789_v29  ;;  %2700 = vst [vmem:[%s4976_s17 + $0x10] sm:$0xff] %v2668_v9  ;;  %v1864_v22 = vmul.f32 0.6931472, %v3324_v13  ;;  %v1812_v50 = vpop.xlane.xlu1 %1811  ;;  %v1925_v56 = vsub.f32 %v5991_v31, %v6044_v49  ;;  %v2345_v39 = vsub.f32 %v5997_v28, %v4476_v41 }
 0x412   : > { %v1538_v21 = vsub.f32 %v6043_v52, %v1443_v55  ;;  %v1810_v40 = vpop.xlane.xlu0 %1809  ;;  %v3328_v8 = vpop.eup %3327  ;;  %v1862_v27 = vmul.f32 0.6931472, %v3326_v33  ;;  %3343 = vlog2.f32 %v1812_v50  ;;  %v2214_v16 = vmul.f32 1.442695, %v2151_v17 }
 0x413   : > { %v1958_v5 = vsub.f32 %v1926_v62, %v1864_v22  ;;  %3345 = vlog2.f32 %v1810_v40  ;;  %v2212_v53 = vmul.f32 1.442695, %v2150_v19  ;;  %v1571_v29 = vsel %vm1184_vm5, %v1539_v34, 0.0 }
 0x414   : > { %v3330_v15 = vpop.eup %3329  ;;  %3347 = vpow2.f32 %v2210_v18  ;;  %v1957_v59 = vsub.f32 %v1925_v56, %v1862_v27  ;;  %1859 = vadd.xlane.f32.xlu1 %v3320_v51  ;;  %1857 = vadd.xlane.f32.xlu0 %v3322_v58  ;;  %v1570_v41 = vsel %vm1184_vm5, %v1538_v21, 0.0  ;;  %v2344_v55 = vsub.f32 %v5991_v31, %v4462_v37  ;;  %v6046_v56 = vld [vmem:[#allocation25_spill] sm:$0xff] }
 0x415   : > { %v3332_v26 = vpop.eup %3331  ;;  %3349 = vpow2.f32 %v2208_v3  ;;  %v1990_v17 = vsel %vm3851_vm4, %v1958_v5, %v1571_v29  ;;  %v2283_v23 = vmul.f32 0.6931472, %v3330_v15  ;;  %v2231_v62 = vpop.xlane.xlu1 %2230  ;;  %v2543_v48 = vadd.f32 1.0, %v4888_v7 }
 0x416   : > { %v2229_v12 = vpop.xlane.xlu0 %2228  ;;  %v3334_v11 = vpop.eup %3333  ;;  %v1989_v63 = vsel %vm3851_vm4, %v1957_v59, %v1570_v41  ;;  %v2281_v51 = vmul.f32 0.6931472, %v3332_v26  ;;  %3351 = vlog2.f32 %v2231_v62  ;;  %v2868_v13 = vmul.f32 -1.442695, %v6045_v1 }
 0x417   : > { %v2377_v58 = vsub.f32 %v2345_v39, %v2283_v23  ;;  %3353 = vlog2.f32 %v2229_v12  ;;  %v1513_v37 = vsub.f32 %v6002_v61, %v4492_v43  ;;  %v1512_v43 = vsub.f32 %v6007_v54, %v4494_v35 }
 0x418   : > { %v3336_v19 = vpop.eup %3335  ;;  %3355 = vpow2.f32 %v2214_v16  ;;  %v2376_v18 = vsub.f32 %v2344_v55, %v2281_v51  ;;  %1436 = vadd.xlane.f32.xlu1 %v3328_v8  ;;  %1434 = vadd.xlane.f32.xlu0 %v3334_v11  ;;  %v2867_v27 = vmul.f32 -1.442695, %v6046_v56  ;;  %v1931_v59 = vsub.f32 %v6007_v54, %v4510_v60 }
 0x419   : > { %v3338_v9 = vpop.eup %3337  ;;  %3357 = vpow2.f32 %v2212_v53  ;;  %v2409_v34 = vsel %vm3876_vm8, %v2377_v58, %v1990_v17  ;;  %v1457_v33 = vmul.f32 0.6931472, %v3336_v19  ;;  %v1389_v3 = vpop.xlane.xlu1 %1388  ;;  %v2542_v23 = vadd.f32 1.0, %v4904_v47 }
 0x41a   : > { %v1387_v52 = vpop.xlane.xlu0 %1386  ;;  %v3340_v21 = vpop.eup %3339  ;;  %v2634_v7 = vsel %vm2440_vm9, %v4920_v6, %v2409_v34  ;;  %v2408_v22 = vsel %vm3876_vm8, %v2376_v18, %v1989_v63  ;;  %v1455_v50 = vmul.f32 0.6931472, %v3338_v9  ;;  %3359 = vlog2.f32 %v1389_v3  ;;  %v6047_v34 = vld [vmem:[#allocation34_spill] sm:$0xff] }
 0x41b   : > { %v3342_v40 = vpop.eup %3341  ;;  %v2667_v8 = vsel %vm2665_vm10, %v5997_v28, %v2634_v7  ;;  %v2633_v49 = vsel %vm2440_vm9, %v4912_v44, %v2408_v22  ;;  %3361 = vlog2.f32 %v1387_v52  ;;  %v1545_v16 = vsub.f32 %v1513_v37, %v1457_v33 }
 0x41c   : > { %v3344_v6 = vpop.eup %3343  ;;  %3363 = vrcp.f32 %v2543_v48  ;;  %2699 = vst [vmem:[%s4976_s17 + $0x8] sm:$0xff] %v2667_v8  ;;  %v2666_v39 = vsel %vm2665_vm10, %v5991_v31, %v2633_v49  ;;  %1855 = vadd.xlane.f32.xlu1 %v3340_v21  ;;  %1853 = vadd.xlane.f32.xlu0 %v3342_v40  ;;  %v1932_v28 = vsub.f32 %v6002_v61, %v4508_v42  ;;  %v2541_v37 = vadd.f32 1.0, %v4892_v10 }
 0x41d   : > { %v3346_v35 = vpop.eup %3345  ;;  %3365 = vpow2.f32 %v2868_v13  ;;  %2698 = vst [vmem:[%s4976_s17] sm:$0xff] %v2666_v39  ;;  %v1544_v44 = vsub.f32 %v1512_v43, %v1455_v50  ;;  %v1876_v5 = vmul.f32 0.6931472, %v3344_v6  ;;  %v1808_v15 = vpop.xlane.xlu1 %1807  ;;  %v1577_v42 = vsel %vm1184_vm5, %v1545_v16, 0.0  ;;  %v6049_v6 = vld [vmem:[#allocation16_spill] sm:$0xff] }
 0x41e   : > { %v1806_v53 = vpop.xlane.xlu0 %1805  ;;  %v3348_v29 = vpop.eup %3347  ;;  %v1874_v26 = vmul.f32 0.6931472, %v3346_v35  ;;  %3367 = vlog2.f32 %v1808_v15  ;;  %v2351_v11 = vsub.f32 %v6002_v61, %v4528_v25  ;;  %v2350_v19 = vsub.f32 %v6007_v54, %v4530_v20 }
 0x41f   : > { %v3350_v31 = vpop.eup %3349  ;;  %v1964_v41 = vsub.f32 %v1932_v28, %v1876_v5  ;;  %3369 = vlog2.f32 %v1806_v53  ;;  %v1576_v60 = vsel %vm1184_vm5, %v1544_v44, 0.0  ;;  %v2866_v33 = vmul.f32 -1.442695, %v6047_v34  ;;  %v6051_v53 = vld [vmem:[#allocation99_spill] sm:$0xff] }
 0x420   : > { %v3352_v17 = vpop.eup %3351  ;;  %3371 = vpow2.f32 %v2867_v27  ;;  %v1963_v62 = vsub.f32 %v1931_v59, %v1874_v26  ;;  %2274 = vadd.xlane.f32.xlu1 %v3348_v29  ;;  %2272 = vadd.xlane.f32.xlu0 %v3350_v31  ;;  %v1511_v20 = vsub.f32 %v6013_v0, %v4548_v30  ;;  %v6048_v30 = vld [vmem:[#allocation98_spill] sm:$0xff]  ;;  %v1930_v29 = vsub.f32 %v6013_v0, %v6051_v53 }
 0x421   : > { %v3354_v12 = vpop.eup %3353  ;;  %v1996_v55 = vsel %vm3851_vm4, %v1964_v41, %v1577_v42  ;;  %v2295_v63 = vmul.f32 0.6931472, %v3352_v17  ;;  %v2227_v51 = vpop.xlane.xlu1 %2226  ;;  %v1510_v27 = vsub.f32 %v6049_v6, %v6048_v30  ;;  %v6052_v17 = vld [vmem:[#allocation100_spill] sm:$0xff] }
 0x422   : > { %v2225_v47 = vpop.xlane.xlu0 %2224  ;;  %v3356_v58 = vpop.eup %3355  ;;  %v1995_v48 = vsel %vm3851_vm4, %v1963_v62, %v1576_v60  ;;  %v2293_v13 = vmul.f32 0.6931472, %v3354_v12  ;;  %3373 = vlog2.f32 %v2227_v51 }
 0x423   : > { %v3358_v18 = vpop.eup %3357  ;;  %v2383_v25 = vsub.f32 %v2351_v11, %v2295_v63  ;;  %3375 = vlog2.f32 %v2225_v47  ;;  %v6053_v63 = vld [vmem:[#allocation101_spill] sm:$0xff] }
 0x424   : > { %v3360_v9 = vpop.eup %3359  ;;  %v2382_v3 = vsub.f32 %v2350_v19, %v2293_v13  ;;  %2278 = vadd.xlane.f32.xlu1 %v3356_v58  ;;  %2276 = vadd.xlane.f32.xlu0 %v3358_v18  ;;  %3377 = vrcp.f32 %v2542_v23  ;;  %v1929_v23 = vsub.f32 %v6049_v6, %v6052_v17  ;;  %v2349_v51 = vsub.f32 %v6013_v0, %v6053_v63  ;;  %v6054_v18 = vld [vmem:[#allocation102_spill] sm:$0xff]  ;;  %v6059_v17 = vld [vmem:[#allocation107_spill] sm:$0xff] }
 0x425   : > { %v3362_v52 = vpop.eup %3361  ;;  %v2415_v21 = vsel %vm3876_vm8, %v2383_v25, %v1996_v55  ;;  %v1453_v7 = vmul.f32 0.6931472, %v3360_v9  ;;  %v1401_v22 = vpop.xlane.xlu1 %1400  ;;  %v2348_v25 = vsub.f32 %v6049_v6, %v6054_v18 }
 0x426   : > { %v1399_v50 = vpop.xlane.xlu0 %1398  ;;  %v3364_v40 = vpop.eup %3363  ;;  %v2640_v10 = vsel %vm2440_vm9, %v4924_v57, %v2415_v21  ;;  %v2414_v43 = vsel %vm3876_vm8, %v2382_v3, %v1995_v48  ;;  %v1451_v8 = vmul.f32 0.6931472, %v3362_v52  ;;  %3379 = vlog2.f32 %v1401_v22  ;;  %v6050_v57 = vld [vmem:[#allocation32_spill] sm:$0xff]  ;;  %v6055_v21 = vld [vmem:[#allocation13_spill] sm:$0xff] }
 0x427   : > { %v3366_v49 = vpop.eup %3365  ;;  %v2673_v39 = vsel %vm2665_vm10, %v6002_v61, %v2640_v10  ;;  %v2639_v16 = vsel %vm2440_vm9, %v3364_v40, %v2414_v43  ;;  %3381 = vlog2.f32 %v1399_v50  ;;  %v2865_v28 = vmul.f32 -1.442695, %v6050_v57  ;;  %v6056_v40 = vld [vmem:[#allocation105_spill] sm:$0xff] }
 0x428   : > { %v3368_v35 = vpop.eup %3367  ;;  %3383 = vrcp.f32 %v2541_v37  ;;  %2705 = vst [vmem:[%s4976_s17 + $0x38] sm:$0xff] %v2673_v39  ;;  %v2672_v44 = vsel %vm2665_vm10, %v6007_v54, %v2639_v16  ;;  %v1543_v5 = vsub.f32 %v1511_v20, %v1453_v7  ;;  %v1542_v61 = vsub.f32 %v1510_v27, %v1451_v8 }
 0x429   : > { %v3370_v15 = vpop.eup %3369  ;;  %3385 = vpow2.f32 %v2866_v33  ;;  %2704 = vst [vmem:[%s4976_s17 + $0x30] sm:$0xff] %v2672_v44  ;;  %v1872_v59 = vmul.f32 0.6931472, %v3368_v35  ;;  %v1820_v26 = vpop.xlane.xlu1 %1819  ;;  %v2548_v12 = vadd.f32 1.0, %v3366_v49  ;;  %v2872_v7 = vmul.f32 -1.442695, %v6055_v21 }
 0x42a   : > { %v1818_v31 = vpop.xlane.xlu0 %1817  ;;  %v3372_v41 = vpop.eup %3371  ;;  %v1870_v42 = vmul.f32 0.6931472, %v3370_v15  ;;  %3387 = vlog2.f32 %v1820_v26  ;;  %v1575_v11 = vsel %vm1184_vm5, %v1543_v5, 0.0  ;;  %v1574_v47 = vsel %vm1184_vm5, %v1542_v61, 0.0  ;;  %v6057_v44 = vld [vmem:[#allocation106_spill] sm:$0xff]  ;;  %v6058_v61 = vld [vmem:[#allocation11_spill] sm:$0xff] }
 0x42b   : > { %v1962_v62 = vsub.f32 %v1930_v29, %v1872_v59  ;;  %3389 = vlog2.f32 %v1818_v31  ;;  %v2547_v20 = vadd.f32 1.0, %v3372_v41  ;;  %v1517_v10 = vsub.f32 %v6045_v1, %v6056_v40 }
 0x42c   : > { %v3374_v54 = vpop.eup %3373  ;;  %3391 = vpow2.f32 %v2865_v28  ;;  %v1961_v60 = vsub.f32 %v1929_v23, %v1870_v42  ;;  %v1516_v5 = vsub.f32 %v6046_v56, %v6057_v44  ;;  %v2871_v59 = vmul.f32 -1.442695, %v6058_v61 }
 0x42d   : > { %v3376_v55 = vpop.eup %3375  ;;  %v1994_v58 = vsel %vm3851_vm4, %v1962_v62, %v1575_v11  ;;  %v2291_v19 = vmul.f32 0.6931472, %v3374_v54  ;;  %v2239_v48 = vpop.xlane.xlu1 %2238  ;;  %v1936_v23 = vsub.f32 %v6045_v1, %v6059_v17  ;;  %v6060_v11 = vld [vmem:[#allocation108_spill] sm:$0xff] }
 0x42e   : > { %v2237_v13 = vpop.xlane.xlu0 %2236  ;;  %v1993_v9 = vsel %vm3851_vm4, %v1961_v60, %v1574_v47  ;;  %v2289_v37 = vmul.f32 0.6931472, %v3376_v55  ;;  %3393 = vlog2.f32 %v2239_v48  ;;  %v3378_v33 = vpop.eup %3377  ;;  %v1935_v60 = vsub.f32 %v6046_v56, %v6060_v11  ;;  %v6061_v48 = vld [vmem:[#allocation109_spill] sm:$0xff] }
 0x42f   : > { %v2381_v3 = vsub.f32 %v2349_v51, %v2291_v19  ;;  %3395 = vlog2.f32 %v2237_v13  ;;  %v2355_v13 = vsub.f32 %v6045_v1, %v6061_v48  ;;  %v6067_v11 = vld [vmem:[#allocation113_spill] sm:$0xff] }
 0x430   : > { %v3380_v52 = vpop.eup %3379  ;;  %v2380_v22 = vsub.f32 %v2348_v25, %v2289_v37  ;;  %3397 = vrcp.f32 %v2548_v12 }
 0x431   : > { %v3382_v50 = vpop.eup %3381  ;;  %v2413_v43 = vsel %vm3876_vm8, %v2381_v3, %v1994_v58  ;;  %v1465_v8 = vmul.f32 0.6931472, %v3380_v52  ;;  %v1397_v49 = vpop.xlane.xlu1 %1396  ;;  %v6062_v3 = vld [vmem:[#allocation110_spill] sm:$0xff] }
 0x432   : > { %v1395_v30 = vpop.xlane.xlu0 %1394  ;;  %v3384_v27 = vpop.eup %3383  ;;  %v2638_v39 = vsel %vm2440_vm9, %v3378_v33, %v2413_v43  ;;  %v2412_v16 = vsel %vm3876_vm8, %v2380_v22, %v1993_v9  ;;  %v1463_v35 = vmul.f32 0.6931472, %v3382_v50  ;;  %3399 = vlog2.f32 %v1397_v49  ;;  %v6063_v43 = vld [vmem:[#allocation14_spill] sm:$0xff] }
 0x433   : > { %v3386_v28 = vpop.eup %3385  ;;  %v2671_v15 = vsel %vm2665_vm10, %v6013_v0, %v2638_v39  ;;  %v2637_v53 = vsel %vm2440_vm9, %v3384_v27, %v2412_v16  ;;  %3401 = vlog2.f32 %v1395_v30  ;;  %v1549_v31 = vsub.f32 %v1517_v10, %v1465_v8  ;;  %v6064_v27 = vld [vmem:[#allocation111_spill] sm:$0xff] }
 0x434   : > { %v3388_v29 = vpop.eup %3387  ;;  %3403 = vrcp.f32 %v2547_v20  ;;  %2703 = vst [vmem:[%s4976_s17 + $0x28] sm:$0xff] %v2671_v15  ;;  %v2670_v26 = vsel %vm2665_vm10, %v6049_v6, %v2637_v53  ;;  %v1548_v0 = vsub.f32 %v1516_v5, %v1463_v35  ;;  %v2546_v51 = vadd.f32 1.0, %v3386_v28 }
 0x435   : > { %v3390_v41 = vpop.eup %3389  ;;  %3405 = vpow2.f32 %v2872_v7  ;;  %2702 = vst [vmem:[%s4976_s17 + $0x20] sm:$0xff] %v2670_v26  ;;  %v1884_v42 = vmul.f32 0.6931472, %v3388_v29  ;;  %v1816_v62 = vpop.xlane.xlu1 %1815  ;;  %v1581_v47 = vsel %vm1184_vm5, %v1549_v31, 0.0  ;;  %v2354_v52 = vsub.f32 %v6046_v56, %v6062_v3  ;;  %v6065_v26 = vld [vmem:[#allocation112_spill] sm:$0xff] }
 0x436   : > { %v1814_v54 = vpop.xlane.xlu0 %1813  ;;  %v3392_v12 = vpop.eup %3391  ;;  %v1882_v55 = vmul.f32 0.6931472, %v3390_v41  ;;  %3407 = vlog2.f32 %v1816_v62  ;;  %v1580_v18 = vsel %vm1184_vm5, %v1548_v0, 0.0  ;;  %v2870_v8 = vmul.f32 -1.442695, %v6063_v43  ;;  %v6066_v0 = vld [vmem:[#allocation12_spill] sm:$0xff] }
 0x437   : > { %v1968_v63 = vsub.f32 %v1936_v23, %v1884_v42  ;;  %3409 = vlog2.f32 %v1814_v54  ;;  %v2545_v10 = vadd.f32 1.0, %v3392_v12  ;;  %v1515_v39 = vsub.f32 %v6047_v34, %v6064_v27 }
 0x438   : > { %v3394_v6 = vpop.eup %3393  ;;  %3411 = vpow2.f32 %v2871_v59  ;;  %v1967_v58 = vsub.f32 %v1935_v60, %v1882_v55  ;;  %v1514_v31 = vsub.f32 %v6050_v57, %v6065_v26  ;;  %v2869_v42 = vmul.f32 -1.442695, %v6066_v0 }
 0x439   : > { %v3396_v19 = vpop.eup %3395  ;;  %v2000_v25 = vsel %vm3851_vm4, %v1968_v63, %v1581_v47  ;;  %v2303_v9 = vmul.f32 0.6931472, %v3394_v6  ;;  %v2235_v37 = vpop.xlane.xlu1 %2234  ;;  %v1934_v60 = vsub.f32 %v6047_v34, %v6067_v11  ;;  %v6068_v47 = vld [vmem:[#allocation114_spill] sm:$0xff] }
 0x43a   : > { %v2233_v33 = vpop.xlane.xlu0 %2232  ;;  %v1999_v20 = vsel %vm3851_vm4, %v1967_v58, %v1580_v18  ;;  %v2301_v7 = vmul.f32 0.6931472, %v3396_v19  ;;  %3413 = vlog2.f32 %v2235_v37  ;;  %v3398_v22 = vpop.eup %3397  ;;  %v1933_v58 = vsub.f32 %v6050_v57, %v6068_v47  ;;  %v6069_v37 = vld [vmem:[#allocation115_spill] sm:$0xff] }
 0x43b   : > { %v2387_v50 = vsub.f32 %v2355_v13, %v2303_v9  ;;  %3415 = vlog2.f32 %v2233_v33  ;;  %v2353_v33 = vsub.f32 %v6047_v34, %v6069_v37  ;;  %v6075_v47 = vld [vmem:[#allocation119_spill] sm:$0xff] }
 0x43c   : > { %v3400_v40 = vpop.eup %3399  ;;  %v2386_v49 = vsub.f32 %v2354_v52, %v2301_v7  ;;  %3417 = vrcp.f32 %v2546_v51 }
 0x43d   : > { %v3402_v30 = vpop.eup %3401  ;;  %v2419_v16 = vsel %vm3876_vm8, %v2387_v50, %v2000_v25  ;;  %v1461_v35 = vmul.f32 0.6931472, %v3400_v40  ;;  %v1409_v28 = vpop.xlane.xlu1 %1408  ;;  %v6070_v50 = vld [vmem:[#allocation116_spill] sm:$0xff] }
 0x43e   : > { %v1407_v44 = vpop.xlane.xlu0 %1406  ;;  %v3404_v5 = vpop.eup %3403  ;;  %v2644_v15 = vsel %vm2440_vm9, %v3398_v22, %v2419_v16  ;;  %v2418_v53 = vsel %vm3876_vm8, %v2386_v49, %v1999_v20  ;;  %v1459_v29 = vmul.f32 0.6931472, %v3402_v30  ;;  %3419 = vlog2.f32 %v1409_v28  ;;  %v6071_v16 = vld [vmem:[#allocation19_spill] sm:$0xff] }
 0x43f   : > { %v3406_v59 = vpop.eup %3405  ;;  %v2677_v41 = vsel %vm2665_vm10, %v6045_v1, %v2644_v15  ;;  %v2643_v17 = vsel %vm2440_vm9, %v3404_v5, %v2418_v53  ;;  %3421 = vlog2.f32 %v1407_v44  ;;  %v1547_v54 = vsub.f32 %v1515_v39, %v1461_v35  ;;  %v6072_v5 = vld [vmem:[#allocation117_spill] sm:$0xff] }
 0x440   : > { %v3408_v23 = vpop.eup %3407  ;;  %3423 = vrcp.f32 %v2545_v10  ;;  %2709 = vst [vmem:[%s4976_s17 + $0x58] sm:$0xff] %v2677_v41  ;;  %v2676_v62 = vsel %vm2665_vm10, %v6046_v56, %v2643_v17  ;;  %v1546_v1 = vsub.f32 %v1514_v31, %v1459_v29  ;;  %v2552_v13 = vadd.f32 1.0, %v3406_v59 }
 0x441   : > { %v3410_v12 = vpop.eup %3409  ;;  %3425 = vpow2.f32 %v2870_v8  ;;  %2708 = vst [vmem:[%s4976_s17 + $0x50] sm:$0xff] %v2676_v62  ;;  %v1880_v55 = vmul.f32 0.6931472, %v3408_v23  ;;  %v1828_v63 = vpop.xlane.xlu1 %1827  ;;  %v1579_v18 = vsel %vm1184_vm5, %v1547_v54, 0.0  ;;  %v2352_v40 = vsub.f32 %v6050_v57, %v6070_v50  ;;  %v6073_v62 = vld [vmem:[#allocation118_spill] sm:$0xff] }
 0x442   : > { %v1826_v6 = vpop.xlane.xlu0 %1825  ;;  %v3412_v51 = vpop.eup %3411  ;;  %v1878_v19 = vmul.f32 0.6931472, %v3410_v12  ;;  %3427 = vlog2.f32 %v1828_v63  ;;  %v1578_v3 = vsel %vm1184_vm5, %v1546_v1, 0.0  ;;  %v2876_v35 = vmul.f32 -1.442695, %v6071_v16  ;;  %v6074_v1 = vld [vmem:[#allocation15_spill] sm:$0xff] }
 0x443   : > { %v1966_v48 = vsub.f32 %v1934_v60, %v1880_v55  ;;  %3429 = vlog2.f32 %v1826_v6  ;;  %v2551_v39 = vadd.f32 1.0, %v3412_v51  ;;  %v1521_v15 = vsub.f32 %v6055_v21, %v6072_v5 }
 0x444   : > { %v3414_v56 = vpop.eup %3413  ;;  %3431 = vpow2.f32 %v2869_v42  ;;  %v1965_v25 = vsub.f32 %v1933_v58, %v1878_v19  ;;  %v1520_v54 = vsub.f32 %v6058_v61, %v6073_v62  ;;  %v2875_v55 = vmul.f32 -1.442695, %v6074_v1 }
 0x445   : > { %v3416_v9 = vpop.eup %3415  ;;  %v1998_v52 = vsel %vm3851_vm4, %v1966_v48, %v1579_v18  ;;  %v2299_v20 = vmul.f32 0.6931472, %v3414_v56  ;;  %v2247_v7 = vpop.xlane.xlu1 %2246  ;;  %v1940_v58 = vsub.f32 %v6055_v21, %v6075_v47  ;;  %v6076_v18 = vld [vmem:[#allocation120_spill] sm:$0xff] }
 0x446   : > { %v2245_v22 = vpop.xlane.xlu0 %2244  ;;  %v1997_v10 = vsel %vm3851_vm4, %v1965_v25, %v1578_v3  ;;  %v2297_v8 = vmul.f32 0.6931472, %v3416_v9  ;;  %3433 = vlog2.f32 %v2247_v7  ;;  %v3418_v49 = vpop.eup %3417  ;;  %v1939_v25 = vsub.f32 %v6058_v61, %v6076_v18  ;;  %v6077_v7 = vld [vmem:[#allocation121_spill] sm:$0xff] }
 0x447   : > { %v2385_v30 = vsub.f32 %v2353_v33, %v2299_v20  ;;  %3435 = vlog2.f32 %v2245_v22  ;;  %v2359_v22 = vsub.f32 %v6055_v21, %v6077_v7  ;;  %v6083_v18 = vld [vmem:[#allocation125_spill] sm:$0xff] }
 0x448   : > { %v3420_v27 = vpop.eup %3419  ;;  %v2384_v28 = vsub.f32 %v2352_v40, %v2297_v8  ;;  %3437 = vrcp.f32 %v2552_v13 }
 0x449   : > { %v3422_v44 = vpop.eup %3421  ;;  %v2417_v53 = vsel %vm3876_vm8, %v2385_v30, %v1998_v52  ;;  %v1473_v29 = vmul.f32 0.6931472, %v3420_v27  ;;  %v1405_v59 = vpop.xlane.xlu1 %1404  ;;  %v6078_v30 = vld [vmem:[#allocation122_spill] sm:$0xff] }
 0x44a   : > { %v1403_v26 = vpop.xlane.xlu0 %1402  ;;  %v3424_v31 = vpop.eup %3423  ;;  %v2642_v41 = vsel %vm2440_vm9, %v3418_v49, %v2417_v53  ;;  %v2416_v17 = vsel %vm3876_vm8, %v2384_v28, %v1997_v10  ;;  %v1471_v23 = vmul.f32 0.6931472, %v3422_v44  ;;  %3439 = vlog2.f32 %v1405_v59  ;;  %v6079_v53 = vld [vmem:[#allocation20_spill] sm:$0xff] }
 0x44b   : > { %v3426_v42 = vpop.eup %3425  ;;  %v2675_v12 = vsel %vm2665_vm10, %v6047_v34, %v2642_v41  ;;  %v2641_v11 = vsel %vm2440_vm9, %v3424_v31, %v2416_v17  ;;  %3441 = vlog2.f32 %v1403_v26  ;;  %v1553_v6 = vsub.f32 %v1521_v15, %v1473_v29  ;;  %v6080_v31 = vld [vmem:[#allocation123_spill] sm:$0xff] }
 0x44c   : > { %v3428_v60 = vpop.eup %3427  ;;  %3443 = vrcp.f32 %v2551_v39  ;;  %2707 = vst [vmem:[%s4976_s17 + $0x48] sm:$0xff] %v2675_v12  ;;  %v2674_v63 = vsel %vm2665_vm10, %v6050_v57, %v2641_v11  ;;  %v1552_v34 = vsub.f32 %v1520_v54, %v1471_v23  ;;  %v2550_v33 = vadd.f32 1.0, %v3426_v42 }
 0x44d   : > { %v3430_v51 = vpop.eup %3429  ;;  %3445 = vpow2.f32 %v2876_v35  ;;  %2706 = vst [vmem:[%s4976_s17 + $0x40] sm:$0xff] %v2674_v63  ;;  %v1892_v19 = vmul.f32 0.6931472, %v3428_v60  ;;  %v1824_v48 = vpop.xlane.xlu1 %1823  ;;  %v1585_v3 = vsel %vm1184_vm5, %v1553_v6, 0.0  ;;  %v2358_v27 = vsub.f32 %v6058_v61, %v6078_v30  ;;  %v6081_v63 = vld [vmem:[#allocation124_spill] sm:$0xff] }
 0x44e   : > { %v1822_v56 = vpop.xlane.xlu0 %1821  ;;  %v3432_v13 = vpop.eup %3431  ;;  %v1890_v9 = vmul.f32 0.6931472, %v3430_v51  ;;  %3447 = vlog2.f32 %v1824_v48  ;;  %v1584_v50 = vsel %vm1184_vm5, %v1552_v34, 0.0  ;;  %v2874_v29 = vmul.f32 -1.442695, %v6079_v53  ;;  %v6082_v34 = vld [vmem:[#allocation17_spill] sm:$0xff] }
 0x44f   : > { %v1972_v37 = vsub.f32 %v1940_v58, %v1892_v19  ;;  %3449 = vlog2.f32 %v1822_v56  ;;  %v2549_v15 = vadd.f32 1.0, %v3432_v13  ;;  %v1519_v41 = vsub.f32 %v6063_v43, %v6080_v31 }
 0x450   : > { %v3434_v57 = vpop.eup %3433  ;;  %3451 = vpow2.f32 %v2875_v55  ;;  %v1971_v52 = vsub.f32 %v1939_v25, %v1890_v9  ;;  %v1518_v6 = vsub.f32 %v6066_v0, %v6081_v63  ;;  %v2873_v19 = vmul.f32 -1.442695, %v6082_v34 }
 0x451   : > { %v3436_v20 = vpop.eup %3435  ;;  %v2004_v40 = vsel %vm3851_vm4, %v1972_v37, %v1585_v3  ;;  %v2311_v10 = vmul.f32 0.6931472, %v3434_v57  ;;  %v2243_v8 = vpop.xlane.xlu1 %2242  ;;  %v1938_v25 = vsub.f32 %v6063_v43, %v6083_v18  ;;  %v6084_v3 = vld [vmem:[#allocation126_spill] sm:$0xff] }
 0x452   : > { %v2241_v49 = vpop.xlane.xlu0 %2240  ;;  %v2003_v39 = vsel %vm3851_vm4, %v1971_v52, %v1584_v50  ;;  %v2309_v35 = vmul.f32 0.6931472, %v3436_v20  ;;  %3453 = vlog2.f32 %v2243_v8  ;;  %v3438_v28 = vpop.eup %3437  ;;  %v1937_v52 = vsub.f32 %v6066_v0, %v6084_v3  ;;  %v6085_v8 = vld [vmem:[#allocation127_spill] sm:$0xff]  ;;  %v6091_v3 = vld [vmem:[#allocation37_spill] sm:$0xff] }
 0x453   : > { %v2391_v44 = vsub.f32 %v2359_v22, %v2311_v10  ;;  %3455 = vlog2.f32 %v2241_v49  ;;  %v2357_v49 = vsub.f32 %v6063_v43, %v6085_v8 }
 0x454   : > { %v3440_v5 = vpop.eup %3439  ;;  %v2390_v59 = vsub.f32 %v2358_v27, %v2309_v35  ;;  %3457 = vrcp.f32 %v2550_v33 }
 0x455   : > { %v3442_v26 = vpop.eup %3441  ;;  %v2423_v17 = vsel %vm3876_vm8, %v2391_v44, %v2004_v40  ;;  %v1469_v23 = vmul.f32 0.6931472, %v3440_v5  ;;  %v1417_v42 = vpop.xlane.xlu1 %1416  ;;  %v6086_v44 = vld [vmem:[#allocation128_spill] sm:$0xff] }
 0x456   : > { %v1415_v62 = vpop.xlane.xlu0 %1414  ;;  %v3444_v54 = vpop.eup %3443  ;;  %v2648_v12 = vsel %vm2440_vm9, %v3438_v28, %v2423_v17  ;;  %v2422_v11 = vsel %vm3876_vm8, %v2390_v59, %v2003_v39  ;;  %v1467_v60 = vmul.f32 0.6931472, %v3442_v26  ;;  %3459 = vlog2.f32 %v1417_v42  ;;  %v6087_v17 = vld [vmem:[#allocation23_spill] sm:$0xff] }
 0x457   : > { %v3446_v55 = vpop.eup %3445  ;;  %v2681_v51 = vsel %vm2665_vm10, %v6055_v21, %v2648_v12  ;;  %v2647_v47 = vsel %vm2440_vm9, %v3444_v54, %v2422_v11  ;;  %3461 = vlog2.f32 %v1415_v62  ;;  %v1551_v56 = vsub.f32 %v1519_v41, %v1469_v23  ;;  %v6088_v54 = vld [vmem:[#allocation129_spill] sm:$0xff] }
 0x458   : > { %v3448_v58 = vpop.eup %3447  ;;  %3463 = vrcp.f32 %v2549_v15  ;;  %2713 = vst [vmem:[%s4976_s17 + $0x78] sm:$0xff] %v2681_v51  ;;  %v2680_v48 = vsel %vm2665_vm10, %v6058_v61, %v2647_v47  ;;  %v1550_v21 = vsub.f32 %v1518_v6, %v1467_v60  ;;  %v2556_v22 = vadd.f32 1.0, %v3446_v55 }
 0x459   : > { %v3450_v13 = vpop.eup %3449  ;;  %3465 = vpow2.f32 %v2874_v29  ;;  %2712 = vst [vmem:[%s4976_s17 + $0x70] sm:$0xff] %v2680_v48  ;;  %v1888_v9 = vmul.f32 0.6931472, %v3448_v58  ;;  %v1836_v37 = vpop.xlane.xlu1 %1835  ;;  %v1583_v50 = vsel %vm1184_vm5, %v1551_v56, 0.0  ;;  %v2356_v5 = vsub.f32 %v6066_v0, %v6086_v44  ;;  %v6089_v48 = vld [vmem:[#allocation130_spill] sm:$0xff] }
 0x45a   : > { %v1834_v57 = vpop.xlane.xlu0 %1833  ;;  %v3452_v33 = vpop.eup %3451  ;;  %v1886_v20 = vmul.f32 0.6931472, %v3450_v13  ;;  %3467 = vlog2.f32 %v1836_v37  ;;  %v1582_v30 = vsel %vm1184_vm5, %v1550_v21, 0.0  ;;  %v2880_v23 = vmul.f32 -1.442695, %v6087_v17  ;;  %v6090_v21 = vld [vmem:[#allocation21_spill] sm:$0xff] }
 0x45b   : > { %v1970_v7 = vsub.f32 %v1938_v25, %v1888_v9  ;;  %3469 = vlog2.f32 %v1834_v57  ;;  %v2555_v41 = vadd.f32 1.0, %v3452_v33  ;;  %v1525_v12 = vsub.f32 %v6071_v16, %v6088_v54 }
 0x45c   : > { %v3454_v61 = vpop.eup %3453  ;;  %3471 = vpow2.f32 %v2873_v19  ;;  %v1969_v40 = vsub.f32 %v1937_v52, %v1886_v20  ;;  %v1524_v56 = vsub.f32 %v6074_v1, %v6089_v48  ;;  %v2879_v9 = vmul.f32 -1.442695, %v6090_v21 }
 0x45d   : > { %v3456_v10 = vpop.eup %3455  ;;  %v2002_v27 = vsel %vm3851_vm4, %v1970_v7, %v1583_v50  ;;  %v2307_v39 = vmul.f32 0.6931472, %v3454_v61  ;;  %v2255_v35 = vpop.xlane.xlu1 %2254  ;;  %v1944_v52 = vsub.f32 %v6071_v16, %v6091_v3  ;;  %v6092_v50 = vld [vmem:[#allocation38_spill] sm:$0xff] }
 0x45e   : > { %v2253_v28 = vpop.xlane.xlu0 %2252  ;;  %v2001_v15 = vsel %vm3851_vm4, %v1969_v40, %v1582_v30  ;;  %v2305_v29 = vmul.f32 0.6931472, %v3456_v10  ;;  %3473 = vlog2.f32 %v2255_v35  ;;  %v3458_v59 = vpop.eup %3457  ;;  %v1943_v40 = vsub.f32 %v6074_v1, %v6092_v50  ;;  %v6093_v35 = vld [vmem:[#allocation39_spill] sm:$0xff] }
 0x45f   : > { %v2389_v26 = vsub.f32 %v2357_v49, %v2307_v39  ;;  %3475 = vlog2.f32 %v2253_v28  ;;  %v2363_v28 = vsub.f32 %v6071_v16, %v6093_v35  ;;  %v6099_v50 = vld [vmem:[#allocation43_spill] sm:$0xff] }
 0x460   : > { %v3460_v31 = vpop.eup %3459  ;;  %v2388_v42 = vsub.f32 %v2356_v5, %v2305_v29  ;;  %3477 = vrcp.f32 %v2556_v22 }
 0x461   : > { %v3462_v62 = vpop.eup %3461  ;;  %v2421_v11 = vsel %vm3876_vm8, %v2389_v26, %v2002_v27  ;;  %v1481_v60 = vmul.f32 0.6931472, %v3460_v31  ;;  %v1413_v55 = vpop.xlane.xlu1 %1412  ;;  %v6094_v26 = vld [vmem:[#allocation40_spill] sm:$0xff] }
 0x462   : > { %v1411_v63 = vpop.xlane.xlu0 %1410  ;;  %v3464_v6 = vpop.eup %3463  ;;  %v2646_v51 = vsel %vm2440_vm9, %v3458_v59, %v2421_v11  ;;  %v2420_v47 = vsel %vm3876_vm8, %v2388_v42, %v2001_v15  ;;  %v1479_v58 = vmul.f32 0.6931472, %v3462_v62  ;;  %3479 = vlog2.f32 %v1413_v55  ;;  %v6095_v11 = vld [vmem:[#allocation24_spill] sm:$0xff] }
 0x463   : > { %v3466_v19 = vpop.eup %3465  ;;  %v2679_v13 = vsel %vm2665_vm10, %v6063_v43, %v2646_v51  ;;  %v2645_v18 = vsel %vm2440_vm9, %v3464_v6, %v2420_v47  ;;  %3481 = vlog2.f32 %v1411_v63  ;;  %v1557_v57 = vsub.f32 %v1525_v12, %v1481_v60  ;;  %v6096_v6 = vld [vmem:[#allocation41_spill] sm:$0xff] }
 0x464   : > { %v3468_v25 = vpop.eup %3467  ;;  %3483 = vrcp.f32 %v2555_v41  ;;  %2711 = vst [vmem:[%s4976_s17 + $0x68] sm:$0xff] %v2679_v13  ;;  %v2678_v37 = vsel %vm2665_vm10, %v6066_v0, %v2645_v18  ;;  %v1556_v43 = vsub.f32 %v1524_v56, %v1479_v58  ;;  %v2554_v49 = vadd.f32 1.0, %v3466_v19 }
 0x465   : > { %v3470_v33 = vpop.eup %3469  ;;  %3485 = vpow2.f32 %v2880_v23  ;;  %2710 = vst [vmem:[%s4976_s17 + $0x60] sm:$0xff] %v2678_v37  ;;  %v1900_v20 = vmul.f32 0.6931472, %v3468_v25  ;;  %v1832_v7 = vpop.xlane.xlu1 %1831  ;;  %v1589_v30 = vsel %vm1184_vm5, %v1557_v57, 0.0  ;;  %v2362_v31 = vsub.f32 %v6074_v1, %v6094_v26  ;;  %v6097_v37 = vld [vmem:[#allocation42_spill] sm:$0xff] }
 0x466   : > { %v1830_v61 = vpop.xlane.xlu0 %1829  ;;  %v3472_v22 = vpop.eup %3471  ;;  %v1898_v10 = vmul.f32 0.6931472, %v3470_v33  ;;  %3487 = vlog2.f32 %v1832_v7  ;;  %v1588_v44 = vsel %vm1184_vm5, %v1556_v43, 0.0  ;;  %v2878_v60 = vmul.f32 -1.442695, %v6095_v11  ;;  %v6098_v43 = vld [vmem:[#allocation22_spill] sm:$0xff] }
 0x467   : > { %v1976_v8 = vsub.f32 %v1944_v52, %v1900_v20  ;;  %3489 = vlog2.f32 %v1830_v61  ;;  %v2553_v12 = vadd.f32 1.0, %v3472_v22  ;;  %v1523_v51 = vsub.f32 %v6079_v53, %v6096_v6 }
 0x468   : > { %v3474_v0 = vpop.eup %3473  ;;  %3491 = vpow2.f32 %v2879_v9  ;;  %v1975_v27 = vsub.f32 %v1943_v40, %v1898_v10  ;;  %v1522_v57 = vsub.f32 %v6082_v34, %v6097_v37  ;;  %v2877_v20 = vmul.f32 -1.442695, %v6098_v43 }
 0x469   : > { %v3476_v39 = vpop.eup %3475  ;;  %v2008_v5 = vsel %vm3851_vm4, %v1976_v8, %v1589_v30  ;;  %v2319_v15 = vmul.f32 0.6931472, %v3474_v0  ;;  %v2251_v29 = vpop.xlane.xlu1 %2250  ;;  %v1942_v40 = vsub.f32 %v6079_v53, %v6099_v50  ;;  %v6100_v30 = vld [vmem:[#allocation44_spill] sm:$0xff] }
 0x46a   : > { %v2249_v59 = vpop.xlane.xlu0 %2248  ;;  %v2007_v41 = vsel %vm3851_vm4, %v1975_v27, %v1588_v44  ;;  %v2317_v23 = vmul.f32 0.6931472, %v3476_v39  ;;  %3493 = vlog2.f32 %v2251_v29  ;;  %v3478_v42 = vpop.eup %3477  ;;  %v1941_v27 = vsub.f32 %v6082_v34, %v6100_v30  ;;  %v6101_v29 = vld [vmem:[#allocation45_spill] sm:$0xff] }
 0x46b   : > { %v2395_v62 = vsub.f32 %v2363_v28, %v2319_v15  ;;  %3495 = vlog2.f32 %v2249_v59  ;;  %v2361_v59 = vsub.f32 %v6079_v53, %v6101_v29  ;;  %v6107_v30 = vld [vmem:[#allocation49_spill] sm:$0xff] }
 0x46c   : > { %v3480_v54 = vpop.eup %3479  ;;  %v2394_v55 = vsub.f32 %v2362_v31, %v2317_v23  ;;  %3497 = vrcp.f32 %v2554_v49 }
 0x46d   : > { %v3482_v63 = vpop.eup %3481  ;;  %v2427_v47 = vsel %vm3876_vm8, %v2395_v62, %v2008_v5  ;;  %v1477_v58 = vmul.f32 0.6931472, %v3480_v54  ;;  %v1425_v19 = vpop.xlane.xlu1 %1424  ;;  %v6102_v62 = vld [vmem:[#allocation46_spill] sm:$0xff] }
 0x46e   : > { %v1423_v48 = vpop.xlane.xlu0 %1422  ;;  %v3484_v56 = vpop.eup %3483  ;;  %v2652_v13 = vsel %vm2440_vm9, %v3478_v42, %v2427_v47  ;;  %v2426_v18 = vsel %vm3876_vm8, %v2394_v55, %v2007_v41  ;;  %v1475_v25 = vmul.f32 0.6931472, %v3482_v63  ;;  %3499 = vlog2.f32 %v1425_v19  ;;  %v6103_v47 = vld [vmem:[#allocation29_spill] sm:$0xff] }
 0x46f   : > { %v3486_v9 = vpop.eup %3485  ;;  %v2685_v33 = vsel %vm2665_vm10, %v6071_v16, %v2652_v13  ;;  %v2651_v3 = vsel %vm2440_vm9, %v3484_v56, %v2426_v18  ;;  %3501 = vlog2.f32 %v1423_v48  ;;  %v1555_v61 = vsub.f32 %v1523_v51, %v1477_v58  ;;  %v6104_v56 = vld [vmem:[#allocation47_spill] sm:$0xff] }
 0x470   : > { %v3488_v52 = vpop.eup %3487  ;;  %3503 = vrcp.f32 %v2553_v12  ;;  %2717 = vst [vmem:[%s4976_s17 + $0x98] sm:$0xff] %v2685_v33  ;;  %v2684_v7 = vsel %vm2665_vm10, %v6074_v1, %v2651_v3  ;;  %v1554_v16 = vsub.f32 %v1522_v57, %v1475_v25  ;;  %v2560_v28 = vadd.f32 1.0, %v3486_v9 }
 0x471   : > { %v3490_v22 = vpop.eup %3489  ;;  %3505 = vpow2.f32 %v2878_v60  ;;  %2716 = vst [vmem:[%s4976_s17 + $0x90] sm:$0xff] %v2684_v7  ;;  %v1896_v10 = vmul.f32 0.6931472, %v3488_v52  ;;  %v1844_v8 = vpop.xlane.xlu1 %1843  ;;  %v1587_v44 = vsel %vm1184_vm5, %v1555_v61, 0.0  ;;  %v2360_v54 = vsub.f32 %v6082_v34, %v6102_v62  ;;  %v6105_v7 = vld [vmem:[#allocation48_spill] sm:$0xff] }
 0x472   : > { %v1842_v0 = vpop.xlane.xlu0 %1841  ;;  %v3492_v49 = vpop.eup %3491  ;;  %v1894_v39 = vmul.f32 0.6931472, %v3490_v22  ;;  %3507 = vlog2.f32 %v1844_v8  ;;  %v1586_v26 = vsel %vm1184_vm5, %v1554_v16, 0.0  ;;  %v2884_v58 = vmul.f32 -1.442695, %v6103_v47  ;;  %v6106_v16 = vld [vmem:[#allocation27_spill] sm:$0xff] }
 0x473   : > { %v1974_v35 = vsub.f32 %v1942_v40, %v1896_v10  ;;  %3509 = vlog2.f32 %v1842_v0  ;;  %v2559_v51 = vadd.f32 1.0, %v3492_v49  ;;  %v1529_v13 = vsub.f32 %v6087_v17, %v6104_v56 }
 0x474   : > { %v3494_v1 = vpop.eup %3493  ;;  %3511 = vpow2.f32 %v2877_v20  ;;  %v1973_v5 = vsub.f32 %v1941_v27, %v1894_v39  ;;  %v1528_v61 = vsub.f32 %v6090_v21, %v6105_v7  ;;  %v2883_v10 = vmul.f32 -1.442695, %v6106_v16 }
 0x475   : > { %v3496_v15 = vpop.eup %3495  ;;  %v2006_v31 = vsel %vm3851_vm4, %v1974_v35, %v1587_v44  ;;  %v2315_v41 = vmul.f32 0.6931472, %v3494_v1  ;;  %v2263_v23 = vpop.xlane.xlu1 %2262  ;;  %v1948_v27 = vsub.f32 %v6087_v17, %v6107_v30  ;;  %v6108_v44 = vld [vmem:[#allocation50_spill] sm:$0xff] }
 0x476   : > { %v2261_v42 = vpop.xlane.xlu0 %2260  ;;  %v2005_v12 = vsel %vm3851_vm4, %v1973_v5, %v1586_v26  ;;  %v2313_v60 = vmul.f32 0.6931472, %v3496_v15  ;;  %3513 = vlog2.f32 %v2263_v23  ;;  %v3498_v55 = vpop.eup %3497  ;;  %v1947_v5 = vsub.f32 %v6090_v21, %v6108_v44  ;;  %v6109_v23 = vld [vmem:[#allocation51_spill] sm:$0xff] }
 0x477   : > { %v2393_v63 = vsub.f32 %v2361_v59, %v2315_v41  ;;  %3515 = vlog2.f32 %v2261_v42  ;;  %v2367_v42 = vsub.f32 %v6087_v17, %v6109_v23  ;;  %v6115_v44 = vld [vmem:[#allocation55_spill] sm:$0xff] }
 0x478   : > { %v3500_v6 = vpop.eup %3499  ;;  %v2392_v19 = vsub.f32 %v2360_v54, %v2313_v60  ;;  %3517 = vrcp.f32 %v2560_v28 }
 0x479   : > { %v3502_v48 = vpop.eup %3501  ;;  %v2425_v18 = vsel %vm3876_vm8, %v2393_v63, %v2006_v31  ;;  %v1489_v25 = vmul.f32 0.6931472, %v3500_v6  ;;  %v1421_v9 = vpop.xlane.xlu1 %1420  ;;  %v6110_v63 = vld [vmem:[#allocation52_spill] sm:$0xff] }
 0x47a   : > { %v1419_v37 = vpop.xlane.xlu0 %1418  ;;  %v3504_v57 = vpop.eup %3503  ;;  %v2650_v33 = vsel %vm2440_vm9, %v3498_v55, %v2425_v18  ;;  %v2424_v3 = vsel %vm3876_vm8, %v2392_v19, %v2005_v12  ;;  %v1487_v52 = vmul.f32 0.6931472, %v3502_v48  ;;  %3519 = vlog2.f32 %v1421_v9  ;;  %v6111_v18 = vld [vmem:[#allocation30_spill] sm:$0xff] }
 0x47b   : > { %v3506_v20 = vpop.eup %3505  ;;  %v2683_v22 = vsel %vm2665_vm10, %v6079_v53, %v2650_v33  ;;  %v2649_v50 = vsel %vm2440_vm9, %v3504_v57, %v2424_v3  ;;  %3521 = vlog2.f32 %v1419_v37  ;;  %v1561_v0 = vsub.f32 %v1529_v13, %v1489_v25  ;;  %v6112_v57 = vld [vmem:[#allocation53_spill] sm:$0xff] }
 0x47c   : > { %v3508_v40 = vpop.eup %3507  ;;  %3523 = vrcp.f32 %v2559_v51  ;;  %2715 = vst [vmem:[%s4976_s17 + $0x88] sm:$0xff] %v2683_v22  ;;  %v2682_v8 = vsel %vm2665_vm10, %v6082_v34, %v2649_v50  ;;  %v1560_v53 = vsub.f32 %v1528_v61, %v1487_v52  ;;  %v2558_v59 = vadd.f32 1.0, %v3506_v20 }
 0x47d   : > { %v3510_v49 = vpop.eup %3509  ;;  %3525 = vpow2.f32 %v2884_v58  ;;  %2714 = vst [vmem:[%s4976_s17 + $0x80] sm:$0xff] %v2682_v8  ;;  %v1908_v39 = vmul.f32 0.6931472, %v3508_v40  ;;  %v1840_v35 = vpop.xlane.xlu1 %1839  ;;  %v1593_v26 = vsel %vm1184_vm5, %v1561_v0, 0.0  ;;  %v2366_v6 = vsub.f32 %v6090_v21, %v6110_v63  ;;  %v6113_v8 = vld [vmem:[#allocation54_spill] sm:$0xff] }
 0x47e   : > { %v1838_v1 = vpop.xlane.xlu0 %1837  ;;  %v3512_v28 = vpop.eup %3511  ;;  %v1906_v15 = vmul.f32 0.6931472, %v3510_v49  ;;  %3527 = vlog2.f32 %v1840_v35  ;;  %v1592_v62 = vsel %vm1184_vm5, %v1560_v53, 0.0  ;;  %v2882_v25 = vmul.f32 -1.442695, %v6111_v18  ;;  %v6114_v53 = vld [vmem:[#allocation28_spill] sm:$0xff] }
 0x47f   : > { %v1980_v29 = vsub.f32 %v1948_v27, %v1908_v39  ;;  %3529 = vlog2.f32 %v1838_v1  ;;  %v2557_v13 = vadd.f32 1.0, %v3512_v28  ;;  %v1527_v33 = vsub.f32 %v6095_v11, %v6112_v57 }
 0x480   : > { %v3514_v34 = vpop.eup %3513  ;;  %3531 = vpow2.f32 %v2883_v10  ;;  %v1979_v31 = vsub.f32 %v1947_v5, %v1906_v15  ;;  %v1526_v0 = vsub.f32 %v6098_v43, %v6113_v8  ;;  %v2881_v39 = vmul.f32 -1.442695, %v6114_v53 }
 0x481   : > { %v3516_v41 = vpop.eup %3515  ;;  %v2012_v54 = vsel %vm3851_vm4, %v1980_v29, %v1593_v26  ;;  %v2327_v12 = vmul.f32 0.6931472, %v3514_v34  ;;  %v2259_v60 = vpop.xlane.xlu1 %2258  ;;  %v1946_v5 = vsub.f32 %v6095_v11, %v6115_v44  ;;  %v6116_v26 = vld [vmem:[#allocation56_spill] sm:$0xff]  ;;  %v6121_v44 = vld [vmem:[#allocation31_spill] sm:$0xff] }
 0x482   : > { %v2257_v55 = vpop.xlane.xlu0 %2256  ;;  %v2011_v51 = vsel %vm3851_vm4, %v1979_v31, %v1592_v62  ;;  %v2325_v58 = vmul.f32 0.6931472, %v3516_v41  ;;  %3533 = vlog2.f32 %v2259_v60  ;;  %v3518_v19 = vpop.eup %3517  ;;  %v1945_v31 = vsub.f32 %v6098_v43, %v6116_v26  ;;  %v6117_v60 = vld [vmem:[#allocation57_spill] sm:$0xff] }
 0x483   : > { %v2399_v48 = vsub.f32 %v2367_v42, %v2327_v12  ;;  %3535 = vlog2.f32 %v2257_v55  ;;  %v2365_v55 = vsub.f32 %v6095_v11, %v6117_v60 }
 0x484   : > { %v3520_v56 = vpop.eup %3519  ;;  %v2398_v9 = vsub.f32 %v2366_v6, %v2325_v58  ;;  %3537 = vrcp.f32 %v2558_v59 }
 0x485   : > { %v3522_v37 = vpop.eup %3521  ;;  %v2431_v3 = vsel %vm3876_vm8, %v2399_v48, %v2012_v54  ;;  %v1485_v52 = vmul.f32 0.6931472, %v3520_v56  ;;  %v1433_v20 = vpop.xlane.xlu1 %1432  ;;  %v6118_v48 = vld [vmem:[#allocation58_spill] sm:$0xff] }
 0x486   : > { %v1431_v7 = vpop.xlane.xlu0 %1430  ;;  %v3524_v61 = vpop.eup %3523  ;;  %v2656_v22 = vsel %vm2440_vm9, %v3518_v19, %v2431_v3  ;;  %v2430_v50 = vsel %vm3876_vm8, %v2398_v9, %v2011_v51  ;;  %v1483_v40 = vmul.f32 0.6931472, %v3522_v37  ;;  %3539 = vlog2.f32 %v1433_v20  ;;  %v6119_v20 = vld [vmem:[#allocation59_spill] sm:$0xff] }
 0x487   : > { %v3526_v10 = vpop.eup %3525  ;;  %v2689_v49 = vsel %vm2665_vm10, %v6087_v17, %v2656_v22  ;;  %v2655_v30 = vsel %vm2440_vm9, %v3524_v61, %v2430_v50  ;;  %3541 = vlog2.f32 %v1431_v7  ;;  %v1559_v1 = vsub.f32 %v1527_v33, %v1485_v52 }
 0x488   : > { %v3528_v27 = vpop.eup %3527  ;;  %3543 = vrcp.f32 %v2557_v13  ;;  %2721 = vst [vmem:[%s4976_s17 + $0xb8] sm:$0xff] %v2689_v49  ;;  %v2688_v35 = vsel %vm2665_vm10, %v6090_v21, %v2655_v30  ;;  %v1558_v17 = vsub.f32 %v1526_v0, %v1483_v40  ;;  %v2564_v42 = vadd.f32 1.0, %v3526_v10 }
 0x489   : > { %v3530_v28 = vpop.eup %3529  ;;  %3545 = vpow2.f32 %v2882_v25  ;;  %2720 = vst [vmem:[%s4976_s17 + $0xb0] sm:$0xff] %v2688_v35  ;;  %v1904_v15 = vmul.f32 0.6931472, %v3528_v27  ;;  %v1852_v29 = vpop.xlane.xlu1 %1851  ;;  %v1591_v62 = vsel %vm1184_vm5, %v1559_v1, 0.0  ;;  %v2364_v56 = vsub.f32 %v6098_v43, %v6118_v48  ;;  %v6120_v27 = vld [vmem:[#allocation60_spill] sm:$0xff] }
 0x48a   : > { %v1850_v34 = vpop.xlane.xlu0 %1849  ;;  %v3532_v59 = vpop.eup %3531  ;;  %v1902_v41 = vmul.f32 0.6931472, %v3530_v28  ;;  %3547 = vlog2.f32 %v1852_v29  ;;  %v1590_v63 = vsel %vm1184_vm5, %v1558_v17, 0.0  ;;  %v1533_v7 = vsub.f32 %v6103_v47, %v6119_v20 }
 0x48b   : > { %v1978_v23 = vsub.f32 %v1946_v5, %v1904_v15  ;;  %3549 = vlog2.f32 %v1850_v34  ;;  %v2563_v33 = vadd.f32 1.0, %v3532_v59  ;;  %v2887_v5 = vmul.f32 -1.442695, %v6121_v44  ;;  %v6122_v34 = vld [vmem:[#allocation61_spill] sm:$0xff] }
 0x48c   : > { %v3534_v21 = vpop.eup %3533  ;;  %3551 = vpow2.f32 %v2881_v39  ;;  %v1977_v54 = vsub.f32 %v1945_v31, %v1902_v41  ;;  %v1532_v39 = vsub.f32 %v6106_v16, %v6120_v27  ;;  %v1952_v59 = vsub.f32 %v6103_v47, %v6122_v34 }
 0x48d   : > { %v3536_v12 = vpop.eup %3535  ;;  %v2010_v6 = vsel %vm3851_vm4, %v1978_v23, %v1591_v62  ;;  %v2323_v51 = vmul.f32 0.6931472, %v3534_v21  ;;  %v2271_v58 = vpop.xlane.xlu1 %2270  ;;  %v6123_v21 = vld [vmem:[#allocation62_spill] sm:$0xff] }
 0x48e   : > { %v2269_v19 = vpop.xlane.xlu0 %2268  ;;  %v2009_v13 = vsel %vm3851_vm4, %v1977_v54, %v1590_v63  ;;  %v2321_v25 = vmul.f32 0.6931472, %v3536_v12  ;;  %3553 = vlog2.f32 %v2271_v58  ;;  %v3538_v9 = vpop.eup %3537  ;;  %v6124_v54 = vld [vmem:[#allocation36_spill] sm:$0xff]  ;;  %v6125_v58 = vld [vmem:[#allocation63_spill] sm:$0xff] }
 0x48f   : > { %v2397_v37 = vsub.f32 %v2365_v55, %v2323_v51  ;;  %3555 = vlog2.f32 %v2269_v19  ;;  %v2886_v12 = vmul.f32 -1.442695, %v6124_v54  ;;  %v2371_v19 = vsub.f32 %v6103_v47, %v6125_v58 }
 0x490   : > { %v3540_v57 = vpop.eup %3539  ;;  %v2396_v3 = vsub.f32 %v2364_v56, %v2321_v25  ;;  %3557 = vrcp.f32 %v2564_v42  ;;  %v1951_v42 = vsub.f32 %v6106_v16, %v6123_v21  ;;  %v6131_v21 = vld [vmem:[#allocation4_spill] sm:$0xff] }
 0x491   : > { %v3542_v52 = vpop.eup %3541  ;;  %v2429_v61 = vsel %vm3876_vm8, %v2397_v37, %v2010_v6  ;;  %v1497_v22 = vmul.f32 0.6931472, %v3540_v57  ;;  %v1429_v50 = vpop.xlane.xlu1 %1428  ;;  %v6126_v37 = vld [vmem:[#allocation64_spill] sm:$0xff] }
 0x492   : > { %v1427_v40 = vpop.xlane.xlu0 %1426  ;;  %v3544_v10 = vpop.eup %3543  ;;  %v2654_v8 = vsel %vm2440_vm9, %v3538_v9, %v2429_v61  ;;  %v2428_v0 = vsel %vm3876_vm8, %v2396_v3, %v2009_v13  ;;  %v1495_v49 = vmul.f32 0.6931472, %v3542_v52  ;;  %3559 = vlog2.f32 %v1429_v50 }
 0x493   : > { %v3546_v30 = vpop.eup %3545  ;;  %v2687_v35 = vsel %vm2665_vm10, %v6095_v11, %v2654_v8  ;;  %v2653_v1 = vsel %vm2440_vm9, %v3544_v10, %v2428_v0  ;;  %3561 = vlog2.f32 %v1427_v40  ;;  %v1565_v15 = vsub.f32 %v1533_v7, %v1497_v22  ;;  %v6127_v22 = vld [vmem:[#allocation33_spill] sm:$0xff] }
 0x494   : > { %v3548_v28 = vpop.eup %3547  ;;  %3563 = vrcp.f32 %v2563_v33  ;;  %2719 = vst [vmem:[%s4976_s17 + $0xa8] sm:$0xff] %v2687_v35  ;;  %v2686_v17 = vsel %vm2665_vm10, %v6098_v43, %v2653_v1  ;;  %v1564_v11 = vsub.f32 %v1532_v39, %v1495_v49  ;;  %v2562_v55 = vadd.f32 1.0, %v3546_v30  ;;  %v6128_v8 = vld [vmem:[#allocation65_spill] sm:$0xff] }
 0x495   : > { %v3550_v29 = vpop.eup %3549  ;;  %2718 = vst [vmem:[%s4976_s17 + $0xa0] sm:$0xff] %v2686_v17  ;;  %v1916_v26 = vmul.f32 0.6931472, %v3548_v28  ;;  %v1848_v31 = vpop.xlane.xlu1 %1847  ;;  %v1597_v63 = vsel %vm1184_vm5, %v1565_v15, 0.0  ;;  %v2370_v57 = vsub.f32 %v6106_v16, %v6126_v37  ;;  %v2885_v50 = vmul.f32 -1.442695, %v6127_v22 }
 0x496   : > { %v1846_v41 = vpop.xlane.xlu0 %1845  ;;  %v3552_v23 = vpop.eup %3551  ;;  %v1914_v62 = vmul.f32 0.6931472, %v3550_v29  ;;  %3565 = vlog2.f32 %v1848_v31  ;;  %v1596_v48 = vsel %vm1184_vm5, %v1564_v11, 0.0  ;;  %v1531_v0 = vsub.f32 %v6111_v18, %v6128_v8  ;;  %v6129_v17 = vld [vmem:[#allocation66_spill] sm:$0xff]  ;;  %v6130_v11 = vld [vmem:[#allocation35_spill] sm:$0xff] }
 0x497   : > { %v1984_v60 = vsub.f32 %v1952_v59, %v1916_v26  ;;  %3567 = vlog2.f32 %v1846_v41  ;;  %v2561_v61 = vadd.f32 1.0, %v3552_v23  ;;  %v1530_v15 = vsub.f32 %v6114_v53, %v6129_v17 }
 0x498   : > { %v3554_v43 = vpop.eup %3553  ;;  %3569 = vpow2.f32 %v2887_v5  ;;  %v1983_v6 = vsub.f32 %v1951_v42, %v1914_v62  ;;  %v2888_v26 = vmul.f32 -1.442695, %v6130_v11  ;;  %v1950_v42 = vsub.f32 %v6111_v18, %v6131_v21 }
 0x499   : > { %v3556_v51 = vpop.eup %3555  ;;  %v2016_v56 = vsel %vm3851_vm4, %v1984_v60, %v1597_v63  ;;  %v2335_v13 = vmul.f32 0.6931472, %v3554_v43  ;;  %v2267_v25 = vpop.xlane.xlu1 %2266 }
 0x49a   : > { %v2265_v9 = vpop.xlane.xlu0 %2264  ;;  %v2015_v33 = vsel %vm3851_vm4, %v1983_v6, %v1596_v48  ;;  %v2333_v3 = vmul.f32 0.6931472, %v3556_v51  ;;  %3571 = vlog2.f32 %v2267_v25  ;;  %v3558_v52 = vpop.eup %3557 }
 0x49b   : > { %v2403_v20 = vsub.f32 %v2371_v19, %v2335_v13  ;;  %3573 = vlog2.f32 %v2265_v9 }
 0x49c   : > { %v3560_v7 = vpop.eup %3559  ;;  %3575 = vpow2.f32 %v2886_v12  ;;  %v2402_v40 = vsub.f32 %v2370_v57, %v2333_v3 }
 0x49d   : > { %v3562_v10 = vpop.eup %3561  ;;  %3577 = vrcp.f32 %v2562_v55  ;;  %v2435_v49 = vsel %vm3876_vm8, %v2403_v20, %v2016_v56  ;;  %v1493_v30 = vmul.f32 0.6931472, %v3560_v7  ;;  %v1441_v27 = vpop.xlane.xlu1 %1440  ;;  %v6132_v55 = vld [vmem:[#allocation7_spill] sm:$0xff] }
 0x49e   : > { %v1439_v39 = vpop.xlane.xlu0 %1438  ;;  %v3564_v35 = vpop.eup %3563  ;;  %v2660_v1 = vsel %vm2440_vm9, %v3558_v52, %v2435_v49  ;;  %v2434_v28 = vsel %vm3876_vm8, %v2402_v40, %v2015_v33  ;;  %v1491_v5 = vmul.f32 0.6931472, %v3562_v10  ;;  %3579 = vlog2.f32 %v1441_v27  ;;  %v6133_v56 = vld [vmem:[#allocation67_spill] sm:$0xff]  ;;  %v6134_v52 = vld [vmem:[#allocation68_spill] sm:$0xff]  ;;  %v6135_v49 = vld [vmem:[#allocation5_spill] sm:$0xff] }
 0x49f   : > { %v2693_v29 = vsel %vm2665_vm10, %v6103_v47, %v2660_v1  ;;  %v2659_v34 = vsel %vm2440_vm9, %v3564_v35, %v2434_v28  ;;  %3581 = vlog2.f32 %v1439_v39  ;;  %v1563_v41 = vsub.f32 %v1531_v0, %v1493_v30 }
 0x4a0   : > { %v3566_v59 = vpop.eup %3565  ;;  %3583 = vrcp.f32 %v2561_v61  ;;  %2725 = vst [vmem:[%s4976_s17 + $0xd8] sm:$0xff] %v2693_v29  ;;  %v2692_v31 = vsel %vm2665_vm10, %v6106_v16, %v2659_v34  ;;  %v1562_v47 = vsub.f32 %v1530_v15, %v1491_v5  ;;  %v1949_v63 = vsub.f32 %v6114_v53, %v6132_v55  ;;  %v6136_v34 = vld [vmem:[#allocation8_spill] sm:$0xff] }
 0x4a1   : > { %v3568_v23 = vpop.eup %3567  ;;  %3585 = vpow2.f32 %v2885_v50  ;;  %2724 = vst [vmem:[%s4976_s17 + $0xd0] sm:$0xff] %v2692_v31  ;;  %v1912_v62 = vmul.f32 0.6931472, %v3566_v59  ;;  %v1860_v12 = vpop.xlane.xlu1 %1859  ;;  %v1595_v58 = vsel %vm1184_vm5, %v1563_v41, 0.0  ;;  %v2369_v13 = vsub.f32 %v6111_v18, %v6133_v56 }
 0x4a2   : > { %v1858_v60 = vpop.xlane.xlu0 %1857  ;;  %v5468_v43 = vpop.eup %3569  ;;  %v1910_v6 = vmul.f32 0.6931472, %v3568_v23  ;;  %3587 = vlog2.f32 %v1860_v12  ;;  %v1594_v25 = vsel %vm1184_vm5, %v1562_v47, 0.0  ;;  %v2368_v20 = vsub.f32 %v6114_v53, %v6134_v52  ;;  %v6139_v52 = vld [vmem:[#allocation10_spill] sm:$0xff] }
 0x4a3   : > { %v1982_v51 = vsub.f32 %v1950_v42, %v1912_v62  ;;  %3589 = vlog2.f32 %v1858_v60  ;;  %v1537_v30 = vsub.f32 %v6130_v11, %v6135_v49  ;;  %v1536_v59 = vsub.f32 %v6121_v44, %v6136_v34  ;;  %v6137_v62 = vld [vmem:[#allocation69_spill] sm:$0xff] }
 0x4a4   : > { %v3572_v16 = vpop.eup %3571  ;;  %3591 = vpow2.f32 %v2888_v26  ;;  %v1981_v19 = vsub.f32 %v1949_v63, %v1910_v6  ;;  %v1956_v12 = vsub.f32 %v6130_v11, %v6137_v62  ;;  %v2373_v34 = vsub.f32 %v6124_v54, %v4908_v32 }
 0x4a5   : > { %v3574_v48 = vpop.eup %3573  ;;  %v2014_v9 = vsel %vm3851_vm4, %v1982_v51, %v1595_v58  ;;  %v2331_v37 = vmul.f32 0.6931472, %v3572_v16  ;;  %v1437_v57 = vpop.xlane.xlu1 %1436  ;;  %v6138_v51 = vld [vmem:[#allocation70_spill] sm:$0xff]  ;;  %v2375_v62 = vsub.f32 %v6130_v11, %v4872_v4 }
 0x4a6   : > { %v1435_v33 = vpop.xlane.xlu0 %1434  ;;  %v3576_v3 = vpop.eup %3575  ;;  %v2013_v7 = vsel %vm3851_vm4, %v1981_v19, %v1594_v25  ;;  %v2329_v61 = vmul.f32 0.6931472, %v3574_v48  ;;  %3593 = vlog2.f32 %v1437_v57  ;;  %v1955_v16 = vsub.f32 %v6121_v44, %v6138_v51 }
 0x4a7   : > { %v3578_v50 = vpop.eup %3577  ;;  %v2401_v40 = vsub.f32 %v2369_v13, %v2331_v37  ;;  %3595 = vlog2.f32 %v1435_v33  ;;  %v2566_v47 = vadd.f32 1.0, %v3576_v3 }
 0x4a8   : > { %v3580_v10 = vpop.eup %3579  ;;  %v2400_v8 = vsub.f32 %v2368_v20, %v2329_v61  ;;  %v1535_v20 = vsub.f32 %v6124_v54, %v6139_v52 }
 0x4a9   : > { %v3582_v0 = vpop.eup %3581  ;;  %v2433_v27 = vsel %vm3876_vm8, %v2401_v40, %v2014_v9  ;;  %v1505_v39 = vmul.f32 0.6931472, %v3580_v10  ;;  %v1856_v35 = vpop.xlane.xlu1 %1855  ;;  %v6140_v40 = vld [vmem:[#allocation71_spill] sm:$0xff] }
 0x4aa   : > { %v1854_v1 = vpop.xlane.xlu0 %1853  ;;  %v3584_v28 = vpop.eup %3583  ;;  %v2658_v5 = vsel %vm2440_vm9, %v3578_v50, %v2433_v27  ;;  %v2432_v17 = vsel %vm3876_vm8, %v2400_v8, %v2013_v7  ;;  %v1503_v15 = vmul.f32 0.6931472, %v3582_v0  ;;  %3597 = vlog2.f32 %v1856_v35 }
 0x4ab   : > { %v3586_v29 = vpop.eup %3585  ;;  %v2691_v26 = vsel %vm2665_vm10, %v6111_v18, %v2658_v5  ;;  %v2657_v31 = vsel %vm2440_vm9, %v3584_v28, %v2432_v17  ;;  %3599 = vlog2.f32 %v1854_v1  ;;  %v1569_v21 = vsub.f32 %v1537_v30, %v1505_v39 }
 0x4ac   : > { %v3588_v41 = vpop.eup %3587  ;;  %2723 = vst [vmem:[%s4976_s17 + $0xc8] sm:$0xff] %v2691_v26  ;;  %v2690_v23 = vsel %vm2665_vm10, %v6114_v53, %v2657_v31  ;;  %v1568_v60 = vsub.f32 %v1536_v59, %v1503_v15  ;;  %v2565_v48 = vadd.f32 1.0, %v3586_v29  ;;  %v1534_v10 = vsub.f32 %v6127_v22, %v6140_v40 }
 0x4ad   : > { %v3590_v42 = vpop.eup %3589  ;;  %2722 = vst [vmem:[%s4976_s17 + $0xc0] sm:$0xff] %v2690_v23  ;;  %v1924_v55 = vmul.f32 0.6931472, %v3588_v41  ;;  %v2275_v18 = vpop.xlane.xlu1 %2274  ;;  %v5512_v56 = vsel %vm1184_vm5, %v1569_v21, 0.0  ;;  %v2567_v0 = vadd.f32 1.0, %v5468_v43  ;;  %v1954_v27 = vsub.f32 %v6124_v54, %v4896_v2 }
 0x4ae   : > { %v2273_v63 = vpop.xlane.xlu0 %2272  ;;  %v3592_v6 = vpop.eup %3591  ;;  %v1922_v58 = vmul.f32 0.6931472, %v3590_v42  ;;  %3601 = vlog2.f32 %v2275_v18  ;;  %v1600_v9 = vsel %vm1184_vm5, %v1568_v60, 0.0  ;;  %v1953_v1 = vsub.f32 %v6127_v22, %v4898_v14 }
 0x4af   : > { %v5508_v19 = vsub.f32 %v1956_v12, %v1924_v55  ;;  %3603 = vlog2.f32 %v2273_v63  ;;  %v2568_v50 = vadd.f32 1.0, %v3592_v6  ;;  %v2372_v26 = vsub.f32 %v6127_v22, %v4910_v38 }
 0x4b0   : > { %v3594_v53 = vpop.eup %3593  ;;  %v5514_v13 = vsub.f32 %v1955_v16, %v1922_v58  ;;  %3605 = vrcp.f32 %v2566_v47  ;;  %v2374_v38 = vsub.f32 %v6121_v44, %v4874_v46 }
 0x4b1   : > { %v3596_v25 = vpop.eup %3595  ;;  %v2020_v37 = vsel %vm3851_vm4, %v5508_v19, %v5512_v56  ;;  %v1501_v57 = vmul.f32 0.6931472, %v3594_v53  ;;  %v2279_v33 = vpop.xlane.xlu1 %2278 }
 0x4b2   : > { %v2277_v3 = vpop.xlane.xlu0 %2276  ;;  %v2019_v7 = vsel %vm3851_vm4, %v5514_v13, %v1600_v9  ;;  %v1499_v61 = vmul.f32 0.6931472, %v3596_v25  ;;  %3607 = vlog2.f32 %v2279_v33 }
 0x4b3   : > { %3609 = vlog2.f32 %v2277_v3  ;;  %v1567_v49 = vsub.f32 %v1535_v20, %v1501_v57 }
 0x4b4   : > { %v3598_v8 = vpop.eup %3597  ;;  %3611 = vrcp.f32 %v2565_v48  ;;  %v1566_v39 = vsub.f32 %v1534_v10, %v1499_v61 }
 0x4b5   : > { %v3600_v30 = vpop.eup %3599  ;;  %v1920_v35 = vmul.f32 0.6931472, %v3598_v8  ;;  %3613 = vrcp.f32 %v2568_v50  ;;  %v1599_v15 = vsel %vm1184_vm5, %v1567_v49, 0.0 }
 0x4b6   : > { %v1918_v28 = vmul.f32 0.6931472, %v3600_v30  ;;  %3615 = vrcp.f32 %v2567_v0  ;;  %v1598_v2 = vsel %vm1184_vm5, %v1566_v39, 0.0 }
 0x4b7   : > { %v1986_v5 = vsub.f32 %v1954_v27, %v1920_v35 }
 0x4b8   : > { %v3602_v17 = vpop.eup %3601  ;;  %v1985_v29 = vsub.f32 %v1953_v1, %v1918_v28 }
 0x4b9   : > { %v3604_v43 = vpop.eup %3603  ;;  %v2018_v59 = vsel %vm3851_vm4, %v1986_v5, %v1599_v15  ;;  %v2339_v14 = vmul.f32 0.6931472, %v3602_v17 }
 0x4ba   : > { %v2017_v31 = vsel %vm3851_vm4, %v1985_v29, %v1598_v2  ;;  %v2337_v41 = vmul.f32 0.6931472, %v3604_v43  ;;  %v3606_v23 = vpop.eup %3605 }
 0x4bb   : > { %v2405_v21 = vsub.f32 %v2373_v34, %v2339_v14 }
 0x4bc   : > { %v3608_v42 = vpop.eup %3607  ;;  %v2404_v47 = vsub.f32 %v2372_v26, %v2337_v41 }
 0x4bd   : > { %v3610_v32 = vpop.eup %3609  ;;  %v2437_v12 = vsel %vm3876_vm8, %v2405_v21, %v2018_v59  ;;  %v2343_v60 = vmul.f32 0.6931472, %v3608_v42 }
 0x4be   : > { %v3612_v55 = vpop.eup %3611  ;;  %v2662_v36 = vsel %vm2440_vm9, %v3606_v23, %v2437_v12  ;;  %v2436_v18 = vsel %vm3876_vm8, %v2404_v47, %v2017_v31  ;;  %v2341_v63 = vmul.f32 0.6931472, %v3610_v32 }
 0x4bf   : > { %v2695_v4 = vsel %vm2665_vm10, %v6124_v54, %v2662_v36  ;;  %v2661_v6 = vsel %vm2440_vm9, %v3612_v55, %v2436_v18  ;;  %v2407_v51 = vsub.f32 %v2375_v62, %v2343_v60  ;;  %v3614_v58 = vpop.eup %3613 }
 0x4c0   : > { %2727 = vst [vmem:[%s4976_s17 + $0xe8] sm:$0xff] %v2695_v4  ;;  %v2694_v46 = vsel %vm2665_vm10, %v6127_v22, %v2661_v6  ;;  %v2406_v16 = vsub.f32 %v2374_v38, %v2341_v63  ;;  %v3616_v53 = vpop.eup %3615 }
 0x4c1   : > { %2726 = vst [vmem:[%s4976_s17 + $0xe0] sm:$0xff] %v2694_v46  ;;  %v2439_v19 = vsel %vm3876_vm8, %v2407_v51, %v2020_v37 }
 0x4c2   : > { %v2664_v54 = vsel %vm2440_vm9, %v3614_v58, %v2439_v19  ;;  %v2438_v48 = vsel %vm3876_vm8, %v2406_v16, %v2019_v7 }
 0x4c3   : > { %v2697_v56 = vsel %vm2665_vm10, %v6130_v11, %v2664_v54  ;;  %v2663_v22 = vsel %vm2440_vm9, %v3616_v53, %v2438_v48 }
 0x4c4   : > { %2729 = vst [vmem:[%s4976_s17 + $0xf8] sm:$0xff] %v2697_v56  ;;  %v2696_v13 = vsel %vm2665_vm10, %v6121_v44, %v2663_v22 }
 0x4c5   : > { %2728 = vst [vmem:[%s4976_s17 + $0xf0] sm:$0xff] %v2696_v13 }
 0x4c6 PF: > { %s17_s24 = sadd.s32 1, %s3623_s24  }
 0x4c7   : > { %p14_p4 = scmp.ge.s32.totalorder %s17_s24, 4  }
 0x4c9   :  { %16 = sbr.rel (!%p14_p4) target bundleno = 1 (0x1), region = 78 }

// kernel: simple_conv_net_forward.2
= control target key start
LH: loop header
LB: loop body
LE: loop exit
PB: predicated region body
PF: predicated region fallthrough
CT: control target
= control target key end

     0   :  { %s3051_s18 = smov 0   ;;  %s3825_s0 = inlined_call_operand.vmem [shape: f32[2,20,160], index: 0, kind: input, shape index: {}]   ;;  %s3826_s1 = inlined_call_operand.vmem [shape: bf16[3,160,288], index: 1, kind: input, shape index: {}]   ;;  %s3827_s2 = inlined_call_operand.vmem [shape: f32[1,288], index: 2, kind: input, shape index: {}]   ;;  %s3828_s3 = inlined_call_operand.vmem [shape: bf16[3,288,256], index: 3, kind: input, shape index: {}]   ;;  %s3829_s4 = inlined_call_operand.vmem [shape: f32[1,256], index: 4, kind: input, shape index: {}]   ;;  %s3830_s5 = inlined_call_operand.vmem [shape: bf16[2,16,256], index: 5, kind: output, shape index: {}]  }
   0x1 LB: > { %s2312_s19 = sadd.s32 4294967295, %s3018_s18   ;;  %p2316_p0 = scmp.ge.s32.totalorder %s3018_s18, 1  ;;  %s3018_s18 = sphi %s3051_s18, %s15_s18  }
   0x2   : > { %p187_p1 = scmp.lt.s32.totalorder %s3018_s18, 3 }
   0x4   : > { %p188_p2 = pnand %p2316_p0, %p187_p1 }
   0x5   : > { %v2730_v0 = vld [vmem:[%s3826_s1 + $0xf4] ss:$12 sps:$4 sm:$0xff] (!%p188_p2)   ;;  %v2732_v1 = vld [vmem:[%s3826_s1 + $0x4] ss:$12 sps:$4 sm:$0xff] (!%p188_p2)   ;;  %v2736_v4 = vld [vmem:[%s3826_s1 + $0x10c] ss:$12 sps:$4 sm:$0xff] (!%p188_p2)  }
   0x6   : > { %191 = sbr.rel (%p188_p2) target bundleno = 707 (0x2c3), region = 40  ;;  %517 = vmatprep.subr.bf16.mxu1 (!%p188_p2), %v2730_v0  ;;  %v2734_v2 = vld [vmem:[%s3826_s1 + $0xf0] ss:$12 sps:$4 sm:$0xff] (!%p188_p2)   ;;  %v2735_v3 = vld [vmem:[%s3826_s1] ss:$12 sps:$4 sm:$0xff] (!%p188_p2)   ;;  %780 = vmatprep.subr.bf16.mxu0 (!%p188_p2), %v2732_v1  ;;  %p215_p3 = scmp.lt.s32.totalorder (!%p188_p2), %s2312_s19, 1 }
   0x7   : > { %518 = vmatpush1.bf16.msra.mxu1 (!%p188_p2), %v2734_v2  ;;  %781 = vmatpush1.bf16.msra.mxu0 (!%p188_p2), %v2735_v3  ;;  %v2738_v5 = vld [vmem:[%s3826_s1 + $0x1c] ss:$12 sps:$4 sm:$0xff] (!%p188_p2)   ;;  %v2741_v7 = vld [vmem:[%s3826_s1 + $0x18] ss:$12 sps:$4 sm:$0xff] (!%p188_p2)   ;;  %v2744_v9 = vld [vmem:[%s3826_s1 + $0x34] ss:$12 sps:$4 sm:$0xff] (!%p188_p2)  }
   0x8   : > { %v2740_v6 = vld [vmem:[%s3826_s1 + $0x108] ss:$12 sps:$4 sm:$0xff] (!%p188_p2)   ;;  %519 = vmatprep.subr.bf16.mxu1 (!%p188_p2), %v2736_v4  ;;  %782 = vmatprep.subr.bf16.mxu0 (!%p188_p2), %v2738_v5  ;;  %v2742_v8 = vld [vmem:[%s3826_s1 + $0x124] ss:$12 sps:$4 sm:$0xff] (!%p188_p2)   ;;  %v2746_v10 = vld [vmem:[%s3826_s1 + $0x120] ss:$12 sps:$4 sm:$0xff] (!%p188_p2)  }
   0x9   : > { %v2747_v11 = vld [vmem:[%s3826_s1 + $0x30] ss:$12 sps:$4 sm:$0xff] (!%p188_p2)   ;;  %v2750_v13 = vld [vmem:[%s3826_s1 + $0x4c] ss:$12 sps:$4 sm:$0xff] (!%p188_p2)   ;;  %v2753_v15 = vld [vmem:[%s3826_s1 + $0x48] ss:$12 sps:$4 sm:$0xff] (!%p188_p2)  }
   0xa   : > { %v2748_v12 = vld [vmem:[%s3826_s1 + $0x13c] ss:$12 sps:$4 sm:$0xff] (!%p188_p2)   ;;  %v2752_v14 = vld [vmem:[%s3826_s1 + $0x138] ss:$12 sps:$4 sm:$0xff] (!%p188_p2)   ;;  %v2754_v16 = vld [vmem:[%s3826_s1 + $0x154] ss:$12 sps:$4 sm:$0xff] (!%p188_p2)  }
   0xb   : > { %520 = vmatpush1.bf16.msra.mxu1 (!%p188_p2), %v2740_v6  ;;  %783 = vmatpush1.bf16.msra.mxu0 (!%p188_p2), %v2741_v7  ;;  %v2756_v17 = vld [vmem:[%s3826_s1 + $0x64] ss:$12 sps:$4 sm:$0xff] (!%p188_p2)   ;;  %v2759_v19 = vld [vmem:[%s3826_s1 + $0x60] ss:$12 sps:$4 sm:$0xff] (!%p188_p2)   ;;  %v2762_v21 = vld [vmem:[%s3826_s1 + $0x7c] ss:$12 sps:$4 sm:$0xff] (!%p188_p2)  }
   0xc   : > { %521 = vmatprep.subr.bf16.mxu1 (!%p188_p2), %v2742_v8  ;;  %784 = vmatprep.subr.bf16.mxu0 (!%p188_p2), %v2744_v9  ;;  %v2758_v18 = vld [vmem:[%s3826_s1 + $0x150] ss:$12 sps:$4 sm:$0xff] (!%p188_p2)   ;;  %v2760_v20 = vld [vmem:[%s3826_s1 + $0x16c] ss:$12 sps:$4 sm:$0xff] (!%p188_p2)   ;;  %v2764_v22 = vld [vmem:[%s3826_s1 + $0x168] ss:$12 sps:$4 sm:$0xff] (!%p188_p2)  }
   0xd   : > { %s3832_s19 = smov (!%p215_p3, %s2312_s19), 1  ;;  %v2765_v23 = vld [vmem:[%s3826_s1 + $0x78] ss:$12 sps:$4 sm:$0xff]   ;;  %v2768_v25 = vld [vmem:[%s3826_s1 + $0x94] ss:$12 sps:$4 sm:$0xff]   ;;  %vm510_vm0 = vcmask 261120  }
   0xe   : > { %s2720_s20 = smul.u32 48, %s3832_s19  ;;  %v2766_v24 = vld [vmem:[%s3826_s1 + $0x184] ss:$12 sps:$4 sm:$0xff]   ;;  %v2770_v26 = vld [vmem:[%s3826_s1 + $0x180] ss:$12 sps:$4 sm:$0xff]   ;;  %v3020_v4 = vmov 0  }
   0xf   : > { %522 = vmatpush1.bf16.msra.mxu1 %v2746_v10  ;;  %785 = vmatpush1.bf16.msra.mxu0 %v2747_v11  ;;  %v2771_v27 = vld [vmem:[%s3826_s1 + $0x90] ss:$12 sps:$4 sm:$0xff]   ;;  %v2774_v29 = vld [vmem:[%s3826_s1 + $0xac] ss:$12 sps:$4 sm:$0xff]   ;;  %v2777_v31 = vld [vmem:[%s3826_s1 + $0xa8] ss:$12 sps:$4 sm:$0xff]  }
  0x10   : > { %523 = vmatprep.subr.bf16.mxu1 %v2748_v12  ;;  %786 = vmatprep.subr.bf16.mxu0 %v2750_v13  ;;  %s219_s8 = scalar_lea.vmem %s3825_s0, %s2720_s20  ;;  %v2772_v28 = vld [vmem:[%s3826_s1 + $0x19c] ss:$12 sps:$4 sm:$0xff]   ;;  %v2776_v30 = vld [vmem:[%s3826_s1 + $0x198] ss:$12 sps:$4 sm:$0xff]   ;;  %vm317_vm1 = vsmask.f32 7424 }
  0x11   : > { %v227_v32 = vld [vmem:[%s219_s8 + $0x8] sm:$0xff]  ;;  %v229_v33 = vld [vmem:[%s219_s8 + $0x18] sm:$0xff]  ;;  %v226_v35 = vld [vmem:[%s219_s8] sm:$0xff]  ;;  %vm924_vm2 = vcmask 1046528  }
  0x12   : > { %v231_v34 = vld [vmem:[%s219_s8 + $0x28] sm:$0xf]  ;;  %v3165_v36 = vpack.c.bf16 %v229_v33, %v227_v32  ;;  %v228_v38 = vld [vmem:[%s219_s8 + $0x10] sm:$0xff]  ;;  %v230_v39 = vld [vmem:[%s219_s8 + $0x20] sm:$0xf]  ;;  %s2689_s8 = sshll.u32 %s3832_s19, 4 }
  0x13   : > { %524 = vmatpush1.bf16.msra.mxu1 %v2752_v14  ;;  %787 = vmatpush1.bf16.msra.mxu0 %v2753_v15  ;;  %v3167_v37 = vpack.c.bf16 %v231_v34, %v231_v34  ;;  %v2778_v40 = vld [vmem:[%s3826_s1 + $0x1b4] ss:$12 sps:$4 sm:$0xff]   ;;  %v2780_v41 = vld [vmem:[%s3826_s1 + $0xc4] ss:$12 sps:$4 sm:$0xff]   ;;  %v3175_v42 = vpack.c.bf16 %v228_v38, %v226_v35  ;;  %v3177_v43 = vpack.c.bf16 %v230_v39, %v230_v39  ;;  %v2784_v54 = vld [vmem:[%s3826_s1 + $0x1cc] ss:$12 sps:$4 sm:$0xff]   ;;  %s224_s11 = scalar_lea.vmem %s3830_s5, %s2689_s8 }
  0x14   : > { %525 = vmatprep.subr.bf16.mxu1 %v2754_v16  ;;  %788 = vmatprep.subr.bf16.mxu0 %v2756_v17  ;;  %v2782_v44 = vld [vmem:[%s3826_s1 + $0x1b0] ss:$12 sps:$4 sm:$0xff]   ;;  %v331_v45 = vshrl.u32 %v3165_v36, 16  ;;  %v333_v46 = vshll.u32 %v3165_v36, 16  ;;  %v2783_v48 = vld [vmem:[%s3826_s1 + $0xc0] ss:$12 sps:$4 sm:$0xff]  }
  0x15   : > { %v338_v47 = vshll.u32 %v3167_v37, 16  ;;  %2424 = vmatprep.mubr.msk.bf16.mxu0 %vm510_vm0, %v3165_v36  ;;  %v321_v49 = vshll.u32 %v3175_v42, 16  ;;  %v319_v52 = vshrl.u32 %v3175_v42, 16  ;;  %v326_v53 = vshll.u32 %v3177_v43, 16  ;;  %v2786_v55 = vld [vmem:[%s3826_s1 + $0xdc] ss:$12 sps:$4 sm:$0xff]  }
  0x16   : > { %v335_v50 = vrot.slane %v333_v46, 1  ;;  %v2788_v58 = vld [vmem:[%s3826_s1 + $0x1c8] ss:$12 sps:$4 sm:$0xff]   ;;  %v2789_v59 = vld [vmem:[%s3826_s1 + $0xd8] ss:$12 sps:$4 sm:$0xff]   ;;  %v345_v0 = vshrl.u32 %v3167_v37, 16 }
  0x17   : > { %526 = vmatpush1.bf16.msra.mxu1 %v2758_v18  ;;  %789 = vmatpush1.bf16.msra.mxu0 %v2759_v19  ;;  %v340_v51 = vrot.slane %v338_v47, 1  ;;  %v323_v56 = vrot.slane %v321_v49, 1  ;;  %v328_v62 = vrot.slane %v326_v53, 1  ;;  %v2792_v63 = vld [vmem:[%s3826_s1 + $0x1e4] ss:$12 sps:$4 sm:$0xff]   ;;  %v342_v8 = vshrl.u32 %v3177_v43, 16 }
  0x18   : > { %527 = vmatprep.subr.bf16.mxu1 %v2760_v20  ;;  %790 = vmatprep.subr.bf16.mxu0 %v2762_v21  ;;  %v336_v57 = vor.u32 %v335_v50, %v331_v45  ;;  %v2790_v2 = vld [vmem:[%s3826_s1 + $0x1e0] ss:$12 sps:$4 sm:$0xff]   ;;  %v2793_v3 = vld [vmem:[%s3826_s1 + $0xf8] ss:$12 sps:$4 sm:$0xff]   ;;  %v2796_v5 = vld [vmem:[%s3826_s1 + $0x1fc] ss:$12 sps:$4 sm:$0xff]  }
  0x19   : > { %v324_v61 = vor.u32 %v323_v56, %v319_v52  ;;  %v3224_v6 = vor.u32 %v345_v0, %v340_v51  ;;  %v2794_v7 = vld [vmem:[%s3826_s1 + $0x1f8] ss:$12 sps:$4 sm:$0xff]   ;;  %v2797_v9 = vld [vmem:[%s3826_s1 + $0x110] ss:$12 sps:$4 sm:$0xff]   ;;  %v2800_v10 = vld [vmem:[%s3826_s1 + $0x214] ss:$12 sps:$4 sm:$0xff]   ;;  %v3246_v12 = vor.u32 %v342_v8, %v328_v62 }
  0x1a   : > { %v341_v60 = vsel %vm317_vm1, %v336_v57, %v340_v51  ;;  %v2798_v11 = vld [vmem:[%s3826_s1 + $0x210] ss:$12 sps:$4 sm:$0xff]   ;;  %v928_v13 = vrot.slane %v3165_v36, 1  ;;  %v3250_v14 = vrot.slane %v3167_v37, 1  ;;  %v2801_v15 = vld [vmem:[%s3826_s1 + $0x128] ss:$12 sps:$4 sm:$0xff]  }
  0x1b   : > { %528 = vmatpush1.bf16.msra.mxu1 %v2764_v22  ;;  %791 = vmatpush1.bf16.msra.mxu0 %v2765_v23  ;;  %v3212_v1 = vsel %vm317_vm1, %v324_v61, %v328_v62  ;;  %v2804_v16 = vld [vmem:[%s3826_s1 + $0x22c] ss:$12 sps:$4 sm:$0xff]   ;;  %v2802_v17 = vld [vmem:[%s3826_s1 + $0x228] ss:$12 sps:$4 sm:$0xff]   ;;  %v2808_v20 = vld [vmem:[%s3826_s1 + $0x244] ss:$12 sps:$4 sm:$0xff]  }
  0x1c   : > { %529 = vmatprep.subr.bf16.mxu1 %v2766_v24  ;;  %792 = vmatprep.subr.bf16.mxu0 %v2768_v25  ;;  %v3266_v18 = vsel %vm924_vm2, %v928_v13, %v3250_v14  ;;  %v2805_v19 = vld [vmem:[%s3826_s1 + $0x140] ss:$12 sps:$4 sm:$0xff]   ;;  %v2809_v22 = vld [vmem:[%s3826_s1 + $0x158] ss:$12 sps:$4 sm:$0xff]   ;;  %v2812_v23 = vld [vmem:[%s3826_s1 + $0x25c] ss:$12 sps:$4 sm:$0xff]  }
  0x1d   : > { %2390 = vmatprep.mubr.msk.bf16.mxu1 %vm510_vm0, %v341_v60  ;;  %v2806_v21 = vld [vmem:[%s3826_s1 + $0x240] ss:$12 sps:$4 sm:$0xff]   ;;  %v2810_v24 = vld [vmem:[%s3826_s1 + $0x258] ss:$12 sps:$4 sm:$0xff]   ;;  %v2813_v25 = vld [vmem:[%s3826_s1 + $0x170] ss:$12 sps:$4 sm:$0xff]  }
  0x1e   : > { %v2824_v32 = vld [vmem:[%s3826_s1 + $0x2a4] ss:$12 sps:$4 sm:$0xff]   ;;  %v2822_v33 = vld [vmem:[%s3826_s1 + $0x2a0] ss:$12 sps:$4 sm:$0xff]   ;;  %v2828_v35 = vld [vmem:[%s3826_s1 + $0x2bc] ss:$12 sps:$4 sm:$0xff]  }
  0x1f   : > { %530 = vmatpush1.bf16.msra.mxu1 %v2770_v26  ;;  %793 = vmatpush1.bf16.msra.mxu0 %v2771_v27  ;;  %v2816_v26 = vld [vmem:[%s3826_s1 + $0x274] ss:$12 sps:$4 sm:$0xff]   ;;  %v2814_v27 = vld [vmem:[%s3826_s1 + $0x270] ss:$12 sps:$4 sm:$0xff]   ;;  %v2825_v34 = vld [vmem:[%s3826_s1 + $0x1b8] ss:$12 sps:$4 sm:$0xff]  }
  0x20   : > { %531 = vmatprep.subr.bf16.mxu1 %v2772_v28  ;;  %794 = vmatprep.subr.bf16.mxu0 %v2774_v29  ;;  %v2817_v28 = vld [vmem:[%s3826_s1 + $0x188] ss:$12 sps:$4 sm:$0xff]   ;;  %v2820_v29 = vld [vmem:[%s3826_s1 + $0x28c] ss:$12 sps:$4 sm:$0xff]   ;;  %v2829_v39 = vld [vmem:[%s3826_s1 + $0x1d0] ss:$12 sps:$4 sm:$0xff]  }
  0x21   : > { %v2826_v38 = vld [vmem:[%s3826_s1 + $0x2b8] ss:$12 sps:$4 sm:$0xff]   ;;  %v2831_v46 = vld [vmem:[%s3826_s1 + $0x20] ss:$12 sps:$4 sm:$0xff]   ;;  %v2834_v49 = vld [vmem:[%s3826_s1 + $0x68] ss:$12 sps:$4 sm:$0xff]  }
  0x22   : > { %v2832_v47 = vld [vmem:[%s3826_s1 + $0x38] ss:$12 sps:$4 sm:$0xff]   ;;  %v2835_v50 = vld [vmem:[%s3826_s1 + $0x80] ss:$12 sps:$4 sm:$0xff]   ;;  %v2837_v51 = vld [vmem:[%s3826_s1 + $0xb0] ss:$12 sps:$4 sm:$0xff]  }
  0x23   : > { %532 = vmatpush1.bf16.msra.mxu1 %v2776_v30  ;;  %795 = vmatpush1.bf16.msra.mxu0 %v2777_v31  ;;  %v2818_v30 = vld [vmem:[%s3826_s1 + $0x288] ss:$12 sps:$4 sm:$0xff]   ;;  %v2821_v31 = vld [vmem:[%s3826_s1 + $0x1a0] ss:$12 sps:$4 sm:$0xff]   ;;  %v2843_v61 = vld [vmem:[%s3826_s1 + $0x230] ss:$12 sps:$4 sm:$0xff]  }
  0x24   : > { %533 = vmatprep.subr.bf16.mxu1 %v2778_v40  ;;  %796 = vmatprep.subr.bf16.mxu0 %v2780_v41  ;;  %v925_v40 = vrot.slane %v3175_v42, 1  ;;  %v3336_v41 = vrot.slane %v3177_v43, 1  ;;  %v2838_v52 = vld [vmem:[%s3826_s1 + $0xc8] ss:$12 sps:$4 sm:$0xff]   ;;  %v2839_v53 = vld [vmem:[%s3826_s1 + $0xe0] ss:$12 sps:$4 sm:$0xff]  }
  0x25   : > { %v2861_v56 = vld [vmem:[%s3828_s3 + $0x124] ss:$8 sps:$4 sm:$0xff]   ;;  %v2859_v57 = vld [vmem:[%s3828_s3 + $0x120] ss:$8 sps:$4 sm:$0xff]   ;;  %v2879_v62 = vld [vmem:[%s3828_s3 + $0x154] ss:$8 sps:$4 sm:$0xff]  }
  0x26   : > { %v3344_v45 = vsel %vm924_vm2, %v925_v40, %v3336_v41  ;;  %v2885_v0 = vld [vmem:[%s3828_s3 + $0x164] ss:$8 sps:$4 sm:$0xff]   ;;  %v2895_v8 = vld [vmem:[%s3828_s3 + $0x180] ss:$8 sps:$4 sm:$0xff]  }
  0x27   : > { %534 = vmatpush1.bf16.msra.mxu1 %v2782_v44  ;;  %797 = vmatpush1.bf16.msra.mxu0 %v2783_v48  ;;  %v2830_v44 = vld [vmem:[%s3826_s1 + $0x8] ss:$12 sps:$4 sm:$0xff]   ;;  %v2833_v48 = vld [vmem:[%s3826_s1 + $0x50] ss:$12 sps:$4 sm:$0xff]   ;;  %v2909_v13 = vld [vmem:[%s3828_s3 + $0x1a4] ss:$8 sps:$4 sm:$0xff]  }
  0x28   : > { %535 = vmatprep.subr.bf16.mxu1 %v2784_v54  ;;  %798 = vmatprep.subr.bf16.mxu0 %v2786_v55  ;;  %v2840_v54 = vld [vmem:[%s3826_s1 + $0x1e8] ss:$12 sps:$4 sm:$0xff]   ;;  %v2841_v55 = vld [vmem:[%s3826_s1 + $0x200] ss:$12 sps:$4 sm:$0xff]  }
  0x29   : > { %v2942_v40 = vld [vmem:[%s3828_s3 + $0x204] ss:$8 sps:$4 sm:$0xff]  }
  0x2b   : > { %536 = vmatpush1.bf16.msra.mxu1 %v2788_v58  ;;  %799 = vmatpush1.bf16.msra.mxu0 %v2789_v59  ;;  %v2865_v58 = vld [vmem:[%s3828_s3 + $0x130] ss:$8 sps:$4 sm:$0xff]   ;;  %v2873_v59 = vld [vmem:[%s3828_s3 + $0x144] ss:$8 sps:$4 sm:$0xff]  }
  0x2c   : > { %568 = vmatprep.subr.bf16.mxu1 %v3020_v4  ;;  %1099 = vmatprep.subr.bf16.mxu0 %v2792_v63  ;;  %v2844_v63 = vld [vmem:[%s3826_s1 + $0x248] ss:$12 sps:$4 sm:$0xff]  }
  0x2e   : > { %550 = vmatmul.mubr.bf16.vlgmr.msra.gmra.mrb[0].mxu1 %v3212_v1  ;;  %813 = vmatmul.mubr.bf16.vlgmr.msra.gmra.mrb[0].mxu0 %v3175_v42 }
  0x2f   : > { %569 = vmatpush1.bf16.msra.mxu1 %v2793_v3  ;;  %1100 = vmatpush1.bf16.msra.mxu0 %v2790_v2  ;;  %v2845_v2 = vld [vmem:[%s3826_s1 + $0x260] ss:$12 sps:$4 sm:$0xff]   ;;  %v2891_v3 = vld [vmem:[%s3828_s3 + $0x174] ss:$8 sps:$4 sm:$0xff]  }
  0x30   : > { %570 = vmatprep.subr.bf16.mxu1 %v3020_v4  ;;  %1101 = vmatprep.subr.bf16.mxu0 %v2796_v5  ;;  %v2889_v5 = vld [vmem:[%s3828_s3 + $0x170] ss:$8 sps:$4 sm:$0xff]  }
  0x31   : > { %2391 = vmatprep.mubr.msk.bf16.mxu1 %vm510_vm0, %v3224_v6  ;;  %2425 = vmatprep.mubr.msk.bf16.mxu0 %vm510_vm0, %v3167_v37 }
  0x33   : > { %571 = vmatpush1.bf16.msra.mxu1 %v2797_v9  ;;  %1102 = vmatpush1.bf16.msra.mxu0 %v2794_v7  ;;  %v2897_v7 = vld [vmem:[%s3828_s3 + $0x184] ss:$8 sps:$4 sm:$0xff]   ;;  %v2847_v9 = vld [vmem:[%s3826_s1 + $0x290] ss:$12 sps:$4 sm:$0xff]  }
  0x34   : > { %572 = vmatprep.subr.bf16.mxu1 %v3020_v4  ;;  %1103 = vmatprep.subr.bf16.mxu0 %v2800_v10  ;;  %v2903_v10 = vld [vmem:[%s3828_s3 + $0x194] ss:$8 sps:$4 sm:$0xff]  }
  0x36   : > { %560 = vmatmul.mubr.bf16.gmra.mrb[4].mxu1 %v3246_v12  ;;  %823 = vmatmul.mubr.bf16.gmra.mrb[4].mxu0 %v3177_v43 }
  0x37   : > { %573 = vmatpush1.bf16.msra.mxu1 %v2801_v15  ;;  %1104 = vmatpush1.bf16.msra.mxu0 %v2798_v11  ;;  %v2901_v11 = vld [vmem:[%s3828_s3 + $0x190] ss:$8 sps:$4 sm:$0xff]   ;;  %v2907_v15 = vld [vmem:[%s3828_s3 + $0x1a0] ss:$8 sps:$4 sm:$0xff]  }
  0x38   : > { %574 = vmatprep.subr.bf16.mxu1 %v3020_v4  ;;  %1105 = vmatprep.subr.bf16.mxu0 %v2804_v16  ;;  %v2849_v16 = vld [vmem:[%s3826_s1 + $0x2c0] ss:$12 sps:$4 sm:$0xff]  }
  0x39   : > { %2392 = vmatprep.mubr.msk.bf16.mxu1 %vm510_vm0, %v341_v60  ;;  %2498 = vmatprep.mubr.msk.bf16.mxu0 %vm510_vm0, %v3266_v18  ;;  %v2871_v60 = vld [vmem:[%s3828_s3 + $0x140] ss:$8 sps:$4 sm:$0xff]  }
  0x3b   : > { %575 = vmatpush1.bf16.msra.mxu1 %v2805_v19  ;;  %1106 = vmatpush1.bf16.msra.mxu0 %v2802_v17  ;;  %v2915_v17 = vld [vmem:[%s3828_s3 + $0x1b4] ss:$8 sps:$4 sm:$0xff]   ;;  %v2913_v19 = vld [vmem:[%s3828_s3 + $0x1b0] ss:$8 sps:$4 sm:$0xff]  }
  0x3c   : > { %576 = vmatprep.subr.bf16.mxu1 %v3020_v4  ;;  %1107 = vmatprep.subr.bf16.mxu0 %v2808_v20  ;;  %v2850_v20 = vld [vmem:[%s3828_s3] ss:$8 sps:$4 sm:$0xff]  }
  0x3f   : > { %577 = vmatpush1.bf16.msra.mxu1 %v2809_v22  ;;  %1108 = vmatpush1.bf16.msra.mxu0 %v2806_v21  ;;  %v2855_v21 = vld [vmem:[%s3828_s3 + $0x14] ss:$8 sps:$4 sm:$0xff]   ;;  %v2853_v22 = vld [vmem:[%s3828_s3 + $0x10] ss:$8 sps:$4 sm:$0xff]  }
  0x40   : > { %578 = vmatprep.subr.bf16.mxu1 %v3020_v4  ;;  %1109 = vmatprep.subr.bf16.mxu0 %v2812_v23  ;;  %v2921_v23 = vld [vmem:[%s3828_s3 + $0x1c4] ss:$8 sps:$4 sm:$0xff]  }
  0x43   : > { %579 = vmatpush1.bf16.msra.mxu1 %v2813_v25  ;;  %1110 = vmatpush1.bf16.msra.mxu0 %v2810_v24  ;;  %v2858_v24 = vld [vmem:[%s3828_s3 + $0x24] ss:$8 sps:$4 sm:$0xff]   ;;  %v2919_v25 = vld [vmem:[%s3828_s3 + $0x1c0] ss:$8 sps:$4 sm:$0xff]  }
  0x44   : > { %580 = vmatprep.subr.bf16.mxu1 %v3020_v4  ;;  %1111 = vmatprep.subr.bf16.mxu0 %v2816_v26  ;;  %v2927_v26 = vld [vmem:[%s3828_s3 + $0x1d4] ss:$8 sps:$4 sm:$0xff]  }
  0x47   : > { %581 = vmatpush1.bf16.msra.mxu1 %v2817_v28  ;;  %1112 = vmatpush1.bf16.msra.mxu0 %v2814_v27  ;;  %v2864_v27 = vld [vmem:[%s3828_s3 + $0x34] ss:$8 sps:$4 sm:$0xff]   ;;  %v2925_v28 = vld [vmem:[%s3828_s3 + $0x1d0] ss:$8 sps:$4 sm:$0xff]  }
  0x48   : > { %582 = vmatprep.subr.bf16.mxu1 %v3020_v4  ;;  %1113 = vmatprep.subr.bf16.mxu0 %v2820_v29  ;;  %v2862_v29 = vld [vmem:[%s3828_s3 + $0x30] ss:$8 sps:$4 sm:$0xff]  }
  0x4b   : > { %583 = vmatpush1.bf16.msra.mxu1 %v2821_v31  ;;  %1114 = vmatpush1.bf16.msra.mxu0 %v2818_v30  ;;  %v2933_v30 = vld [vmem:[%s3828_s3 + $0x1e4] ss:$8 sps:$4 sm:$0xff]  }
  0x4c   : > { %584 = vmatprep.subr.bf16.mxu1 %v3020_v4  ;;  %1115 = vmatprep.subr.bf16.mxu0 %v2824_v32  ;;  %v2870_v31 = vld [vmem:[%s3828_s3 + $0x44] ss:$8 sps:$4 sm:$0xff]   ;;  %v2931_v32 = vld [vmem:[%s3828_s3 + $0x1e0] ss:$8 sps:$4 sm:$0xff]  }
  0x4f   : > { %585 = vmatpush1.bf16.msra.mxu1 %v2825_v34  ;;  %1116 = vmatpush1.bf16.msra.mxu0 %v2822_v33  ;;  %v2868_v33 = vld [vmem:[%s3828_s3 + $0x40] ss:$8 sps:$4 sm:$0xff]   ;;  %v2939_v34 = vld [vmem:[%s3828_s3 + $0x1f4] ss:$8 sps:$4 sm:$0xff]  }
  0x50   : > { %586 = vmatprep.subr.bf16.mxu1 %v3020_v4  ;;  %1117 = vmatprep.subr.bf16.mxu0 %v2828_v35  ;;  %v2876_v35 = vld [vmem:[%s3828_s3 + $0x54] ss:$8 sps:$4 sm:$0xff]  }
  0x53   : > { %587 = vmatpush1.bf16.msra.mxu1 %v2829_v39  ;;  %1118 = vmatpush1.bf16.msra.mxu0 %v2826_v38  ;;  %v2937_v38 = vld [vmem:[%s3828_s3 + $0x1f0] ss:$8 sps:$4 sm:$0xff]  }
  0x54   : > { %831 = vmatprep.subr.bf16.mxu1 %v3020_v4  ;;  %1542 = vmatprep.subr.bf16.mxu0 %v2861_v56  ;;  %v2874_v39 = vld [vmem:[%s3828_s3 + $0x50] ss:$8 sps:$4 sm:$0xff]  }
  0x55   : > { %v2910_v56 = vld [vmem:[%s3828_s3 + $0xb0] ss:$8 sps:$4 sm:$0xff]  }
  0x56   : > { %601 = vmatmul.mubr.bf16.vlgmr.msra.gmra.mrb[8].mxu1 %v3212_v1  ;;  %1132 = vmatmul.mubr.bf16.vlgmr.msra.gmra.mrb[0].mxu0 %v3344_v45  ;;  %v2883_v1 = vld [vmem:[%s3828_s3 + $0x160] ss:$8 sps:$4 sm:$0xff]  }
  0x57   : > { %832 = vmatpush1.bf16.msra.mxu1 %v2830_v44  ;;  %2499 = vmatprep.mubr.msk.bf16.mxu0 %vm510_vm0, %v3250_v14  ;;  %v2940_v44 = vld [vmem:[%s3828_s3 + $0x200] ss:$8 sps:$4 sm:$0xff]  }
  0x58   : > { %833 = vmatprep.subr.bf16.mxu1 %v3020_v4  ;;  %2393 = vmatprep.mubr.msk.bf16.mxu1 %vm510_vm0, %v3224_v6  ;;  %v2846_v6 = vld [vmem:[%s3826_s1 + $0x278] ss:$12 sps:$4 sm:$0xff]  }
  0x59   : > { %1543 = vmatpush1.bf16.msra.mxu0 %v2859_v57  ;;  %v2918_v57 = vld [vmem:[%s3828_s3 + $0xc4] ss:$8 sps:$4 sm:$0xff]  }
  0x5b   : > { %834 = vmatpush1.bf16.msra.mxu1 %v2831_v46  ;;  %v2945_v46 = vld [vmem:[%s3828_s3 + $0x214] ss:$8 sps:$4 sm:$0xff]  }
  0x5c   : > { %835 = vmatprep.subr.bf16.mxu1 %v3020_v4 }
  0x5e   : > { %1142 = vmatmul.mubr.bf16.gmra.mrb[8].mxu0 %v3336_v41  ;;  %609 = vmatmul.mubr.bf16.gmra.mrb[12].mxu1 %v3246_v12  ;;  %v2848_v12 = vld [vmem:[%s3826_s1 + $0x2a8] ss:$12 sps:$4 sm:$0xff]  }
  0x5f   : > { %836 = vmatpush1.bf16.msra.mxu1 %v2832_v47  ;;  %2426 = vmatprep.mubr.msk.bf16.mxu1 %vm510_vm0, %v3165_v36  ;;  %v2836_v36 = vld [vmem:[%s3826_s1 + $0x98] ss:$12 sps:$4 sm:$0xff]   ;;  %v2888_v47 = vld [vmem:[%s3828_s3 + $0x74] ss:$8 sps:$4 sm:$0xff]  }
  0x60   : > { %837 = vmatprep.subr.bf16.mxu1 %v3020_v4 }
  0x63   : > { %838 = vmatpush1.bf16.msra.mxu1 %v2833_v48  ;;  %v2943_v48 = vld [vmem:[%s3828_s3 + $0x210] ss:$8 sps:$4 sm:$0xff]  }
  0x64   : > { %839 = vmatprep.subr.bf16.mxu1 %v3020_v4 }
  0x67   : > { %840 = vmatpush1.bf16.msra.mxu1 %v2834_v49  ;;  %v2886_v49 = vld [vmem:[%s3828_s3 + $0x70] ss:$8 sps:$4 sm:$0xff]  }
  0x68   : > { %841 = vmatprep.subr.bf16.mxu1 %v3020_v4 }
  0x6b   : > { %842 = vmatpush1.bf16.msra.mxu1 %v2835_v50  ;;  %v2894_v50 = vld [vmem:[%s3828_s3 + $0x84] ss:$8 sps:$4 sm:$0xff]  }
  0x6c   : > { %843 = vmatprep.subr.bf16.mxu1 %v3020_v4 }
  0x6f   : > { %844 = vmatpush1.bf16.msra.mxu1 %v2836_v36  ;;  %v2892_v36 = vld [vmem:[%s3828_s3 + $0x80] ss:$8 sps:$4 sm:$0xff]  }
  0x70   : > { %845 = vmatprep.subr.bf16.mxu1 %v3020_v4 }
  0x73   : > { %846 = vmatpush1.bf16.msra.mxu1 %v2837_v51  ;;  %v2900_v51 = vld [vmem:[%s3828_s3 + $0x94] ss:$8 sps:$4 sm:$0xff]  }
  0x74   : > { %847 = vmatprep.subr.bf16.mxu1 %v3020_v4 }
  0x77   : > { %848 = vmatpush1.bf16.msra.mxu1 %v2838_v52  ;;  %v2898_v52 = vld [vmem:[%s3828_s3 + $0x90] ss:$8 sps:$4 sm:$0xff]  }
  0x78   : > { %849 = vmatprep.subr.bf16.mxu1 %v3020_v4 }
  0x7b   : > { %850 = vmatpush1.bf16.msra.mxu1 %v2839_v53  ;;  %v2906_v53 = vld [vmem:[%s3828_s3 + $0xa4] ss:$8 sps:$4 sm:$0xff]  }
  0x7c   : > { %1150 = vmatprep.subr.bf16.mxu1 %v3020_v4 }
  0x7e   : > { %864 = vmatmul.mubr.bf16.vlgmr.msra.gmra.mrb[16].mxu1 %v3175_v42  ;;  %v2842_v42 = vld [vmem:[%s3826_s1 + $0x218] ss:$12 sps:$4 sm:$0xff]  }
  0x7f   : > { %1151 = vmatpush1.bf16.msra.mxu1 %v2840_v54  ;;  %2427 = vmatprep.mubr.msk.bf16.mxu1 %vm510_vm0, %v3167_v37  ;;  %v2867_v37 = vld [vmem:[%s3828_s3 + $0x134] ss:$8 sps:$4 sm:$0xff]   ;;  %v2904_v54 = vld [vmem:[%s3828_s3 + $0xa0] ss:$8 sps:$4 sm:$0xff]  }
  0x80   : > { %1152 = vmatprep.subr.bf16.mxu1 %v3020_v4  ;;  %1544 = vmatprep.subr.bf16.mxu0 %v2867_v37  ;;  %v2924_v37 = vld [vmem:[%s3828_s3 + $0xd4] ss:$8 sps:$4 sm:$0xff]  }
  0x81   : > { %1545 = vmatpush1.bf16.msra.mxu0 %v2865_v58  ;;  %v2922_v58 = vld [vmem:[%s3828_s3 + $0xd0] ss:$8 sps:$4 sm:$0xff]  }
  0x82   : > { %1546 = vmatprep.subr.bf16.mxu0 %v2873_v59  ;;  %v2930_v59 = vld [vmem:[%s3828_s3 + $0xe4] ss:$8 sps:$4 sm:$0xff]  }
  0x83   : > { %1153 = vmatpush1.bf16.msra.mxu1 %v2841_v55  ;;  %v2912_v55 = vld [vmem:[%s3828_s3 + $0xb4] ss:$8 sps:$4 sm:$0xff]  }
  0x84   : > { %1154 = vmatprep.subr.bf16.mxu1 %v3020_v4 }
  0x85   : > { %1547 = vmatpush1.bf16.msra.mxu0 %v2871_v60  ;;  %v2928_v60 = vld [vmem:[%s3828_s3 + $0xe0] ss:$8 sps:$4 sm:$0xff]  }
  0x86   : > { %872 = vmatmul.mubr.bf16.gmra.mrb[20].mxu1 %v3177_v43  ;;  %v2877_v43 = vld [vmem:[%s3828_s3 + $0x150] ss:$8 sps:$4 sm:$0xff]   ;;  %1548 = vmatprep.subr.bf16.mxu0 %v2879_v62 }
  0x87   : > { %1155 = vmatpush1.bf16.msra.mxu1 %v2842_v42  ;;  %2500 = vmatprep.mubr.msk.bf16.mxu1 %vm510_vm0, %v3266_v18  ;;  %v2852_v18 = vld [vmem:[%s3828_s3 + $0x4] ss:$8 sps:$4 sm:$0xff]   ;;  %v2916_v42 = vld [vmem:[%s3828_s3 + $0xc0] ss:$8 sps:$4 sm:$0xff]   ;;  %v2934_v62 = vld [vmem:[%s3828_s3 + $0xf0] ss:$8 sps:$4 sm:$0xff]  }
  0x88   : > { %1156 = vmatprep.subr.bf16.mxu1 %v3020_v4 }
  0x89   : > { %1549 = vmatpush1.bf16.msra.mxu0 %v2877_v43 }
  0x8a   : > { %1550 = vmatprep.subr.bf16.mxu0 %v2885_v0 }
  0x8b   : > { %1157 = vmatpush1.bf16.msra.mxu1 %v2843_v61  ;;  %v2936_v61 = vld [vmem:[%s3828_s3 + $0xf4] ss:$8 sps:$4 sm:$0xff]  }
  0x8c   : > { %1158 = vmatprep.subr.bf16.mxu1 %v3020_v4 }
  0x8d   : > { %1551 = vmatpush1.bf16.msra.mxu0 %v2883_v1 }
  0x8e   : > { %1552 = vmatprep.subr.bf16.mxu0 %v2891_v3 }
  0x8f   : > { %1159 = vmatpush1.bf16.msra.mxu1 %v2844_v63 }
  0x90   : > { %1160 = vmatprep.subr.bf16.mxu1 %v3020_v4 }
  0x91   : > { %1553 = vmatpush1.bf16.msra.mxu0 %v2889_v5 }
  0x92   : > { %1554 = vmatprep.subr.bf16.mxu0 %v2897_v7 }
  0x93   : > { %1161 = vmatpush1.bf16.msra.mxu1 %v2845_v2  ;;  %v2948_v2 = vld [vmem:[%s3828_s3 + $0x224] ss:$8 sps:$4 sm:$0xff]  }
  0x94   : > { %1162 = vmatprep.subr.bf16.mxu1 %v3020_v4 }
  0x95   : > { %1555 = vmatpush1.bf16.msra.mxu0 %v2895_v8 }
  0x96   : > { %1556 = vmatprep.subr.bf16.mxu0 %v2903_v10 }
  0x97   : > { %1163 = vmatpush1.bf16.msra.mxu1 %v2846_v6 }
  0x98   : > { %1164 = vmatprep.subr.bf16.mxu1 %v3020_v4 }
  0x99   : > { %1557 = vmatpush1.bf16.msra.mxu0 %v2901_v11 }
  0x9a   : > { %1558 = vmatprep.subr.bf16.mxu0 %v2909_v13 }
  0x9b   : > { %1165 = vmatpush1.bf16.msra.mxu1 %v2847_v9 }
  0x9c   : > { %1166 = vmatprep.subr.bf16.mxu1 %v3020_v4 }
  0x9d   : > { %1559 = vmatpush1.bf16.msra.mxu0 %v2907_v15  ;;  %v1209_v15 = vlaneseq }
  0x9e   : > { %1560 = vmatprep.subr.bf16.mxu0 %v2915_v17 }
  0x9f   : > { %1167 = vmatpush1.bf16.msra.mxu1 %v2848_v12 }
  0xa0   : > { %1168 = vmatprep.subr.bf16.mxu1 %v3020_v4 }
  0xa1   : > { %1561 = vmatpush1.bf16.msra.mxu0 %v2913_v19 }
  0xa2   : > { %1562 = vmatprep.subr.bf16.mxu0 %v2921_v23 }
  0xa3   : > { %1169 = vmatpush1.bf16.msra.mxu1 %v2849_v16  ;;  %v3638_v16 = vshrl.u32 %v1209_v15, 7 }
  0xa4   : > { %1810 = vmatprep.subr.bf16.mxu1 %v2852_v18  ;;  %v3644_v18 = vld [vmem:[%s3827_s2] sm:$0x7] }
  0xa5   : > { %1563 = vmatpush1.bf16.msra.mxu0 %v2919_v25  ;;  %v1211_v17 = vsub.s32 0, %v3638_v16  ;;  %v1215_v19 = vsub.s32 1, %v3638_v16 }
  0xa6   : > { %1183 = vmatmul.mubr.bf16.vlgmr.msra.gmra.mrb[24].mxu1 %v3344_v45  ;;  %1564 = vmatprep.subr.bf16.mxu0 %v2927_v26  ;;  %v2880_v45 = vld [vmem:[%s3828_s3 + $0x60] ss:$8 sps:$4 sm:$0xff]  }
  0xa7   : > { %2501 = vmatprep.mubr.msk.bf16.mxu1 %vm510_vm0, %v3250_v14  ;;  %1811 = vmatpush1.bf16.msra.mxu1 %v2850_v20  ;;  %v2856_v14 = vld [vmem:[%s3828_s3 + $0x20] ss:$8 sps:$4 sm:$0xff]   ;;  %v1212_v20 = vrot.slane %v3644_v18, %v1211_v17  ;;  %v1216_v23 = vrot.slane %v3644_v18, %v1215_v19 }
  0xa8   : > { %1812 = vmatprep.subr.bf16.mxu1 %v2855_v21 }
  0xa9   : > { %1565 = vmatpush1.bf16.msra.mxu0 %v2925_v28 }
  0xaa   : > { %1566 = vmatprep.subr.bf16.mxu0 %v2933_v30 }
  0xab   : > { %1813 = vmatpush1.bf16.msra.mxu1 %v2853_v22 }
  0xac   : > { %1814 = vmatprep.subr.bf16.mxu1 %v2858_v24 }
  0xad   : > { %1567 = vmatpush1.bf16.msra.mxu0 %v2931_v32 }
  0xae   : > { %1191 = vmatmul.mubr.bf16.gmra.mrb[28].mxu1 %v3336_v41  ;;  %1568 = vmatprep.subr.bf16.mxu0 %v2939_v34  ;;  %v2882_v41 = vld [vmem:[%s3828_s3 + $0x64] ss:$8 sps:$4 sm:$0xff]  }
  0xaf   : > { %1815 = vmatpush1.bf16.msra.mxu1 %v2856_v14 }
  0xb0   : > { %1816 = vmatprep.subr.bf16.mxu1 %v2864_v27 }
  0xb1   : > { %1569 = vmatpush1.bf16.msra.mxu0 %v2937_v38 }
  0xb2   : > { %1570 = vmatprep.subr.bf16.mxu0 %v2942_v40 }
  0xb3   : > { %1817 = vmatpush1.bf16.msra.mxu1 %v2862_v29 }
  0xb4   : > { %1818 = vmatprep.subr.bf16.mxu1 %v2870_v31 }
  0xb5   : > { %1571 = vmatpush1.bf16.msra.mxu0 %v2940_v44 }
  0xb6   : > { %1572 = vmatprep.subr.bf16.mxu0 %v2945_v46 }
  0xb7   : > { %1819 = vmatpush1.bf16.msra.mxu1 %v2868_v33 }
  0xb8   : > { %1820 = vmatprep.subr.bf16.mxu1 %v2876_v35 }
  0xb9   : > { %1573 = vmatpush1.bf16.msra.mxu0 %v2943_v48 }
  0xba   : > { %1585 = vmatprep.subr.bf16.mxu0 %v2948_v2 }
  0xbb   : > { %1821 = vmatpush1.bf16.msra.mxu1 %v2874_v39 }
  0xbc   : > { %1822 = vmatprep.subr.bf16.mxu1 %v2882_v41 }
  0xbf   : > { %1823 = vmatpush1.bf16.msra.mxu1 %v2880_v45 }
  0xc0   : > { %1824 = vmatprep.subr.bf16.mxu1 %v2888_v47 }
  0xc3   : > { %1825 = vmatpush1.bf16.msra.mxu1 %v2886_v49 }
  0xc4   : > { %1826 = vmatprep.subr.bf16.mxu1 %v2894_v50 }
  0xc7   : > { %1827 = vmatpush1.bf16.msra.mxu1 %v2892_v36 }
  0xc8   : > { %1828 = vmatprep.subr.bf16.mxu1 %v2900_v51 }
  0xcb   : > { %1829 = vmatpush1.bf16.msra.mxu1 %v2898_v52 }
  0xcc   : > { %1830 = vmatprep.subr.bf16.mxu1 %v2906_v53 }
  0xcf   : > { %1831 = vmatpush1.bf16.msra.mxu1 %v2904_v54 }
  0xd0   : > { %1832 = vmatprep.subr.bf16.mxu1 %v2912_v55 }
  0xd3   : > { %1833 = vmatpush1.bf16.msra.mxu1 %v2910_v56 }
  0xd4   : > { %1834 = vmatprep.subr.bf16.mxu1 %v2918_v57 }
  0xd7   : > { %1835 = vmatpush1.bf16.msra.mxu1 %v2916_v42 }
  0xd8   : > { %1836 = vmatprep.subr.bf16.mxu1 %v2924_v37 }
  0xdb   : > { %1837 = vmatpush1.bf16.msra.mxu1 %v2922_v58 }
  0xdc   : > { %1838 = vmatprep.subr.bf16.mxu1 %v2930_v59 }
  0xdf   : > { %1839 = vmatpush1.bf16.msra.mxu1 %v2928_v60 }
  0xe0   : > { %1840 = vmatprep.subr.bf16.mxu1 %v2936_v61 }
  0xe3   : > { %1841 = vmatpush1.bf16.msra.mxu1 %v2934_v62 }
 0x101   : > { %v551_v43 = vpop.f32.mrb[0].mxu1 }
 0x102   : > { %v553_v63 = vpop.f32.mrb[1].mxu1 }
 0x103   : > { %v555_v0 = vpop.f32.mrb[2].mxu1 }
 0x104   : > { %v557_v1 = vpop.f32.mrb[3].mxu1 }
 0x109   : > { %v561_v3 = vpop.f32.mrb[4].mxu1  ;;  %v824_v5 = vpop.f32.mrb[4].mxu0 }
 0x10a   : > { %v563_v6 = vpop.f32.mrb[5].mxu1  ;;  %v825_v7 = vadd.f32 %v824_v5, %v561_v3  ;;  %v826_v8 = vpop.f32.mrb[5].mxu0 }
 0x10b   : > { %v565_v9 = vpop.f32.mrb[6].mxu1  ;;  %v827_v10 = vadd.f32 %v826_v8, %v563_v6  ;;  %v828_v11 = vpop.f32.mrb[6].mxu0 }
 0x10c   : > { %v566_v12 = vpop.f32.mrb[7].mxu1  ;;  %v829_v13 = vpop.f32.mrb[7].mxu0 }
 0x129   : > { %v3650_v21 = vpop.f32.mrb[8].mxu1  ;;  %v1133_v22 = vpop.f32.mrb[0].mxu0 }
 0x12a   : > { %v2692_v24 = vadd.f32 %v1133_v22, %v551_v43  ;;  %v604_v25 = vpop.f32.mrb[9].mxu1  ;;  %v1135_v14 = vpop.f32.mrb[1].mxu0 }
 0x12b   : > { %v2693_v26 = vadd.f32 %v1135_v14, %v553_v63  ;;  %v3655_v27 = vpop.f32.mrb[10].mxu1  ;;  %v1137_v28 = vpop.f32.mrb[2].mxu0  ;;  %v2954_v25 = vld [vmem:[%s3828_s3 + $0x104] ss:$8 sps:$4 sm:$0xff]  }
 0x12c   : > { %v1224_v29 = vadd.f32 %v2692_v24, %v1212_v20  ;;  %v2694_v30 = vadd.f32 %v1137_v28, %v555_v0  ;;  %v607_v31 = vpop.f32.mrb[11].mxu1  ;;  %v1139_v32 = vpop.f32.mrb[3].mxu0  ;;  %v2949_v24 = vld [vmem:[%s3828_s3 + $0x230] ss:$8 sps:$4 sm:$0xff]  }
 0x12d   : > { %v1225_v33 = vadd.f32 %v2693_v26, %v1216_v23  ;;  %v2695_v34 = vadd.f32 %v1139_v32, %v557_v1 }
 0x12e   : > { %v1227_v35 = vadd.f32 %v2694_v30, %v1212_v20  ;;  %v1233_v39 = vmax.f32 %v1224_v29, 0.0 }
 0x12f   : > { %v1228_v38 = vadd.f32 %v2695_v34, %v1216_v23  ;;  %v1234_v41 = vmax.f32 %v1225_v33, 0.0 }
 0x130   : > { %v1236_v40 = vmax.f32 %v1227_v35, 0.0 }
 0x131   : > { %v1237_v44 = vmax.f32 %v1228_v38, 0.0  ;;  %v1143_v45 = vpop.f32.mrb[8].mxu0  ;;  %v610_v46 = vpop.f32.mrb[12].mxu1 }
 0x132   : > { %v1242_v47 = vpack.c.bf16 %v1236_v40, %v1233_v39  ;;  %v1204_v48 = vadd.f32 %v1143_v45, %v825_v7  ;;  %v1145_v49 = vpop.f32.mrb[9].mxu0  ;;  %v612_v50 = vpop.f32.mrb[13].mxu1  ;;  %v1219_v39 = vsub.s32 2, %v3638_v16 }
 0x133   : > { %v1243_v36 = vpack.c.bf16 %v1237_v44, %v1234_v41  ;;  %v1205_v51 = vadd.f32 %v1145_v49, %v827_v10  ;;  %v613_v52 = vpop.f32.mrb[14].mxu1  ;;  %v1147_v53 = vpop.f32.mrb[10].mxu0 }
 0x134   : > { %v1230_v54 = vadd.f32 %v1212_v20, %v1204_v48  ;;  %v1324_v55 = vshll.u32 %v1242_v47, 16  ;;  %v614_v56 = vpop.f32.mrb[15].mxu1  ;;  %v1148_v57 = vpop.f32.mrb[11].mxu0  ;;  %v1322_v1 = vshrl.u32 %v1242_v47, 16  ;;  %v1939_v2 = vrot.slane %v1242_v47, 1 }
 0x135   : > { %v1231_v42 = vadd.f32 %v1216_v23, %v1205_v51  ;;  %1842 = vmatprep.mubr.bf16.mxu1 %v1243_v36  ;;  %v1336_v37 = vshll.u32 %v1243_v36, 16  ;;  %v1334_v6 = vshrl.u32 %v1243_v36, 16  ;;  %v1942_v7 = vrot.slane %v1243_v36, 1  ;;  %v2946_v20 = vld [vmem:[%s3828_s3 + $0x220] ss:$8 sps:$4 sm:$0xff]  }
 0x136   : > { %v1239_v58 = vmax.f32 %v1230_v54, 0.0  ;;  %1843 = vmatmul.mubr.bf16.vlgmr.msra.gmra.mrb[32].mxu1 %v1242_v47  ;;  %v1326_v61 = vrot.slane %v1324_v55, 1  ;;  %v2951_v23 = vld [vmem:[%s3828_s3 + $0x234] ss:$8 sps:$4 sm:$0xff]   ;;  %v1220_v40 = vrot.slane %v3644_v18, %v1219_v39  ;;  %v2994_v39 = vld [vmem:[%s3828_s3 + $0x300] ss:$8 sps:$4 sm:$0xff]  }
 0x137   : > { %v1240_v59 = vmax.f32 %v1231_v42, 0.0  ;;  %v1338_v43 = vrot.slane %v1336_v37, 1 }
 0x138   : > { %v1281_v60 = vpack.c.bf16 %v1239_v58, %v1239_v58  ;;  %v1327_v9 = vor.u32 %v1326_v61, %v1322_v1  ;;  %v2957_v1 = vld [vmem:[%s3828_s3 + $0x114] ss:$8 sps:$4 sm:$0xff]  }
 0x139   : > { %v1282_v62 = vpack.c.bf16 %v1240_v59, %v1240_v59  ;;  %v1339_v12 = vor.u32 %v1338_v43, %v1334_v6  ;;  %v2952_v43 = vld [vmem:[%s3828_s3 + $0x100] ss:$8 sps:$4 sm:$0xff]  }
 0x13a   : > { %v1329_v63 = vshll.u32 %v1281_v60, 16  ;;  %v1940_v0 = vrot.slane %v1281_v60, 1  ;;  %v2958_v6 = vld [vmem:[%s3828_s3 + $0x240] ss:$8 sps:$4 sm:$0xff]  }
 0x13b   : > { %v1341_v3 = vshll.u32 %v1282_v62, 16  ;;  %v1943_v5 = vrot.slane %v1282_v62, 1 }
 0x13c   : > { %v1331_v8 = vrot.slane %v1329_v63, 1  ;;  %v3658_v10 = vsel %vm924_vm2, %v1939_v2, %v1940_v0 }
 0x13d   : > { %v1343_v11 = vrot.slane %v1341_v3, 1  ;;  %v3661_v13 = vsel %vm924_vm2, %v1942_v7, %v1943_v5  ;;  %v2955_v3 = vld [vmem:[%s3828_s3 + $0x110] ss:$8 sps:$4 sm:$0xff]   ;;  %v2960_v5 = vld [vmem:[%s3828_s3 + $0x244] ss:$8 sps:$4 sm:$0xff]  }
 0x13e   : > { %v1332_v15 = vsel %vm317_vm1, %v1327_v9, %v1331_v8  ;;  %v2963_v7 = vld [vmem:[%s3828_s3 + $0x254] ss:$8 sps:$4 sm:$0xff]   ;;  %v2961_v8 = vld [vmem:[%s3828_s3 + $0x250] ss:$8 sps:$4 sm:$0xff]   ;;  %v2966_v9 = vld [vmem:[%s3828_s3 + $0x264] ss:$8 sps:$4 sm:$0xff]  }
 0x13f   : > { %v1344_v22 = vsel %vm317_vm1, %v1339_v12, %v1343_v11  ;;  %v2964_v11 = vld [vmem:[%s3828_s3 + $0x260] ss:$8 sps:$4 sm:$0xff]   ;;  %v2969_v12 = vld [vmem:[%s3828_s3 + $0x274] ss:$8 sps:$4 sm:$0xff]  }
 0x140   : > { %1574 = vmatprep.mubr.bf16.mxu0 %v1344_v22  ;;  %v2975_v22 = vld [vmem:[%s3828_s3 + $0x294] ss:$8 sps:$4 sm:$0xff]  }
 0x141   : > { %1575 = vmatmul.mubr.bf16.vlgmr.msra.gmra.mrb[12].mxu0 %v1332_v15  ;;  %v2972_v15 = vld [vmem:[%s3828_s3 + $0x284] ss:$8 sps:$4 sm:$0xff]  }
 0x142   : > { %1586 = vmatpush1.bf16.msra.mxu0 %v2946_v20  ;;  %1617 = vmatprep.mubr.bf16.mxu0 %v3020_v4  ;;  %v2970_v20 = vld [vmem:[%s3828_s3 + $0x280] ss:$8 sps:$4 sm:$0xff]  }
 0x143   : > { %1587 = vmatprep.subr.bf16.mxu0 %v2951_v23  ;;  %v2973_v23 = vld [vmem:[%s3828_s3 + $0x290] ss:$8 sps:$4 sm:$0xff]  }
 0x146   : > { %1588 = vmatpush1.bf16.msra.mxu0 %v2949_v24  ;;  %v2978_v24 = vld [vmem:[%s3828_s3 + $0x2a4] ss:$8 sps:$4 sm:$0xff]  }
 0x147   : > { %1853 = vmatprep.subr.bf16.mxu0 %v2954_v25  ;;  %v2976_v25 = vld [vmem:[%s3828_s3 + $0x2a0] ss:$8 sps:$4 sm:$0xff]  }
 0x151   : > { %v865_v14 = vpop.f32.mrb[16].mxu1 }
 0x152   : > { %v866_v26 = vadd.f32 %v865_v14, %v3650_v21  ;;  %v867_v28 = vpop.f32.mrb[17].mxu1  ;;  %v2981_v14 = vld [vmem:[%s3828_s3 + $0x2b4] ss:$8 sps:$4 sm:$0xff]  }
 0x153   : > { %v868_v29 = vpop.f32.mrb[18].mxu1  ;;  %v2984_v28 = vld [vmem:[%s3828_s3 + $0x2c4] ss:$8 sps:$4 sm:$0xff]  }
 0x154   : > { %v869_v30 = vadd.f32 %v868_v29, %v3655_v27  ;;  %v870_v31 = vpop.f32.mrb[19].mxu1  ;;  %v2982_v29 = vld [vmem:[%s3828_s3 + $0x2c0] ss:$8 sps:$4 sm:$0xff]  }
 0x155   : > { %v2985_v31 = vld [vmem:[%s3828_s3 + $0x2d0] ss:$8 sps:$4 sm:$0xff]  }
 0x159   : > { %v873_v32 = vpop.f32.mrb[20].mxu1 }
 0x15a   : > { %v874_v33 = vadd.f32 %v873_v32, %v610_v46  ;;  %v875_v34 = vpop.f32.mrb[21].mxu1  ;;  %v2990_v32 = vld [vmem:[%s3828_s3 + $0x2e4] ss:$8 sps:$4 sm:$0xff]  }
 0x15b   : > { %v876_v35 = vpop.f32.mrb[22].mxu1  ;;  %v2993_v34 = vld [vmem:[%s3828_s3 + $0x2f4] ss:$8 sps:$4 sm:$0xff]  }
 0x15c   : > { %v877_v38 = vpop.f32.mrb[23].mxu1  ;;  %v2991_v35 = vld [vmem:[%s3828_s3 + $0x2f0] ss:$8 sps:$4 sm:$0xff]  }
 0x15d   : > { %v2996_v38 = vld [vmem:[%s3828_s3 + $0x304] ss:$8 sps:$4 sm:$0xff]  }
 0x179   : > { %v1184_v41 = vpop.f32.mrb[24].mxu1 }
 0x17a   : > { %v1200_v44 = vadd.f32 %v1184_v41, %v866_v26  ;;  %v1186_v45 = vpop.f32.mrb[25].mxu1  ;;  %v2979_v26 = vld [vmem:[%s3828_s3 + $0x2b0] ss:$8 sps:$4 sm:$0xff]  }
 0x17b   : > { %v1187_v47 = vpop.f32.mrb[26].mxu1  ;;  %v2997_v41 = vld [vmem:[%s3828_s3 + $0x310] ss:$8 sps:$4 sm:$0xff]   ;;  %v3000_v45 = vld [vmem:[%s3828_s3 + $0x320] ss:$8 sps:$4 sm:$0xff]  }
 0x17c   : > { %v1226_v48 = vadd.f32 %v1220_v40, %v1200_v44  ;;  %v1203_v21 = vadd.f32 %v1187_v47, %v869_v30  ;;  %v1189_v49 = vpop.f32.mrb[27].mxu1  ;;  %v2987_v30 = vld [vmem:[%s3828_s3 + $0x2d4] ss:$8 sps:$4 sm:$0xff]   ;;  %v3002_v44 = vld [vmem:[%s3828_s3 + $0x324] ss:$8 sps:$4 sm:$0xff]  }
 0x17d   : > { %v3005_v47 = vld [vmem:[%s3828_s3 + $0x334] ss:$8 sps:$4 sm:$0xff]   ;;  %v3006_v49 = vld [vmem:[%s3828_s3 + $0x340] ss:$8 sps:$4 sm:$0xff]  }
 0x17e   : > { %v1229_v50 = vadd.f32 %v1220_v40, %v1203_v21  ;;  %v1235_v36 = vmax.f32 %v1226_v48, 0.0  ;;  %v3003_v48 = vld [vmem:[%s3828_s3 + $0x330] ss:$8 sps:$4 sm:$0xff]   ;;  %v3008_v21 = vld [vmem:[%s3828_s3 + $0x344] ss:$8 sps:$4 sm:$0xff]  }
 0x180   : > { %v1238_v27 = vmax.f32 %v1229_v50, 0.0  ;;  %v3011_v50 = vld [vmem:[%s3828_s3 + $0x354] ss:$8 sps:$4 sm:$0xff]  }
 0x181   : > { %v1192_v51 = vpop.f32.mrb[28].mxu1 }
 0x182   : > { %v1244_v52 = vpack.c.bf16 %v1238_v27, %v1235_v36  ;;  %v1206_v46 = vadd.f32 %v1192_v51, %v874_v33  ;;  %v1194_v53 = vpop.f32.mrb[29].mxu1  ;;  %v2988_v33 = vld [vmem:[%s3828_s3 + $0x2e0] ss:$8 sps:$4 sm:$0xff]   ;;  %v3009_v36 = vld [vmem:[%s3828_s3 + $0x350] ss:$8 sps:$4 sm:$0xff]  }
 0x183   : > { %v1195_v54 = vpop.f32.mrb[30].mxu1 }
 0x184   : > { %v1232_v55 = vadd.f32 %v1220_v40, %v1206_v46  ;;  %v1196_v56 = vpop.f32.mrb[31].mxu1  ;;  %v1348_v57 = vshll.u32 %v1244_v52, 16  ;;  %v1346_v60 = vshrl.u32 %v1244_v52, 16  ;;  %v1945_v61 = vrot.slane %v1244_v52, 1  ;;  %v2999_v40 = vld [vmem:[%s3828_s3 + $0x314] ss:$8 sps:$4 sm:$0xff]  }
 0x186   : > { %v1241_v42 = vmax.f32 %v1232_v55, 0.0  ;;  %v1350_v37 = vrot.slane %v1348_v57, 1 }
 0x188   : > { %v1283_v18 = vpack.c.bf16 %v1241_v42, %v1241_v42  ;;  %v1351_v63 = vor.u32 %v1350_v37, %v1346_v60 }
 0x18a   : > { %v1353_v58 = vshll.u32 %v1283_v18, 16  ;;  %v1946_v59 = vrot.slane %v1283_v18, 1 }
 0x18c   : > { %v1355_v62 = vrot.slane %v1353_v58, 1  ;;  %v3686_v0 = vsel %vm924_vm2, %v1945_v61, %v1946_v59 }
 0x18e   : > { %v1356_v2 = vsel %vm317_vm1, %v1351_v63, %v1355_v62 }
 0x18f   : > { %2574 = vmatmul.mubr.msk.bf16.vlgmr.msra.gmra.mrb[12].mxu0 %vm510_vm0, %v1356_v2 }
 0x190   : > { %1854 = vmatpush1.bf16.msra.mxu0 %v2952_v43  ;;  %1885 = vmatprep.mubr.bf16.mxu0 %v3020_v4 }
 0x191   : > { %1855 = vmatprep.subr.bf16.mxu0 %v2957_v1 }
 0x194   : > { %1856 = vmatpush1.bf16.msra.mxu0 %v2955_v3 }
 0x195   : > { %2133 = vmatprep.subr.bf16.mxu0 %v2960_v5 }
 0x197   : > { %2611 = vmatmul.mubr.msk.bf16.vlgmr.msra.gmra.mrb[16].mxu0 %vm510_vm0, %v1244_v52 }
 0x198   : > { %2134 = vmatpush1.bf16.msra.mxu0 %v2958_v6  ;;  %2165 = vmatprep.mubr.bf16.mxu0 %v3661_v13  ;;  %v2967_v13 = vld [vmem:[%s3828_s3 + $0x270] ss:$8 sps:$4 sm:$0xff]  }
 0x199   : > { %2135 = vmatprep.subr.bf16.mxu0 %v2963_v7 }
 0x19c   : > { %2136 = vmatpush1.bf16.msra.mxu0 %v2961_v8 }
 0x19d   : > { %2137 = vmatprep.subr.bf16.mxu0 %v2966_v9 }
 0x1a0   : > { %2138 = vmatpush1.bf16.msra.mxu0 %v2964_v11 }
 0x1a1   : > { %2139 = vmatprep.subr.bf16.mxu0 %v2969_v12 }
 0x1a4   : > { %2140 = vmatpush1.bf16.msra.mxu0 %v2967_v13 }
 0x1a5   : > { %2141 = vmatprep.subr.bf16.mxu0 %v2972_v15 }
 0x1a8   : > { %2142 = vmatpush1.bf16.msra.mxu0 %v2970_v20 }
 0x1a9   : > { %2143 = vmatprep.subr.bf16.mxu0 %v2975_v22 }
 0x1ac   : > { %2144 = vmatpush1.bf16.msra.mxu0 %v2973_v23 }
 0x1ad   : > { %2145 = vmatprep.subr.bf16.mxu0 %v2978_v24 }
 0x1b0   : > { %2146 = vmatpush1.bf16.msra.mxu0 %v2976_v25 }
 0x1b1   : > { %2147 = vmatprep.subr.bf16.mxu0 %v2981_v14 }
 0x1b4   : > { %2148 = vmatpush1.bf16.msra.mxu0 %v2979_v26 }
 0x1b5   : > { %2149 = vmatprep.subr.bf16.mxu0 %v2984_v28 }
 0x1b8   : > { %2150 = vmatpush1.bf16.msra.mxu0 %v2982_v29 }
 0x1b9   : > { %2151 = vmatprep.subr.bf16.mxu0 %v2987_v30 }
 0x1bc   : > { %2152 = vmatpush1.bf16.msra.mxu0 %v2985_v31 }
 0x1bd   : > { %2153 = vmatprep.subr.bf16.mxu0 %v2990_v32 }
 0x1c0   : > { %2154 = vmatpush1.bf16.msra.mxu0 %v2988_v33 }
 0x1c1   : > { %2155 = vmatprep.subr.bf16.mxu0 %v2993_v34 }
 0x1c4   : > { %2156 = vmatpush1.bf16.msra.mxu0 %v2991_v35 }
 0x1c5   : > { %2157 = vmatprep.subr.bf16.mxu0 %v2996_v38 }
 0x1c8   : > { %2158 = vmatpush1.bf16.msra.mxu0 %v2994_v39 }
 0x1c9   : > { %2159 = vmatprep.subr.bf16.mxu0 %v2999_v40 }
 0x1cc   : > { %2160 = vmatpush1.bf16.msra.mxu0 %v2997_v41 }
 0x1cd   : > { %2161 = vmatprep.subr.bf16.mxu0 %v3002_v44 }
 0x1d0   : > { %2162 = vmatpush1.bf16.msra.mxu0 %v3000_v45 }
 0x1d1   : > { %2163 = vmatprep.subr.bf16.mxu0 %v3005_v47 }
 0x1d4   : > { %2164 = vmatpush1.bf16.msra.mxu0 %v3003_v48 }
 0x1d5   : > { %2176 = vmatprep.subr.bf16.mxu0 %v3008_v21 }
 0x1d7   : > { %2166 = vmatmul.mubr.bf16.vlgmr.msra.gmra.mrb[16].mxu0 %v3658_v10 }
 0x1d8   : > { %2177 = vmatpush1.bf16.msra.mxu0 %v3006_v49  ;;  %2208 = vmatprep.mubr.bf16.mxu0 %v3020_v4  ;;  %v2223_v4 = vld [vmem:[%s3829_s4] sm:$0x3] }
 0x1d9   : > { %2178 = vmatprep.subr.bf16.mxu0 %v3011_v50  ;;  %v2228_v37 = vrot.slane %v2223_v4, %v1211_v17  ;;  %v2232_v59 = vrot.slane %v2223_v4, %v1215_v19 }
 0x1dc   : > { %2179 = vmatpush1.bf16.msra.mxu0 %v3009_v36 }
 0x1e3   : > { %2684 = vmatmul.mubr.msk.bf16.vlgmr.msra.gmra.mrb[16].mxu0 %vm510_vm0, %v3686_v0 }
 0x209   : > { %v1844_v27 = vpop.f32.mrb[32].mxu1 }
 0x20a   : > { %v1846_v51 = vpop.f32.mrb[33].mxu1 }
 0x20b   : > { %v1848_v52 = vpop.f32.mrb[34].mxu1 }
 0x20c   : > { %v1850_v46 = vpop.f32.mrb[35].mxu1 }
 0x262   : > { %v1619_v53 = vpop.f32.mrb[12].mxu0 }
 0x263   : > { %v2696_v54 = vadd.f32 %v1844_v27, %v1619_v53  ;;  %v1621_v55 = vpop.f32.mrb[13].mxu0 }
 0x264   : > { %v2698_v10 = vadd.f32 %v1846_v51, %v1621_v55  ;;  %v1623_v56 = vpop.f32.mrb[14].mxu0 }
 0x265   : > { %v2700_v57 = vadd.f32 %v1848_v52, %v1623_v56  ;;  %v1625_v42 = vpop.f32.mrb[15].mxu0 }
 0x266   : > { %v2702_v18 = vadd.f32 %v1850_v46, %v1625_v42 }
 0x2b6   : > { %v2210_v58 = vpop.f32.mrb[16].mxu0 }
 0x2b7   : > { %v2697_v60 = vadd.f32 %v2696_v54, %v2210_v58  ;;  %v2212_v61 = vpop.f32.mrb[17].mxu0 }
 0x2b8   : > { %v2699_v62 = vadd.f32 %v2698_v10, %v2212_v61  ;;  %v2214_v43 = vpop.f32.mrb[18].mxu0 }
 0x2b9   : > { %v2235_v63 = vadd.f32 %v2697_v60, %v2228_v37  ;;  %v2701_v0 = vadd.f32 %v2700_v57, %v2214_v43  ;;  %v2216_v1 = vpop.f32.mrb[19].mxu0 }
 0x2ba   : > { %v2236_v2 = vadd.f32 %v2699_v62, %v2232_v59  ;;  %v2703_v3 = vadd.f32 %v2702_v18, %v2216_v1 }
 0x2bb   : > { %v2239_v5 = vmax.f32 %v2235_v63, 0.0  ;;  %v2237_v6 = vadd.f32 %v2701_v0, %v2228_v37 }
 0x2bc   : > { %v2240_v7 = vmax.f32 %v2236_v2, 0.0  ;;  %v2238_v8 = vadd.f32 %v2703_v3, %v2232_v59 }
 0x2bd   : > { %v2241_v16 = vmax.f32 %v2237_v6, 0.0 }
 0x2be   : > { %v2690_v17 = vpack.c.bf16 %v2240_v7, %v2239_v5  ;;  %v2242_v19 = vmax.f32 %v2238_v8, 0.0 }
 0x2c0   : > { %2255 = vst [vmem:[%s224_s11] sm:$0xff] %v2690_v17  ;;  %v2691_v9 = vpack.c.bf16 %v2242_v19, %v2241_v16 }
 0x2c2   : > { %2256 = vst [vmem:[%s224_s11 + $0x8] sm:$0xff] %v2691_v9 }
 0x2c3 PF: > { %s15_s18 = sadd.s32 1, %s3018_s18  }
 0x2c4   : > { %p12_p4 = scmp.ge.s32.totalorder %s15_s18, 4  }
 0x2c6   :  { %14 = sbr.rel (!%p12_p4) target bundleno = 1 (0x1), region = 74 }

</bundles_post_ra>
